<compile_context>
chip_gen: v6e
topology: v6e:2x2x1
jax: 0.10.0
libtpu: 0.0.40
codegen_flags: <defaults>
</compile_context>

<pallas_src>
import functools

import jax
import jax.numpy as jnp
from jax.experimental import pallas as pl
from jax.experimental.pallas import tpu as pltpu


# For ConvTranspose2d(k=4, s=2, p=1): each output-index parity q (0=even, 1=odd)
# along an axis receives exactly two kernel taps.  _TAPS[q] = ((kernel_index,
# start_offset_into_1-padded_input), ...); the slice length is the strip height (or W).
_TAPS = (((1, 1), (3, 0)),   # even outputs:  k=1 <- x[u],   k=3 <- x[u-1]
         ((2, 1), (0, 2)))   # odd  outputs:  k=2 <- x[u],   k=0 <- x[u+1]


def _pack_weights(w_pt, dtype):
    """(Cin, Cout, 4, 4) ConvTranspose2d weight -> (4, 4*Cin, Cout).

    Parity-major (p = 2*py + px); tap rows ordered to match the in-kernel tap loop /
    im2col concat. Static per model -- hoist out of the per-step path in real use."""
    mats = []
    for py in range(2):
        for px in range(2):
            rows = [w_pt[:, :, ky, kx]                       # (Cin, Cout) per tap
                    for (ky, _) in _TAPS[py] for (kx, _) in _TAPS[px]]
            mats.append(jnp.concatenate(rows, axis=0))       # (4*Cin, Cout)
    return jnp.stack(mats, axis=0).astype(dtype)             # (4, 4*Cin, Cout)


def _vmem_limit_bytes():
    """~3/4 of this chip's VMEM: ~48 MiB on v7x (64 MiB/TC), ~96 MiB on v5e/v6e."""
    try:
        cap = pltpu.get_tpu_info().vmem_capacity_bytes
    except Exception:
        cap = 64 * 1024 * 1024        # conservative fallback (safe on every chip)
    return int(cap) * 3 // 4


def _choose_strip_rows(H, W, Cin, Cout, itemsize, vmem_limit):
    """Largest divisor of H whose per-step VMEM footprint fits the budget."""
    # Strip-independent residents: whole padded image (x2 pipeline buffers) + packed
    # weights (x2 buffers).
    fixed = 2 * (H + 2) * (W + 2) * Cin * itemsize + 2 * 16 * Cin * Cout * itemsize
    # Per input-strip-row: raw output rows (x2 buffers) + one f32 parity accumulator
    # + shifted tap-view / im2col temporaries.
    per_row = (2 * (2 * W * 2 * Cout * itemsize)
               + W * Cout * 4
               + 8 * W * Cin * itemsize)
    budget = int(vmem_limit * 0.6)
    for hs in range(H, 0, -1):
        if H % hs == 0 and fixed + hs * per_row <= budget:
            return hs
    return 1


def _build_conv_stats_kernel(W, Cin, Cout, hs):
    """Pass 1: per-strip transposed conv (parity decomposition) + partial IN stats."""
    use_concat = Cin < 128   # lane-concat im2col only pays off for small Cin
    # TODO(synk): for small-Cout layers, pack the 4 parities into one matmul over a
    # shared 3x3 tap superset so the MXU N dim and the stored lane dim reach 128.

    def kernel(xp_ref, w_ref, y_ref, st_ref):
        # xp_ref: (1, H+2, W+2, Cin)   whole 1-padded image (resident across strips)
        # w_ref : (4, 4*Cin, Cout)     parity/tap-packed ConvT weights
        # y_ref : (1, hs, 2, W, 2*Cout) raw conv strip; lane dim packs (px, Cout)
        # st_ref: (1, 1, 2, Cout)      partial [sum ; sumsq] for this strip (f32)
        s = pl.program_id(1)
        row0 = pl.multiple_of(s * hs, hs)   # strip start, in unpadded input rows
        tot_s = None
        tot_ss = None
        for py in range(2):
            for px in range(2):
                p = 2 * py + px
                if use_concat:
                    taps = [xp_ref[0, pl.ds(row0 + ry, hs), rx:rx + W, :]
                            for (_, ry) in _TAPS[py] for (_, rx) in _TAPS[px]]
                    patch = jnp.concatenate(taps, axis=-1)          # (hs, W, 4*Cin)
                    y = jnp.einsum("hwc,cd->hwd", patch, w_ref[p],
                                   preferred_element_type=jnp.float32)
                else:
                    # 4 accumulating matmuls (K = Cin) on shifted tap views.
                    y = None
                    t = 0
                    for (_, ry) in _TAPS[py]:
                        for (_, rx) in _TAPS[px]:
                            tap = xp_ref[0, pl.ds(row0 + ry, hs), rx:rx + W, :]
                            part = jnp.einsum(
                                "hwc,cd->hwd", tap,
                                w_ref[p, t * Cin:(t + 1) * Cin, :],
                                preferred_element_type=jnp.float32)
                            y = part if y is None else y + part
                            t += 1
                # Partial InstanceNorm stats in f32; cross-strip reduce + finalize
                # happen in the wrapper.
                ps = jnp.sum(y, axis=(0, 1), keepdims=True)          # (1, 1, Cout)
                pss = jnp.sum(y * y, axis=(0, 1), keepdims=True)
                tot_s = ps if tot_s is None else tot_s + ps
                tot_ss = pss if tot_ss is None else tot_ss + pss
                # Per-parity slice store: only one f32 (hs, W, Cout) tile live at a
                # time; lane offset px*Cout is 128-aligned whenever Cout % 128 == 0.
                y_ref[0, :, py, :, px * Cout:(px + 1) * Cout] = y.astype(y_ref.dtype)
        st_ref[0, 0, 0:1, :] = tot_s[0]
        st_ref[0, 0, 1:2, :] = tot_ss[0]

    return kernel


def _norm_relu_kernel(y_ref, sc_ref, sh_ref, o_ref):
    """Pass 2: elementwise (y * scale - shift), ReLU, cast."""
    y = y_ref[0].astype(jnp.float32)            # (hs, 2, W, 2*Cout)
    sc = sc_ref[0]                              # (1, 2*Cout) f32, broadcasts on lanes
    sh = sh_ref[0]
    o_ref[0] = jnp.maximum(y * sc - sh, 0.0).astype(o_ref.dtype)


@functools.partial(jax.jit,
                   static_argnames=("compute_dtype", "out_dtype", "strip_rows"))
def unet_up_pallas(x_nchw, w_pt, skip_nchw, *, compute_dtype=jnp.bfloat16,
                   out_dtype=None, strip_rows=None, eps=1e-5):
    """x_nchw: (N, Cin, H, W); w_pt: (Cin, Cout, 4, 4) ConvTranspose2d weight;
    skip_nchw: (N, Cskip, Hs, Ws). Returns (N, Cout+Cskip, 2H, 2W) NCHW."""
    N, Cin, H, W = x_nchw.shape
    Cout = w_pt.shape[1]
    Ho, Wo = 2 * H, 2 * W
    compute_dtype = jnp.dtype(compute_dtype)
    raw_dtype = compute_dtype                       # pre-norm HBM intermediate dtype
    out_dtype = jnp.dtype(out_dtype) if out_dtype is not None else compute_dtype
    vmem_limit = _vmem_limit_bytes()

    if strip_rows is None:
        strip_rows = _choose_strip_rows(H, W, Cin, Cout, compute_dtype.itemsize,
                                        vmem_limit)
    assert H % strip_rows == 0, (H, strip_rows)
    n_strips = H // strip_rows

    # Glue: bilinear resize of skip if spatial dims mismatch.
    # Note: jax.image.resize('bilinear') may differ slightly from PyTorch
    # F.interpolate(align_corners=False) at image borders.
    if skip_nchw.shape[2:] != (Ho, Wo):
        skip_nchw = jax.image.resize(skip_nchw, skip_nchw.shape[:2] + (Ho, Wo),
                                     method="bilinear", antialias=False)

    # NCHW -> NHWC, pad by 1, cast matmul inputs (fused by XLA under jit).
    xp = jnp.pad(jnp.transpose(x_nchw, (0, 2, 3, 1)),
                 ((0, 0), (1, 1), (1, 1), (0, 0))).astype(compute_dtype)
    w_par = _pack_weights(w_pt, compute_dtype)

    # ---- Pass 1: per-strip transposed conv + partial InstanceNorm stats ----
    # TODO(synk): for very large H*W*Cin, pass xp via memory_space=pl.ANY and DMA a
    # per-strip halo window manually instead of keeping the whole image resident.
    conv_kernel = _build_conv_stats_kernel(W, Cin, Cout, strip_rows)
    y_raw, stats = pl.pallas_call(
        conv_kernel,
        out_shape=(jax.ShapeDtypeStruct((N, H, 2, W, 2 * Cout), raw_dtype),
                   jax.ShapeDtypeStruct((N, n_strips, 2, Cout), jnp.float32)),
        grid_spec=pltpu.PrefetchScalarGridSpec(
            num_scalar_prefetch=0,
            grid=(N, n_strips),
            in_specs=[
                # Whole padded image per batch element (small vs. the output); block
                # index is constant along the strip axis so it is not re-fetched.
                pl.BlockSpec((1, H + 2, W + 2, Cin), lambda n, s: (n, 0, 0, 0)),
                # TODO(synk): on v7x, pass the weight via memory_space=pl.ANY + one
                # manual DMA into VMEM scratch to avoid a second pipeline buffer.
                pl.BlockSpec((4, 4 * Cin, Cout), lambda n, s: (0, 0, 0)),
            ],
            out_specs=[
                pl.BlockSpec((1, strip_rows, 2, W, 2 * Cout),
                             lambda n, s: (n, s, 0, 0, 0)),
                pl.BlockSpec((1, 1, 2, Cout), lambda n, s: (n, s, 0, 0)),
            ],
        ),
        compiler_params=pltpu.CompilerParams(
            dimension_semantics=("parallel", "parallel"),
            vmem_limit_bytes=vmem_limit,
        ),
    )(xp, w_par)

    # ---- Tiny cross-strip stats reduce + InstanceNorm finalize (plain JAX) ----
    # TODO(synk): E[x^2]-mean^2 in f32 can cancel when |mean| >> std; switch to a
    # shifted/Welford accumulation if that regime shows up in practice.
    inv_n = 1.0 / (4.0 * H * W)                        # IN averages over Ho*Wo pixels
    tot = jnp.sum(stats, axis=1)                       # (N, 2, Cout)
    mean = tot[:, 0, :] * inv_n
    var = jnp.maximum(tot[:, 1, :] * inv_n - mean * mean, 0.0)
    scale = jax.lax.rsqrt(var + eps)                   # (N, Cout)
    shift = mean * scale
    # Lane dim of the raw output packs (px, Cout): replicate per-channel factors.
    scale2 = jnp.tile(scale, (1, 2)).reshape(N, 1, 2 * Cout)
    shift2 = jnp.tile(shift, (1, 2)).reshape(N, 1, 2 * Cout)

    # ---- Pass 2: normalize + ReLU sweep over the same strips ----
    y_nrm = pl.pallas_call(
        _norm_relu_kernel,
        out_shape=jax.ShapeDtypeStruct((N, H, 2, W, 2 * Cout), out_dtype),
        grid_spec=pltpu.PrefetchScalarGridSpec(
            num_scalar_prefetch=0,
            grid=(N, n_strips),
            in_specs=[
                pl.BlockSpec((1, strip_rows, 2, W, 2 * Cout),
                             lambda n, s: (n, s, 0, 0, 0)),
                pl.BlockSpec((1, 1, 2 * Cout), lambda n, s: (n, 0, 0)),
                pl.BlockSpec((1, 1, 2 * Cout), lambda n, s: (n, 0, 0)),
            ],
            out_specs=pl.BlockSpec((1, strip_rows, 2, W, 2 * Cout),
                                   lambda n, s: (n, s, 0, 0, 0)),
        ),
        compiler_params=pltpu.CompilerParams(
            dimension_semantics=("parallel", "parallel"),
            vmem_limit_bytes=vmem_limit,
        ),
    )(y_raw, scale2, shift2)

    # Depth-to-space is now a *pure reshape*; only NHWC->NCHW remains, then the skip
    # concat is a contiguous NCHW block copy (skip never touches the kernels).
    y = y_nrm.reshape(N, Ho, Wo, Cout)
    y = jnp.transpose(y, (0, 3, 1, 2))
    res_dtype = x_nchw.dtype
    return jnp.concatenate([y.astype(res_dtype), skip_nchw.astype(res_dtype)], axis=1)


def ode_func_forward(model_fn, t, x, condition_rgb):
    """Mirror of ODEFunc.forward: ensure batch dim, broadcast scalar t, call model."""
    # TODO(synk): the real `model` is the full flow-matching UNet; here the Pallas
    # UNetUp block stands in for it (ODEFunc itself has no kernel-able compute).
    if x.ndim == 3:
        x = x[None]
    t_batched = jnp.full((x.shape[0],), jnp.float32(t), dtype=jnp.float32)
    return model_fn(x, t_batched, condition_rgb)


def unet_up_reference(x, w_pt, skip):
    """Pure-JAX reference mirroring the PyTorch module (for verification)."""
    K, s, p = 4, 2, 1
    rhs = jnp.transpose(jnp.flip(w_pt, axis=(2, 3)), (1, 0, 2, 3))  # (O, I, kh, kw)
    y = jax.lax.conv_general_dilated(
        x, rhs, window_strides=(1, 1),
        padding=[(K - 1 - p, K - 1 - p)] * 2,
        lhs_dilation=(s, s),
        dimension_numbers=("NCHW", "OIHW", "NCHW"))
    mean = jnp.mean(y, axis=(2, 3), keepdims=True)
    var = jnp.mean((y - mean) ** 2, axis=(2, 3), keepdims=True)
    y = jnp.maximum((y - mean) * jax.lax.rsqrt(var + 1e-5), 0.0)
    if y.shape[2:] != skip.shape[2:]:
        skip = jax.image.resize(skip, skip.shape[:2] + y.shape[2:],
                                method="bilinear", antialias=False)
    return jnp.concatenate([y, skip], axis=1)


if __name__ == "__main__":
    key = jax.random.PRNGKey(0)
    k1, k2, k3, k4, k5 = jax.random.split(key, 5)

    # --- Config A: small-Cin layer (lane-concat im2col path), multi-strip grid. ---
    N, Cin, Cout, H, W = 2, 4, 8, 16, 16
    x = jax.random.normal(k1, (N, Cin, H, W), jnp.float32)
    # ConvTranspose2d weight shape: (in_channels, out_channels, kH, kW)
    w_pt = jax.random.normal(k2, (Cin, Cout, 4, 4), jnp.float32) * 0.1
    skip = jax.random.normal(k3, (N, Cout, 2 * H, 2 * W), jnp.float32)

    ref = jax.block_until_ready(unet_up_reference(x, w_pt, skip))

    # f32 compute path, forced 2-strip grid: structural check vs. dense ConvT ref.
    out_f32 = jax.block_until_ready(
        unet_up_pallas(x, w_pt, skip, compute_dtype=jnp.float32, strip_rows=8))
    assert out_f32.shape == (N, 2 * Cout, 2 * H, 2 * W), out_f32.shape
    assert jnp.allclose(out_f32, ref, rtol=2e-4, atol=2e-4), "f32 mismatch vs reference"

    # Default bf16 path (bf16 matmul inputs, bf16 raw + final outputs), 2 strips.
    out_bf16 = jax.block_until_ready(unet_up_pallas(x, w_pt, skip, strip_rows=8))
    assert out_bf16.shape == ref.shape
    assert jnp.allclose(out_bf16, ref, rtol=6e-2, atol=6e-2), "bf16 mismatch vs reference"

    # Auto strip selection (single strip at these tiny shapes) must also match.
    out_auto = jax.block_until_ready(unet_up_pallas(x, w_pt, skip))
    assert jnp.allclose(out_auto, ref, rtol=6e-2, atol=6e-2), "auto-strip mismatch"

    # --- Config B: Cin >= 128 -> per-tap accumulating-matmul path (no im2col). ---
    N2, Cin2, Cout2, H2, W2 = 1, 128, 8, 8, 8
    x2 = jax.random.normal(k4, (N2, Cin2, H2, W2), jnp.float32) * 0.05
    w2 = jax.random.normal(k5, (Cin2, Cout2, 4, 4), jnp.float32) * 0.05
    skip2 = jnp.zeros((N2, Cout2, 2 * H2, 2 * W2), jnp.float32)
    ref2 = jax.block_until_ready(unet_up_reference(x2, w2, skip2))
    out2 = jax.block_until_ready(
        unet_up_pallas(x2, w2, skip2, compute_dtype=jnp.float32, strip_rows=4))
    assert out2.shape == ref2.shape
    assert jnp.allclose(out2, ref2, rtol=5e-3, atol=5e-3), "tap-path mismatch vs reference"

    # ODEFunc-style dispatch glue (t batching + model call) smoke test.
    out_ode = jax.block_until_ready(
        ode_func_forward(lambda xb, tb, cond: unet_up_pallas(xb, w_pt, cond),
                         0.5, x, skip))
    assert out_ode.shape == ref.shape

    print("KERNEL_OK")
</pallas_src>

<mosaic_0001>
module attributes {stable_mosaic.version = 11 : i64} {
  func.func @kernel(%arg0: i32, %arg1: i32, %arg2: memref<1x18x18x4xf32, #tpu.memory_space<vmem>>, %arg3: memref<4x16x8xf32, #tpu.memory_space<vmem>>, %arg4: memref<1x8x2x16x16xf32, #tpu.memory_space<vmem>>, %arg5: memref<1x1x2x8xf32, #tpu.memory_space<vmem>>) attributes {dimension_semantics = [#tpu.dimension_semantics<parallel>, #tpu.dimension_semantics<parallel>], iteration_bounds = array<i64: 2, 2>, scalar_prefetch = 0 : i64, scratch_operands = 0 : i64, tpu.core_type = #tpu.core_type<tc>, window_params = [{transform_indices = @transform_0, window_bounds = array<i64: 1, 18, 18, 4>}, {pipeline_mode = #tpu.pipeline_mode<synchronous>, transform_indices = @transform_1, window_bounds = array<i64: 4, 16, 8>}, {transform_indices = @transform_2, window_bounds = array<i64: 1, 8, 2, 16, 16>}, {transform_indices = @transform_3, window_bounds = array<i64: 1, 1, 2, 8>}]} {
    %c8_i32 = arith.constant 8 : i32
    %0 = arith.muli %arg1, %c8_i32 : i32
    %1 = tpu.assume_multiple %0, 8 : i32
    %c1_i32 = arith.constant 1 : i32
    %2 = arith.addi %1, %c1_i32 : i32
    %c0 = arith.constant 0 : index
    %3 = arith.index_cast %2 : i32 to index
    %c1 = arith.constant 1 : index
    %c0_0 = arith.constant 0 : index
    %4 = vector.load %arg2[%c0, %3, %c1, %c0_0] : memref<1x18x18x4xf32, #tpu.memory_space<vmem>>, vector<1x8x16x4xf32>
    %5 = vector.shape_cast %4 : vector<1x8x16x4xf32> to vector<8x16x4xf32>
    %c1_i32_1 = arith.constant 1 : i32
    %6 = arith.addi %1, %c1_i32_1 : i32
    %c0_2 = arith.constant 0 : index
    %7 = arith.index_cast %6 : i32 to index
    %c0_3 = arith.constant 0 : index
    %c0_4 = arith.constant 0 : index
    %8 = vector.load %arg2[%c0_2, %7, %c0_3, %c0_4] : memref<1x18x18x4xf32, #tpu.memory_space<vmem>>, vector<1x8x16x4xf32>
    %9 = vector.shape_cast %8 : vector<1x8x16x4xf32> to vector<8x16x4xf32>
    %c0_i32 = arith.constant 0 : i32
    %10 = arith.addi %1, %c0_i32 : i32
    %c0_5 = arith.constant 0 : index
    %11 = arith.index_cast %10 : i32 to index
    %c1_6 = arith.constant 1 : index
    %c0_7 = arith.constant 0 : index
    %12 = vector.load %arg2[%c0_5, %11, %c1_6, %c0_7] : memref<1x18x18x4xf32, #tpu.memory_space<vmem>>, vector<1x8x16x4xf32>
    %13 = vector.shape_cast %12 : vector<1x8x16x4xf32> to vector<8x16x4xf32>
    %c0_i32_8 = arith.constant 0 : i32
    %14 = arith.addi %1, %c0_i32_8 : i32
    %c0_9 = arith.constant 0 : index
    %15 = arith.index_cast %14 : i32 to index
    %c0_10 = arith.constant 0 : index
    %c0_11 = arith.constant 0 : index
    %16 = vector.load %arg2[%c0_9, %15, %c0_10, %c0_11] : memref<1x18x18x4xf32, #tpu.memory_space<vmem>>, vector<1x8x16x4xf32>
    %17 = vector.shape_cast %16 : vector<1x8x16x4xf32> to vector<8x16x4xf32>
    %18 = tpu.concatenate %5, %9, %13, %17 in 2 : vector<8x16x4xf32>, vector<8x16x4xf32>, vector<8x16x4xf32>, vector<8x16x4xf32> -> vector<8x16x16xf32>
    %c0_12 = arith.constant 0 : index
    %c0_13 = arith.constant 0 : index
    %c0_14 = arith.constant 0 : index
    %19 = vector.load %arg3[%c0_12, %c0_13, %c0_14] : memref<4x16x8xf32, #tpu.memory_space<vmem>>, vector<1x16x8xf32>
    %20 = vector.shape_cast %19 : vector<1x16x8xf32> to vector<16x8xf32>
    "tpu.trace_start"() <{level = 10 : i32, message = "hwc,cd->hwd"}> : () -> ()
    %cst = arith.constant dense<0.000000e+00> : vector<8x16x8xf32>
    %21 = tpu.matmul %18, %20, %cst {dimension_numbers = #tpu.dot_dimension_numbers<[2], [0], [0, 1], [1], [0, 0, 0, 1, 1, 1], [], []>} : vector<8x16x16xf32>, vector<16x8xf32>, vector<8x16x8xf32> -> vector<8x16x8xf32>
    "tpu.trace_stop"() : () -> ()
    %cst_15 = arith.constant dense<0.000000e+00> : vector<8xf32>
    %22 = vector.multi_reduction <add>, %21, %cst_15 [0, 1] : vector<8x16x8xf32> to vector<8xf32>
    %23 = vector.shape_cast %22 : vector<8xf32> to vector<1x1x8xf32>
    %24 = arith.mulf %21, %21 : vector<8x16x8xf32>
    %cst_16 = arith.constant dense<0.000000e+00> : vector<8xf32>
    %25 = vector.multi_reduction <add>, %24, %cst_16 [0, 1] : vector<8x16x8xf32> to vector<8xf32>
    %26 = vector.shape_cast %25 : vector<8xf32> to vector<1x1x8xf32>
    %c0_17 = arith.constant 0 : index
    %c0_18 = arith.constant 0 : index
    %c0_19 = arith.constant 0 : index
    %c0_20 = arith.constant 0 : index
    %c0_21 = arith.constant 0 : index
    %27 = vector.load %arg4[%c0_17, %c0_18, %c0_19, %c0_20, %c0_21] : memref<1x8x2x16x16xf32, #tpu.memory_space<vmem>>, vector<1x8x1x16x8xf32>
    %28 = vector.shape_cast %27 : vector<1x8x1x16x8xf32> to vector<8x16x8xf32>
    %29 = vector.shape_cast %21 : vector<8x16x8xf32> to vector<1x8x1x16x8xf32>
    tpu.vector_store %arg4[%c0_17, %c0_18, %c0_19, %c0_20, %c0_21], %29 {strides = array<i32>} : memref<1x8x2x16x16xf32, #tpu.memory_space<vmem>>, vector<1x8x1x16x8xf32>,
    %c1_i32_22 = arith.constant 1 : i32
    %30 = arith.addi %1, %c1_i32_22 : i32
    %c0_23 = arith.constant 0 : index
    %31 = arith.index_cast %30 : i32 to index
    %c1_24 = arith.constant 1 : index
    %c0_25 = arith.constant 0 : index
    %32 = vector.load %arg2[%c0_23, %31, %c1_24, %c0_25] : memref<1x18x18x4xf32, #tpu.memory_space<vmem>>, vector<1x8x16x4xf32>
    %33 = vector.shape_cast %32 : vector<1x8x16x4xf32> to vector<8x16x4xf32>
    %c1_i32_26 = arith.constant 1 : i32
    %34 = arith.addi %1, %c1_i32_26 : i32
    %c0_27 = arith.constant 0 : index
    %35 = arith.index_cast %34 : i32 to index
    %c2 = arith.constant 2 : index
    %c0_28 = arith.constant 0 : index
    %36 = vector.load %arg2[%c0_27, %35, %c2, %c0_28] : memref<1x18x18x4xf32, #tpu.memory_space<vmem>>, vector<1x8x16x4xf32>
    %37 = vector.shape_cast %36 : vector<1x8x16x4xf32> to vector<8x16x4xf32>
    %c0_i32_29 = arith.constant 0 : i32
    %38 = arith.addi %1, %c0_i32_29 : i32
    %c0_30 = arith.constant 0 : index
    %39 = arith.index_cast %38 : i32 to index
    %c1_31 = arith.constant 1 : index
    %c0_32 = arith.constant 0 : index
    %40 = vector.load %arg2[%c0_30, %39, %c1_31, %c0_32] : memref<1x18x18x4xf32, #tpu.memory_space<vmem>>, vector<1x8x16x4xf32>
    %41 = vector.shape_cast %40 : vector<1x8x16x4xf32> to vector<8x16x4xf32>
    %c0_i32_33 = arith.constant 0 : i32
    %42 = arith.addi %1, %c0_i32_33 : i32
    %c0_34 = arith.constant 0 : index
    %43 = arith.index_cast %42 : i32 to index
    %c2_35 = arith.constant 2 : index
    %c0_36 = arith.constant 0 : index
    %44 = vector.load %arg2[%c0_34, %43, %c2_35, %c0_36] : memref<1x18x18x4xf32, #tpu.memory_space<vmem>>, vector<1x8x16x4xf32>
    %45 = vector.shape_cast %44 : vector<1x8x16x4xf32> to vector<8x16x4xf32>
    %46 = tpu.concatenate %33, %37, %41, %45 in 2 : vector<8x16x4xf32>, vector<8x16x4xf32>, vector<8x16x4xf32>, vector<8x16x4xf32> -> vector<8x16x16xf32>
    %c1_37 = arith.constant 1 : index
    %c0_38 = arith.constant 0 : index
    %c0_39 = arith.constant 0 : index
    %47 = vector.load %arg3[%c1_37, %c0_38, %c0_39] : memref<4x16x8xf32, #tpu.memory_space<vmem>>, vector<1x16x8xf32>
    %48 = vector.shape_cast %47 : vector<1x16x8xf32> to vector<16x8xf32>
    "tpu.trace_start"() <{level = 10 : i32, message = "hwc,cd->hwd"}> : () -> ()
    %cst_40 = arith.constant dense<0.000000e+00> : vector<8x16x8xf32>
    %49 = tpu.matmul %46, %48, %cst_40 {dimension_numbers = #tpu.dot_dimension_numbers<[2], [0], [0, 1], [1], [0, 0, 0, 1, 1, 1], [], []>} : vector<8x16x16xf32>, vector<16x8xf32>, vector<8x16x8xf32> -> vector<8x16x8xf32>
    "tpu.trace_stop"() : () -> ()
    %cst_41 = arith.constant dense<0.000000e+00> : vector<8xf32>
    %50 = vector.multi_reduction <add>, %49, %cst_41 [0, 1] : vector<8x16x8xf32> to vector<8xf32>
    %51 = vector.shape_cast %50 : vector<8xf32> to vector<1x1x8xf32>
    %52 = arith.mulf %49, %49 : vector<8x16x8xf32>
    %cst_42 = arith.constant dense<0.000000e+00> : vector<8xf32>
    %53 = vector.multi_reduction <add>, %52, %cst_42 [0, 1] : vector<8x16x8xf32> to vector<8xf32>
    %54 = vector.shape_cast %53 : vector<8xf32> to vector<1x1x8xf32>
    %55 = arith.addf %23, %51 : vector<1x1x8xf32>
    %56 = arith.addf %26, %54 : vector<1x1x8xf32>
    %c0_43 = arith.constant 0 : index
    %c0_44 = arith.constant 0 : index
    %c0_45 = arith.constant 0 : index
    %c0_46 = arith.constant 0 : index
    %c8 = arith.constant 8 : index
    %57 = vector.load %arg4[%c0_43, %c0_44, %c0_45, %c0_46, %c8] : memref<1x8x2x16x16xf32, #tpu.memory_space<vmem>>, vector<1x8x1x16x8xf32>
    %58 = vector.shape_cast %57 : vector<1x8x1x16x8xf32> to vector<8x16x8xf32>
    %59 = vector.shape_cast %49 : vector<8x16x8xf32> to vector<1x8x1x16x8xf32>
    tpu.vector_store %arg4[%c0_43, %c0_44, %c0_45, %c0_46, %c8], %59 {strides = array<i32>} : memref<1x8x2x16x16xf32, #tpu.memory_space<vmem>>, vector<1x8x1x16x8xf32>,
    %c1_i32_47 = arith.constant 1 : i32
    %60 = arith.addi %1, %c1_i32_47 : i32
    %c0_48 = arith.constant 0 : index
    %61 = arith.index_cast %60 : i32 to index
    %c1_49 = arith.constant 1 : index
    %c0_50 = arith.constant 0 : index
    %62 = vector.load %arg2[%c0_48, %61, %c1_49, %c0_50] : memref<1x18x18x4xf32, #tpu.memory_space<vmem>>, vector<1x8x16x4xf32>
    %63 = vector.shape_cast %62 : vector<1x8x16x4xf32> to vector<8x16x4xf32>
    %c1_i32_51 = arith.constant 1 : i32
    %64 = arith.addi %1, %c1_i32_51 : i32
    %c0_52 = arith.constant 0 : index
    %65 = arith.index_cast %64 : i32 to index
    %c0_53 = arith.constant 0 : index
    %c0_54 = arith.constant 0 : index
    %66 = vector.load %arg2[%c0_52, %65, %c0_53, %c0_54] : memref<1x18x18x4xf32, #tpu.memory_space<vmem>>, vector<1x8x16x4xf32>
    %67 = vector.shape_cast %66 : vector<1x8x16x4xf32> to vector<8x16x4xf32>
    %c2_i32 = arith.constant 2 : i32
    %68 = arith.addi %1, %c2_i32 : i32
    %c0_55 = arith.constant 0 : index
    %69 = arith.index_cast %68 : i32 to index
    %c1_56 = arith.constant 1 : index
    %c0_57 = arith.constant 0 : index
    %70 = vector.load %arg2[%c0_55, %69, %c1_56, %c0_57] : memref<1x18x18x4xf32, #tpu.memory_space<vmem>>, vector<1x8x16x4xf32>
    %71 = vector.shape_cast %70 : vector<1x8x16x4xf32> to vector<8x16x4xf32>
    %c2_i32_58 = arith.constant 2 : i32
    %72 = arith.addi %1, %c2_i32_58 : i32
    %c0_59 = arith.constant 0 : index
    %73 = arith.index_cast %72 : i32 to index
    %c0_60 = arith.constant 0 : index
    %c0_61 = arith.constant 0 : index
    %74 = vector.load %arg2[%c0_59, %73, %c0_60, %c0_61] : memref<1x18x18x4xf32, #tpu.memory_space<vmem>>, vector<1x8x16x4xf32>
    %75 = vector.shape_cast %74 : vector<1x8x16x4xf32> to vector<8x16x4xf32>
    %76 = tpu.concatenate %63, %67, %71, %75 in 2 : vector<8x16x4xf32>, vector<8x16x4xf32>, vector<8x16x4xf32>, vector<8x16x4xf32> -> vector<8x16x16xf32>
    %c2_62 = arith.constant 2 : index
    %c0_63 = arith.constant 0 : index
    %c0_64 = arith.constant 0 : index
    %77 = vector.load %arg3[%c2_62, %c0_63, %c0_64] : memref<4x16x8xf32, #tpu.memory_space<vmem>>, vector<1x16x8xf32>
    %78 = vector.shape_cast %77 : vector<1x16x8xf32> to vector<16x8xf32>
    "tpu.trace_start"() <{level = 10 : i32, message = "hwc,cd->hwd"}> : () -> ()
    %cst_65 = arith.constant dense<0.000000e+00> : vector<8x16x8xf32>
    %79 = tpu.matmul %76, %78, %cst_65 {dimension_numbers = #tpu.dot_dimension_numbers<[2], [0], [0, 1], [1], [0, 0, 0, 1, 1, 1], [], []>} : vector<8x16x16xf32>, vector<16x8xf32>, vector<8x16x8xf32> -> vector<8x16x8xf32>
    "tpu.trace_stop"() : () -> ()
    %cst_66 = arith.constant dense<0.000000e+00> : vector<8xf32>
    %80 = vector.multi_reduction <add>, %79, %cst_66 [0, 1] : vector<8x16x8xf32> to vector<8xf32>
    %81 = vector.shape_cast %80 : vector<8xf32> to vector<1x1x8xf32>
    %82 = arith.mulf %79, %79 : vector<8x16x8xf32>
    %cst_67 = arith.constant dense<0.000000e+00> : vector<8xf32>
    %83 = vector.multi_reduction <add>, %82, %cst_67 [0, 1] : vector<8x16x8xf32> to vector<8xf32>
    %84 = vector.shape_cast %83 : vector<8xf32> to vector<1x1x8xf32>
    %85 = arith.addf %55, %81 : vector<1x1x8xf32>
    %86 = arith.addf %56, %84 : vector<1x1x8xf32>
    %c0_68 = arith.constant 0 : index
    %c0_69 = arith.constant 0 : index
    %c1_70 = arith.constant 1 : index
    %c0_71 = arith.constant 0 : index
    %c0_72 = arith.constant 0 : index
    %87 = vector.load %arg4[%c0_68, %c0_69, %c1_70, %c0_71, %c0_72] : memref<1x8x2x16x16xf32, #tpu.memory_space<vmem>>, vector<1x8x1x16x8xf32>
    %88 = vector.shape_cast %87 : vector<1x8x1x16x8xf32> to vector<8x16x8xf32>
    %89 = vector.shape_cast %79 : vector<8x16x8xf32> to vector<1x8x1x16x8xf32>
    tpu.vector_store %arg4[%c0_68, %c0_69, %c1_70, %c0_71, %c0_72], %89 {strides = array<i32>} : memref<1x8x2x16x16xf32, #tpu.memory_space<vmem>>, vector<1x8x1x16x8xf32>,
    %c1_i32_73 = arith.constant 1 : i32
    %90 = arith.addi %1, %c1_i32_73 : i32
    %c0_74 = arith.constant 0 : index
    %91 = arith.index_cast %90 : i32 to index
    %c1_75 = arith.constant 1 : index
    %c0_76 = arith.constant 0 : index
    %92 = vector.load %arg2[%c0_74, %91, %c1_75, %c0_76] : memref<1x18x18x4xf32, #tpu.memory_space<vmem>>, vector<1x8x16x4xf32>
    %93 = vector.shape_cast %92 : vector<1x8x16x4xf32> to vector<8x16x4xf32>
    %c1_i32_77 = arith.constant 1 : i32
    %94 = arith.addi %1, %c1_i32_77 : i32
    %c0_78 = arith.constant 0 : index
    %95 = arith.index_cast %94 : i32 to index
    %c2_79 = arith.constant 2 : index
    %c0_80 = arith.constant 0 : index
    %96 = vector.load %arg2[%c0_78, %95, %c2_79, %c0_80] : memref<1x18x18x4xf32, #tpu.memory_space<vmem>>, vector<1x8x16x4xf32>
    %97 = vector.shape_cast %96 : vector<1x8x16x4xf32> to vector<8x16x4xf32>
    %c2_i32_81 = arith.constant 2 : i32
    %98 = arith.addi %1, %c2_i32_81 : i32
    %c0_82 = arith.constant 0 : index
    %99 = arith.index_cast %98 : i32 to index
    %c1_83 = arith.constant 1 : index
    %c0_84 = arith.constant 0 : index
    %100 = vector.load %arg2[%c0_82, %99, %c1_83, %c0_84] : memref<1x18x18x4xf32, #tpu.memory_space<vmem>>, vector<1x8x16x4xf32>
    %101 = vector.shape_cast %100 : vector<1x8x16x4xf32> to vector<8x16x4xf32>
    %c2_i32_85 = arith.constant 2 : i32
    %102 = arith.addi %1, %c2_i32_85 : i32
    %c0_86 = arith.constant 0 : index
    %103 = arith.index_cast %102 : i32 to index
    %c2_87 = arith.constant 2 : index
    %c0_88 = arith.constant 0 : index
    %104 = vector.load %arg2[%c0_86, %103, %c2_87, %c0_88] : memref<1x18x18x4xf32, #tpu.memory_space<vmem>>, vector<1x8x16x4xf32>
    %105 = vector.shape_cast %104 : vector<1x8x16x4xf32> to vector<8x16x4xf32>
    %106 = tpu.concatenate %93, %97, %101, %105 in 2 : vector<8x16x4xf32>, vector<8x16x4xf32>, vector<8x16x4xf32>, vector<8x16x4xf32> -> vector<8x16x16xf32>
    %c3 = arith.constant 3 : index
    %c0_89 = arith.constant 0 : index
    %c0_90 = arith.constant 0 : index
    %107 = vector.load %arg3[%c3, %c0_89, %c0_90] : memref<4x16x8xf32, #tpu.memory_space<vmem>>, vector<1x16x8xf32>
    %108 = vector.shape_cast %107 : vector<1x16x8xf32> to vector<16x8xf32>
    "tpu.trace_start"() <{level = 10 : i32, message = "hwc,cd->hwd"}> : () -> ()
    %cst_91 = arith.constant dense<0.000000e+00> : vector<8x16x8xf32>
    %109 = tpu.matmul %106, %108, %cst_91 {dimension_numbers = #tpu.dot_dimension_numbers<[2], [0], [0, 1], [1], [0, 0, 0, 1, 1, 1], [], []>} : vector<8x16x16xf32>, vector<16x8xf32>, vector<8x16x8xf32> -> vector<8x16x8xf32>
    "tpu.trace_stop"() : () -> ()
    %cst_92 = arith.constant dense<0.000000e+00> : vector<8xf32>
    %110 = vector.multi_reduction <add>, %109, %cst_92 [0, 1] : vector<8x16x8xf32> to vector<8xf32>
    %111 = vector.shape_cast %110 : vector<8xf32> to vector<1x1x8xf32>
    %112 = arith.mulf %109, %109 : vector<8x16x8xf32>
    %cst_93 = arith.constant dense<0.000000e+00> : vector<8xf32>
    %113 = vector.multi_reduction <add>, %112, %cst_93 [0, 1] : vector<8x16x8xf32> to vector<8xf32>
    %114 = vector.shape_cast %113 : vector<8xf32> to vector<1x1x8xf32>
    %115 = arith.addf %85, %111 : vector<1x1x8xf32>
    %116 = arith.addf %86, %114 : vector<1x1x8xf32>
    %c0_94 = arith.constant 0 : index
    %c0_95 = arith.constant 0 : index
    %c1_96 = arith.constant 1 : index
    %c0_97 = arith.constant 0 : index
    %c8_98 = arith.constant 8 : index
    %117 = vector.load %arg4[%c0_94, %c0_95, %c1_96, %c0_97, %c8_98] : memref<1x8x2x16x16xf32, #tpu.memory_space<vmem>>, vector<1x8x1x16x8xf32>
    %118 = vector.shape_cast %117 : vector<1x8x1x16x8xf32> to vector<8x16x8xf32>
    %119 = vector.shape_cast %109 : vector<8x16x8xf32> to vector<1x8x1x16x8xf32>
    tpu.vector_store %arg4[%c0_94, %c0_95, %c1_96, %c0_97, %c8_98], %119 {strides = array<i32>} : memref<1x8x2x16x16xf32, #tpu.memory_space<vmem>>, vector<1x8x1x16x8xf32>,
    %120 = vector.shape_cast %115 : vector<1x1x8xf32> to vector<1x8xf32>
    %c0_99 = arith.constant 0 : index
    %c0_100 = arith.constant 0 : index
    %c0_101 = arith.constant 0 : index
    %c0_102 = arith.constant 0 : index
    %121 = vector.load %arg5[%c0_99, %c0_100, %c0_101, %c0_102] : memref<1x1x2x8xf32, #tpu.memory_space<vmem>>, vector<1x1x1x8xf32>
    %122 = vector.shape_cast %121 : vector<1x1x1x8xf32> to vector<1x8xf32>
    %123 = vector.shape_cast %120 : vector<1x8xf32> to vector<1x1x1x8xf32>
    tpu.vector_store %arg5[%c0_99, %c0_100, %c0_101, %c0_102], %123 {strides = array<i32>} : memref<1x1x2x8xf32, #tpu.memory_space<vmem>>, vector<1x1x1x8xf32>,
    %124 = vector.shape_cast %116 : vector<1x1x8xf32> to vector<1x8xf32>
    %c0_103 = arith.constant 0 : index
    %c0_104 = arith.constant 0 : index
    %c1_105 = arith.constant 1 : index
    %c0_106 = arith.constant 0 : index
    %125 = vector.load %arg5[%c0_103, %c0_104, %c1_105, %c0_106] : memref<1x1x2x8xf32, #tpu.memory_space<vmem>>, vector<1x1x1x8xf32>
    %126 = vector.shape_cast %125 : vector<1x1x1x8xf32> to vector<1x8xf32>
    %127 = vector.shape_cast %124 : vector<1x8xf32> to vector<1x1x1x8xf32>
    tpu.vector_store %arg5[%c0_103, %c0_104, %c1_105, %c0_106], %127 {strides = array<i32>} : memref<1x1x2x8xf32, #tpu.memory_space<vmem>>, vector<1x1x1x8xf32>,
    return
  }
  func.func @transform_0(%arg0: i32, %arg1: i32) -> (i32, i32, i32, i32) {
    %c0_i32 = arith.constant 0 : i32
    %c0_i32_0 = arith.constant 0 : i32
    %c0_i32_1 = arith.constant 0 : i32
    %c0_i32_2 = arith.constant 0 : i32
    return %arg0, %c0_i32, %c0_i32_0, %c0_i32_1 : i32, i32, i32, i32
  }
  func.func @transform_1(%arg0: i32, %arg1: i32) -> (i32, i32, i32) {
    %c0_i32 = arith.constant 0 : i32
    %c0_i32_0 = arith.constant 0 : i32
    %c0_i32_1 = arith.constant 0 : i32
    %c0_i32_2 = arith.constant 0 : i32
    return %c0_i32, %c0_i32_0, %c0_i32_1 : i32, i32, i32
  }
  func.func @transform_2(%arg0: i32, %arg1: i32) -> (i32, i32, i32, i32, i32) {
    %c0_i32 = arith.constant 0 : i32
    %c0_i32_0 = arith.constant 0 : i32
    %c0_i32_1 = arith.constant 0 : i32
    %c0_i32_2 = arith.constant 0 : i32
    return %arg0, %arg1, %c0_i32, %c0_i32_0, %c0_i32_1 : i32, i32, i32, i32, i32
  }
  func.func @transform_3(%arg0: i32, %arg1: i32) -> (i32, i32, i32, i32) {
    %c0_i32 = arith.constant 0 : i32
    %c0_i32_0 = arith.constant 0 : i32
    %c0_i32_1 = arith.constant 0 : i32
    return %arg0, %arg1, %c0_i32, %c0_i32_0 : i32, i32, i32, i32
  }
}

module attributes {stable_mosaic.version = 11 : i64} {
  func.func @_norm_relu_kernel(%arg0: i32, %arg1: i32, %arg2: memref<1x8x2x16x16xf32, #tpu.memory_space<vmem>>, %arg3: memref<1x1x16xf32, #tpu.memory_space<vmem>>, %arg4: memref<1x1x16xf32, #tpu.memory_space<vmem>>, %arg5: memref<1x8x2x16x16xf32, #tpu.memory_space<vmem>>) attributes {dimension_semantics = [#tpu.dimension_semantics<parallel>, #tpu.dimension_semantics<parallel>], iteration_bounds = array<i64: 2, 2>, scalar_prefetch = 0 : i64, scratch_operands = 0 : i64, tpu.core_type = #tpu.core_type<tc>, window_params = [{transform_indices = @transform_0, window_bounds = array<i64: 1, 8, 2, 16, 16>}, {transform_indices = @transform_1, window_bounds = array<i64: 1, 1, 16>}, {transform_indices = @transform_2, window_bounds = array<i64: 1, 1, 16>}, {transform_indices = @transform_3, window_bounds = array<i64: 1, 8, 2, 16, 16>}]} {
    %c0 = arith.constant 0 : index
    %c0_0 = arith.constant 0 : index
    %c0_1 = arith.constant 0 : index
    %c0_2 = arith.constant 0 : index
    %c0_3 = arith.constant 0 : index
    %0 = vector.load %arg2[%c0, %c0_0, %c0_1, %c0_2, %c0_3] : memref<1x8x2x16x16xf32, #tpu.memory_space<vmem>>, vector<1x8x2x16x16xf32>
    %1 = vector.shape_cast %0 : vector<1x8x2x16x16xf32> to vector<8x2x16x16xf32>
    %c0_4 = arith.constant 0 : index
    %c0_5 = arith.constant 0 : index
    %c0_6 = arith.constant 0 : index
    %2 = vector.load %arg3[%c0_4, %c0_5, %c0_6] : memref<1x1x16xf32, #tpu.memory_space<vmem>>, vector<1x1x16xf32>
    %3 = vector.shape_cast %2 : vector<1x1x16xf32> to vector<1x16xf32>
    %c0_7 = arith.constant 0 : index
    %c0_8 = arith.constant 0 : index
    %c0_9 = arith.constant 0 : index
    %4 = vector.load %arg4[%c0_7, %c0_8, %c0_9] : memref<1x1x16xf32, #tpu.memory_space<vmem>>, vector<1x1x16xf32>
    %5 = vector.shape_cast %4 : vector<1x1x16xf32> to vector<1x16xf32>
    %6 = vector.shape_cast %3 : vector<1x16xf32> to vector<1x1x1x16xf32>
    %7 = vector.broadcast %6 : vector<1x1x1x16xf32> to vector<8x2x16x16xf32>
    %8 = arith.mulf %1, %7 : vector<8x2x16x16xf32>
    %9 = vector.shape_cast %5 : vector<1x16xf32> to vector<1x1x1x16xf32>
    %10 = vector.broadcast %9 : vector<1x1x1x16xf32> to vector<8x2x16x16xf32>
    %11 = arith.subf %8, %10 : vector<8x2x16x16xf32>
    %cst = arith.constant 0.000000e+00 : f32
    %12 = vector.broadcast %cst : f32 to vector<8x2x16x16xf32>
    %13 = arith.maximumf %11, %12 : vector<8x2x16x16xf32>
    %c0_10 = arith.constant 0 : index
    %c0_11 = arith.constant 0 : index
    %c0_12 = arith.constant 0 : index
    %c0_13 = arith.constant 0 : index
    %c0_14 = arith.constant 0 : index
    %14 = vector.load %arg5[%c0_10, %c0_11, %c0_12, %c0_13, %c0_14] : memref<1x8x2x16x16xf32, #tpu.memory_space<vmem>>, vector<1x8x2x16x16xf32>
    %15 = vector.shape_cast %14 : vector<1x8x2x16x16xf32> to vector<8x2x16x16xf32>
    %16 = vector.shape_cast %13 : vector<8x2x16x16xf32> to vector<1x8x2x16x16xf32>
    tpu.vector_store %arg5[%c0_10, %c0_11, %c0_12, %c0_13, %c0_14], %16 {strides = array<i32>} : memref<1x8x2x16x16xf32, #tpu.memory_space<vmem>>, vector<1x8x2x16x16xf32>,
    return
  }
  func.func @transform_0(%arg0: i32, %arg1: i32) -> (i32, i32, i32, i32, i32) {
    %c0_i32 = arith.constant 0 : i32
    %c0_i32_0 = arith.constant 0 : i32
    %c0_i32_1 = arith.constant 0 : i32
    %c0_i32_2 = arith.constant 0 : i32
    return %arg0, %arg1, %c0_i32, %c0_i32_0, %c0_i32_1 : i32, i32, i32, i32, i32
  }
  func.func @transform_1(%arg0: i32, %arg1: i32) -> (i32, i32, i32) {
    %c0_i32 = arith.constant 0 : i32
    %c0_i32_0 = arith.constant 0 : i32
    %c0_i32_1 = arith.constant 0 : i32
    return %arg0, %c0_i32, %c0_i32_0 : i32, i32, i32
  }
  func.func @transform_2(%arg0: i32, %arg1: i32) -> (i32, i32, i32) {
    %c0_i32 = arith.constant 0 : i32
    %c0_i32_0 = arith.constant 0 : i32
    %c0_i32_1 = arith.constant 0 : i32
    return %arg0, %c0_i32, %c0_i32_0 : i32, i32, i32
  }
  func.func @transform_3(%arg0: i32, %arg1: i32) -> (i32, i32, i32, i32, i32) {
    %c0_i32 = arith.constant 0 : i32
    %c0_i32_0 = arith.constant 0 : i32
    %c0_i32_1 = arith.constant 0 : i32
    %c0_i32_2 = arith.constant 0 : i32
    return %arg0, %arg1, %c0_i32, %c0_i32_0, %c0_i32_1 : i32, i32, i32, i32, i32
  }
}

</mosaic_0001>

<bundles_post_ra>
// kernel: unet_up_pallas.3
= control target key start
LH: loop header
LB: loop body
LE: loop exit
PB: predicated region body
PF: predicated region fallthrough
CT: control target
= control target key end

     0   :  { %s652_s12 = smov 0   ;;  %s654_s13 = smov 0   ;;  %s877_s0 = inlined_call_operand.vmem [shape: f32[2,16,2,16,16], index: 0, kind: input, shape index: {}]   ;;  %s878_s1 = inlined_call_operand.vmem [shape: f32[2,1,16], index: 1, kind: input, shape index: {}]   ;;  %s879_s2 = inlined_call_operand.vmem [shape: f32[2,1,16], index: 2, kind: input, shape index: {}]   ;;  %s880_s3 = inlined_call_operand.vmem [shape: f32[2,16,2,16,16], index: 3, kind: output, shape index: {}]  }
   0x1   :  { %s656_s14 = smov 0   ;;  %s658_s15 = smov 0  }
   0x2   :  { %s660_s16 = smov 0  }
   0x3 LB: > { %s22_s17 = sadd.s32 1, %s622_s14  ;;  %s25_s18 = sadd.s32 1, %s626_s15  ;;  %s630_s16 = sphi %s660_s16, %s13_s16   ;;  %s626_s15 = sphi %s658_s15, %s884_s15   ;;  %s622_s14 = sphi %s656_s14, %s883_s14   ;;  %s618_s13 = sphi %s654_s13, %s882_s13   ;;  %s614_s12 = sphi %s652_s12, %s881_s12  }
   0x4   : > { %p23_p0 = scmp.ge.s32.totalorder %s22_s17, 2  ;;  %p539_p1 = scmp.ge.s32.totalorder %s630_s16, 1 }
   0x5   : > { %p175_p2 = scmp.lt.s32.totalorder %s630_s16, 5 }
   0x6   : > { %s886_s17 = smov (%p23_p0, %s22_s17), 0  ;;  %s888_s18 = smov (!%p23_p0, %s25_s18), %s626_s15 }
   0x7   : > { %p176_p3 = pnand %p539_p1, %p175_p2  ;;  %p27_p4 = scmp.ge.s32.totalorder %s888_s18, 2 }
   0x8   : > { %s540_s19 = sshll.u32 (!%p176_p3), %s614_s12, 3  ;;  %p216_p5 = scmp.lt.s32.totalorder (!%p176_p3), %s618_s13, 1 }
   0x9   : > { %s890_s18 = smov (%p27_p4, %s888_s18), 0  ;;  %179 = sbr.rel (%p176_p3) target bundleno = 50 (0x32), region = 32 }
   0xa   : > { %p218_p6 = scmp.lt.s32.totalorder (!%p176_p3), %s540_s19, 15 }
   0xe   : > { %s892_s13 = smov (!%p216_p5, %s618_s13), 1  ;;  %s894_s19 = smov (!%p218_p6, %s540_s19), 15  ;;  %vm385_vm0 = vcmask 130048  }
   0xf   : > { %s542_s20 = sshll.u32 %s892_s13, 6  ;;  %s228_s23 = scalar_lea.vmem %s878_s1, %s892_s13 }
  0x10   : > { %s541_s24 = sshll.u32 %s894_s19, 2  ;;  %s231_s27 = scalar_lea.vmem %s879_s2, %s892_s13  ;;  %v688_v0 = vld [vmem:[%s228_s23] ss:$0 sm:$0xff] }
  0x11   : > { %s222_s28 = sadd.s32 %s542_s20, %s541_s24  ;;  %v695_v1 = vld [vmem:[%s231_s27] ss:$0 sm:$0xff] }
  0x12   : > { %s543_s29 = sshll.u32 %s222_s28, 3 }
  0x13   : > { %s693_s5 = scalar_lea.vmem %s877_s0, %s543_s29  ;;  %s718_s8 = scalar_lea.vmem %s880_s3, %s543_s29 }
  0x14   : > { %v243_v2 = vld [vmem:[%s693_s5] sm:$0xff]  ;;  %v244_v3 = vld [vmem:[%s693_s5 + $0x8] sm:$0xff]  ;;  %v245_v4 = vld [vmem:[%s693_s5 + $0x10] sm:$0xff] }
  0x15   : > { %v283_v5 = vmul.f32 %v688_v0, %v243_v2  ;;  %v284_v6 = vmul.f32 %v688_v0, %v244_v3  ;;  %v285_v7 = vmul.f32 %v688_v0, %v245_v4  ;;  %v246_v8 = vld [vmem:[%s693_s5 + $0x18] sm:$0xff]  ;;  %v247_v9 = vld [vmem:[%s693_s5 + $0x20] sm:$0xff]  ;;  %v248_v10 = vld [vmem:[%s693_s5 + $0x28] sm:$0xff] }
  0x16   : > { %v286_v11 = vmul.f32 %v688_v0, %v246_v8  ;;  %v287_v12 = vmul.f32 %v688_v0, %v247_v9  ;;  %v288_v13 = vmul.f32 %v688_v0, %v248_v10  ;;  %v249_v14 = vld [vmem:[%s693_s5 + $0x30] sm:$0xff]  ;;  %v250_v15 = vld [vmem:[%s693_s5 + $0x38] sm:$0xff]  ;;  %v251_v24 = vld [vmem:[%s693_s5 + $0x40] sm:$0xff] }
  0x17   : > { %v321_v16 = vsub.f32 %v283_v5, %v695_v1  ;;  %v322_v17 = vsub.f32 %v284_v6, %v695_v1  ;;  %v323_v18 = vsub.f32 %v285_v7, %v695_v1  ;;  %v289_v19 = vmul.f32 %v688_v0, %v249_v14  ;;  %v252_v25 = vld [vmem:[%s693_s5 + $0x48] sm:$0xff]  ;;  %v253_v26 = vld [vmem:[%s693_s5 + $0x50] sm:$0xff]  ;;  %v254_v31 = vld [vmem:[%s693_s5 + $0x58] sm:$0xff] }
  0x18   : > { %v324_v20 = vsub.f32 %v286_v11, %v695_v1  ;;  %v325_v21 = vsub.f32 %v287_v12, %v695_v1  ;;  %v326_v22 = vsub.f32 %v288_v13, %v695_v1  ;;  %v290_v23 = vmul.f32 %v688_v0, %v250_v15  ;;  %v255_v32 = vld [vmem:[%s693_s5 + $0x60] sm:$0xff]  ;;  %v256_v33 = vld [vmem:[%s693_s5 + $0x68] sm:$0xff]  ;;  %v257_v38 = vld [vmem:[%s693_s5 + $0x70] sm:$0xff] }
  0x19   : > { %v353_v27 = vmax.f32 %v321_v16, 0.0  ;;  %v354_v28 = vmax.f32 %v322_v17, 0.0  ;;  %v355_v29 = vmax.f32 %v323_v18, 0.0  ;;  %v327_v30 = vsub.f32 %v289_v19, %v695_v1  ;;  %v258_v43 = vld [vmem:[%s693_s5 + $0x78] sm:$0xff]  ;;  %v259_v56 = vld [vmem:[%s693_s5 + $0x80] sm:$0xff]  ;;  %v260_v57 = vld [vmem:[%s693_s5 + $0x88] sm:$0xff] }
  0x1a   : > { %v356_v34 = vmax.f32 %v324_v20, 0.0  ;;  %v357_v35 = vmax.f32 %v325_v21, 0.0  ;;  %v358_v36 = vmax.f32 %v326_v22, 0.0  ;;  %v328_v37 = vsub.f32 %v290_v23, %v695_v1  ;;  %v261_v58 = vld [vmem:[%s693_s5 + $0x90] sm:$0xff]  ;;  %v262_v63 = vld [vmem:[%s693_s5 + $0x98] sm:$0xff]  ;;  %v263_v2 = vld [vmem:[%s693_s5 + $0xa0] sm:$0xff] }
  0x1b   : > { %386 = vst.msk [vmem:[%s718_s8] sm:$0xff] %vm385_vm0, %v353_v27  ;;  %387 = vst.msk [vmem:[%s718_s8 + $0x8] sm:$0xff] %vm385_vm0, %v354_v28  ;;  %v359_v39 = vmax.f32 %v327_v30, 0.0  ;;  %v291_v40 = vmul.f32 %v688_v0, %v251_v24  ;;  %v292_v41 = vmul.f32 %v688_v0, %v252_v25  ;;  %v293_v42 = vmul.f32 %v688_v0, %v253_v26  ;;  %v264_v3 = vld [vmem:[%s693_s5 + $0xa8] sm:$0xff]  ;;  %v265_v8 = vld [vmem:[%s693_s5 + $0xb0] sm:$0xff] }
  0x1c   : > { %388 = vst.msk [vmem:[%s718_s8 + $0x10] sm:$0xff] %vm385_vm0, %v355_v29  ;;  %389 = vst.msk [vmem:[%s718_s8 + $0x18] sm:$0xff] %vm385_vm0, %v356_v34  ;;  %v360_v44 = vmax.f32 %v328_v37, 0.0  ;;  %v294_v45 = vmul.f32 %v688_v0, %v254_v31  ;;  %v295_v46 = vmul.f32 %v688_v0, %v255_v32  ;;  %v296_v47 = vmul.f32 %v688_v0, %v256_v33  ;;  %v266_v13 = vld [vmem:[%s693_s5 + $0xb8] sm:$0xff]  ;;  %v267_v26 = vld [vmem:[%s693_s5 + $0xc0] sm:$0xff] }
  0x1d   : > { %390 = vst.msk [vmem:[%s718_s8 + $0x20] sm:$0xff] %vm385_vm0, %v357_v35  ;;  %391 = vst.msk [vmem:[%s718_s8 + $0x28] sm:$0xff] %vm385_vm0, %v358_v36  ;;  %v329_v48 = vsub.f32 %v291_v40, %v695_v1  ;;  %v330_v49 = vsub.f32 %v292_v41, %v695_v1  ;;  %v331_v50 = vsub.f32 %v293_v42, %v695_v1  ;;  %v268_v27 = vld [vmem:[%s693_s5 + $0xc8] sm:$0xff]  ;;  %v269_v28 = vld [vmem:[%s693_s5 + $0xd0] sm:$0xff] }
  0x1e   : > { %392 = vst.msk [vmem:[%s718_s8 + $0x30] sm:$0xff] %vm385_vm0, %v359_v39  ;;  %v297_v51 = vmul.f32 %v688_v0, %v257_v38  ;;  %393 = vst.msk [vmem:[%s718_s8 + $0x38] sm:$0xff] %vm385_vm0, %v360_v44  ;;  %v332_v52 = vsub.f32 %v294_v45, %v695_v1  ;;  %v333_v53 = vsub.f32 %v295_v46, %v695_v1  ;;  %v270_v33 = vld [vmem:[%s693_s5 + $0xd8] sm:$0xff]  ;;  %v271_v34 = vld [vmem:[%s693_s5 + $0xe0] sm:$0xff] }
  0x1f   : > { %v334_v54 = vsub.f32 %v296_v47, %v695_v1  ;;  %v298_v55 = vmul.f32 %v688_v0, %v258_v43  ;;  %v361_v59 = vmax.f32 %v329_v48, 0.0  ;;  %v362_v60 = vmax.f32 %v330_v49, 0.0  ;;  %v272_v35 = vld [vmem:[%s693_s5 + $0xe8] sm:$0xff]  ;;  %v273_v40 = vld [vmem:[%s693_s5 + $0xf0] sm:$0xff]  ;;  %v274_v45 = vld [vmem:[%s693_s5 + $0xf8] sm:$0xff] }
  0x20   : > { %v363_v61 = vmax.f32 %v331_v50, 0.0  ;;  %v335_v62 = vsub.f32 %v297_v51, %v695_v1  ;;  %v364_v4 = vmax.f32 %v332_v52, 0.0  ;;  %v365_v5 = vmax.f32 %v333_v53, 0.0 }
  0x21   : > { %v366_v6 = vmax.f32 %v334_v54, 0.0  ;;  %v336_v7 = vsub.f32 %v298_v55, %v695_v1  ;;  %394 = vst.msk [vmem:[%s718_s8 + $0x40] sm:$0xff] %vm385_vm0, %v361_v59  ;;  %395 = vst.msk [vmem:[%s718_s8 + $0x48] sm:$0xff] %vm385_vm0, %v362_v60  ;;  %v299_v10 = vmul.f32 %v688_v0, %v259_v56  ;;  %v300_v11 = vmul.f32 %v688_v0, %v260_v57 }
  0x22   : > { %396 = vst.msk [vmem:[%s718_s8 + $0x50] sm:$0xff] %vm385_vm0, %v363_v61  ;;  %v367_v9 = vmax.f32 %v335_v62, 0.0  ;;  %v301_v12 = vmul.f32 %v688_v0, %v261_v58  ;;  %397 = vst.msk [vmem:[%s718_s8 + $0x58] sm:$0xff] %vm385_vm0, %v364_v4  ;;  %v302_v15 = vmul.f32 %v688_v0, %v262_v63  ;;  %v303_v16 = vmul.f32 %v688_v0, %v263_v2 }
  0x23   : > { %398 = vst.msk [vmem:[%s718_s8 + $0x60] sm:$0xff] %vm385_vm0, %v365_v5  ;;  %399 = vst.msk [vmem:[%s718_s8 + $0x68] sm:$0xff] %vm385_vm0, %v366_v6  ;;  %v368_v14 = vmax.f32 %v336_v7, 0.0  ;;  %v304_v17 = vmul.f32 %v688_v0, %v264_v3  ;;  %v337_v18 = vsub.f32 %v299_v10, %v695_v1  ;;  %v338_v19 = vsub.f32 %v300_v11, %v695_v1 }
  0x24   : > { %400 = vst.msk [vmem:[%s718_s8 + $0x70] sm:$0xff] %vm385_vm0, %v367_v9  ;;  %v339_v20 = vsub.f32 %v301_v12, %v695_v1  ;;  %v305_v21 = vmul.f32 %v688_v0, %v265_v8  ;;  %v340_v22 = vsub.f32 %v302_v15, %v695_v1  ;;  %v341_v23 = vsub.f32 %v303_v16, %v695_v1 }
  0x25   : > { %401 = vst.msk [vmem:[%s718_s8 + $0x78] sm:$0xff] %vm385_vm0, %v368_v14  ;;  %v342_v24 = vsub.f32 %v304_v17, %v695_v1  ;;  %v306_v25 = vmul.f32 %v688_v0, %v266_v13  ;;  %v369_v29 = vmax.f32 %v337_v18, 0.0  ;;  %v370_v30 = vmax.f32 %v338_v19, 0.0 }
  0x26   : > { %v371_v31 = vmax.f32 %v339_v20, 0.0  ;;  %v343_v32 = vsub.f32 %v305_v21, %v695_v1  ;;  %v372_v36 = vmax.f32 %v340_v22, 0.0  ;;  %v373_v37 = vmax.f32 %v341_v23, 0.0 }
  0x27   : > { %v374_v38 = vmax.f32 %v342_v24, 0.0  ;;  %v344_v39 = vsub.f32 %v306_v25, %v695_v1  ;;  %402 = vst.msk [vmem:[%s718_s8 + $0x80] sm:$0xff] %vm385_vm0, %v369_v29  ;;  %403 = vst.msk [vmem:[%s718_s8 + $0x88] sm:$0xff] %vm385_vm0, %v370_v30  ;;  %v307_v42 = vmul.f32 %v688_v0, %v267_v26  ;;  %v308_v43 = vmul.f32 %v688_v0, %v268_v27 }
  0x28   : > { %404 = vst.msk [vmem:[%s718_s8 + $0x90] sm:$0xff] %vm385_vm0, %v371_v31  ;;  %v375_v41 = vmax.f32 %v343_v32, 0.0  ;;  %v309_v44 = vmul.f32 %v688_v0, %v269_v28  ;;  %405 = vst.msk [vmem:[%s718_s8 + $0x98] sm:$0xff] %vm385_vm0, %v372_v36  ;;  %v310_v47 = vmul.f32 %v688_v0, %v270_v33  ;;  %v311_v48 = vmul.f32 %v688_v0, %v271_v34 }
  0x29   : > { %406 = vst.msk [vmem:[%s718_s8 + $0xa0] sm:$0xff] %vm385_vm0, %v373_v37  ;;  %407 = vst.msk [vmem:[%s718_s8 + $0xa8] sm:$0xff] %vm385_vm0, %v374_v38  ;;  %v376_v46 = vmax.f32 %v344_v39, 0.0  ;;  %v312_v49 = vmul.f32 %v688_v0, %v272_v35  ;;  %v345_v50 = vsub.f32 %v307_v42, %v695_v1  ;;  %v346_v51 = vsub.f32 %v308_v43, %v695_v1 }
  0x2a   : > { %408 = vst.msk [vmem:[%s718_s8 + $0xb0] sm:$0xff] %vm385_vm0, %v375_v41  ;;  %v347_v52 = vsub.f32 %v309_v44, %v695_v1  ;;  %v313_v53 = vmul.f32 %v688_v0, %v273_v40  ;;  %v348_v54 = vsub.f32 %v310_v47, %v695_v1  ;;  %v349_v55 = vsub.f32 %v311_v48, %v695_v1 }
  0x2b   : > { %409 = vst.msk [vmem:[%s718_s8 + $0xb8] sm:$0xff] %vm385_vm0, %v376_v46  ;;  %v350_v56 = vsub.f32 %v312_v49, %v695_v1  ;;  %v314_v57 = vmul.f32 %v688_v0, %v274_v45  ;;  %v377_v58 = vmax.f32 %v345_v50, 0.0  ;;  %v378_v59 = vmax.f32 %v346_v51, 0.0 }
  0x2c   : > { %v379_v60 = vmax.f32 %v347_v52, 0.0  ;;  %v351_v61 = vsub.f32 %v313_v53, %v695_v1  ;;  %v380_v62 = vmax.f32 %v348_v54, 0.0  ;;  %v381_v63 = vmax.f32 %v349_v55, 0.0 }
  0x2d   : > { %v382_v2 = vmax.f32 %v350_v56, 0.0  ;;  %v352_v3 = vsub.f32 %v314_v57, %v695_v1  ;;  %410 = vst.msk [vmem:[%s718_s8 + $0xc0] sm:$0xff] %vm385_vm0, %v377_v58  ;;  %411 = vst.msk [vmem:[%s718_s8 + $0xc8] sm:$0xff] %vm385_vm0, %v378_v59 }
  0x2e   : > { %412 = vst.msk [vmem:[%s718_s8 + $0xd0] sm:$0xff] %vm385_vm0, %v379_v60  ;;  %v383_v4 = vmax.f32 %v351_v61, 0.0  ;;  %413 = vst.msk [vmem:[%s718_s8 + $0xd8] sm:$0xff] %vm385_vm0, %v380_v62 }
  0x2f   : > { %414 = vst.msk [vmem:[%s718_s8 + $0xe0] sm:$0xff] %vm385_vm0, %v381_v63  ;;  %415 = vst.msk [vmem:[%s718_s8 + $0xe8] sm:$0xff] %vm385_vm0, %v382_v2  ;;  %v384_v0 = vmax.f32 %v352_v3, 0.0 }
  0x30   : > { %416 = vst.msk [vmem:[%s718_s8 + $0xf0] sm:$0xff] %vm385_vm0, %v383_v4 }
  0x31   : > { %417 = vst.msk [vmem:[%s718_s8 + $0xf8] sm:$0xff] %vm385_vm0, %v384_v0 }
  0x32 PF: > { %s13_s16 = sadd.s32 1, %s630_s16   ;;  %s881_s12 = smov %s622_s14 }
  0x33   : > { %p10_p7 = scmp.ge.s32.totalorder %s13_s16, 6   ;;  %s882_s13 = smov %s626_s15 }
  0x34   : > { %s883_s14 = smov %s886_s17  ;;  %s884_s15 = smov %s890_s18 }
  0x35   :  { %12 = sbr.rel (!%p10_p7) target bundleno = 3 (0x3), region = 68 }

// kernel: unet_up_pallas.2
= control target key start
LH: loop header
LB: loop body
LE: loop exit
PB: predicated region body
PF: predicated region fallthrough
CT: control target
= control target key end

     0   :  { %s3548_s12 = smov 0   ;;  %s3550_s13 = smov 0   ;;  %s4913_s0 = inlined_call_operand.vmem [shape: f32[2,18,18,4], index: 0, kind: input, shape index: {}]   ;;  %s4914_s1 = inlined_call_operand.vmem [shape: f32[4,16,8], index: 1, kind: input, shape index: {}]   ;;  %s4915_s2 = inlined_call_operand.vmem [shape: f32[2,16,2,16,16], index: 2, kind: output, shape index: {0}]   ;;  %s4916_s3 = inlined_call_operand.vmem [shape: f32[2,2,2,8], index: 3, kind: output, shape index: {1}]  }
   0x1   :  { %s3552_s14 = smov 0   ;;  %s3554_s15 = smov 0  }
   0x2   :  { %s3556_s16 = smov 0  }
   0x3 LB: > { %s23_s17 = sadd.s32 1, %s3515_s14  ;;  %s26_s18 = sadd.s32 1, %s3519_s15  ;;  %s3523_s16 = sphi %s3556_s16, %s14_s16   ;;  %s3519_s15 = sphi %s3554_s15, %s4952_s15   ;;  %s3515_s14 = sphi %s3552_s14, %s4951_s14   ;;  %s3511_s13 = sphi %s3550_s13, %s4950_s13   ;;  %s3507_s12 = sphi %s3548_s12, %s4949_s12  }
   0x4   : > { %p24_p0 = scmp.ge.s32.totalorder %s23_s17, 2  ;;  %p2943_p1 = scmp.ge.s32.totalorder %s3523_s16, 1 }
   0x5   : > { %p156_p2 = scmp.lt.s32.totalorder %s3523_s16, 5 }
   0x6   : > { %s4954_s17 = smov (%p24_p0, %s23_s17), 0  ;;  %s4956_s18 = smov (!%p24_p0, %s26_s18), %s3519_s15 }
   0x7   : > { %p157_p3 = pnand %p2943_p1, %p156_p2  ;;  %p28_p4 = scmp.ge.s32.totalorder %s4956_s18, 2 }
   0x9   : > { %s4958_s18 = smov (%p28_p4, %s4956_s18), 0  ;;  %160 = sbr.rel (%p157_p3) target bundleno = 739 (0x2e3), region = 28 }
   0xe   : > { %p193_p5 = scmp.lt.s32.totalorder %s3511_s13, 1  ;;  %s2953_s19 = smul.u32 192, %s3507_s12  ;;  %v531_v26 = vld [vmem:[%s4914_s1 + $0x8] sm:$0xff]  ;;  %v530_v29 = vld [vmem:[%s4914_s1] sm:$0xff]  ;;  %v3036_v36 = vld [vmem:[%s4914_s1 + $0x18] sm:$0xff]  ;;  %vm479_vm0 = vcmask 31744  }
   0xf   : > { %s3525_s25 = smov 4   ;;  %s3526_s26 = smov 8   ;;  %3325 = vmatprep.subr.mxu0 %v531_v26  ;;  %3353 = vmatprep.subr.mxu1 %v3036_v36  ;;  %v3035_v38 = vld [vmem:[%s4914_s1 + $0x10] sm:$0xff]  ;;  %vm496_vm1 = vcmask 64512   ;;  %vm513_vm2 = vcmask 97280   ;;  %vm532_vm3 = vcmask 130048  }
  0x10   : > { %s4960_s13 = smov (!%p193_p5, %s3511_s13), 1  ;;  %3326 = vmatpush3.msra.mxu0 %v531_v26  ;;  %s3527_s4 = smov 12   ;;  %3354 = vmatpush3.msra.mxu1 %v3036_v36  ;;  %vm1488_vm4 = vcmask 130112   ;;  %vm2789_vm5 = vcmask 57344  }
  0x11   : > { %s3437_s20 = smul.u32 432, %s4960_s13  ;;  %3327 = vmatprep.subr.mxu0 %v530_v29  ;;  %3355 = vmatprep.subr.mxu1 %v3035_v38  ;;  %s2945_s27 = sshll.u32 %s3507_s12, 3 }
  0x12   : > { %3328 = vmatpush3.msra.mxu0 %v530_v29  ;;  %3356 = vmatpush3.msra.mxu1 %v3035_v38  ;;  %p201_p6 = scmp.lt.s32.totalorder %s2945_s27, 15  ;;  %s2947_s29 = sshll.u32 %s4960_s13, 6 }
  0x13   : > { %s197_s23 = scalar_lea.vmem %s4913_s0, %s3437_s20  ;;  %p211_p7 = scmp.lt.s32.totalorder %s3507_s12, 1 }
  0x14   : > { %s3587_s24 = scalar_lea.vmem %s197_s23, %s2953_s19  ;;  %s4962_s27 = smov (!%p201_p6, %s2945_s27), 15 }
  0x15   : > { %v3590_v0 = vld [vmem:[%s3587_s24 + $0x30] sm:$0xff]  ;;  %v3593_v1 = vld [vmem:[%s3587_s24 + $0x18] sm:$0xff]  ;;  %v3603_v3 = vld [vmem:[%s3587_s24 + $0x20] sm:$0xff]  ;;  %s2946_s28 = sshll.u32 %s4962_s27, 2  ;;  %s4964_s12 = smov (!%p211_p7, %s3507_s12), 1 }
  0x16   : > { %307 = vrot.lane.b32.xlu1 %v3590_v0, %s3525_s25  ;;  %303 = vrot.lane.b32.xlu0 %v3593_v1, %s3525_s25  ;;  %v3600_v2 = vld [vmem:[%s3587_s24 + $0x38] sm:$0xff]  ;;  %v3610_v4 = vld [vmem:[%s3587_s24 + $0x50] sm:$0xff]  ;;  %s205_s30 = sadd.s32 %s2947_s29, %s2946_s28 }
  0x17   : > { %v3613_v5 = vld [vmem:[%s3587_s24 + $0x48] sm:$0xff]  ;;  %v3623_v7 = vld [vmem:[%s3587_s24 + $0x60] sm:$0xff]  ;;  %v3633_v9 = vld [vmem:[%s3587_s24 + $0x78] sm:$0xff]  ;;  %s2948_s5 = sshll.u32 %s205_s30, 3 }
  0x18   : > { %v3620_v6 = vld [vmem:[%s3587_s24 + $0x68] sm:$0xff]  ;;  %v3630_v8 = vld [vmem:[%s3587_s24 + $0x80] sm:$0xff]  ;;  %v3640_v10 = vld [vmem:[%s3587_s24 + $0x98] sm:$0xff]  ;;  %s4430_s8 = scalar_lea.vmem %s4915_s2, %s2948_s5 }
  0x19   : > { %v3643_v11 = vld [vmem:[%s3587_s24 + $0x90] sm:$0xff]  ;;  %v3653_v13 = vld [vmem:[%s3587_s24 + $0xa8] sm:$0xff]  ;;  %v2984_v15 = vld [vmem:[%s3587_s24 + $0xc0] sm:$0xff] }
  0x1a   : > { %309 = vrot.lane.b32.xlu1 %v3600_v2, %s3525_s25  ;;  %305 = vrot.lane.b32.xlu0 %v3603_v3, %s3525_s25  ;;  %v3650_v12 = vld [vmem:[%s3587_s24 + $0xb0] sm:$0xff]  ;;  %v2985_v14 = vld [vmem:[%s3587_s24 + $0xc8] sm:$0xff] }
  0x1b   : > { %v256_v16 = vld [vmem:[%s3587_s24 + $0x9] sm:$0xff]  ;;  %v255_v17 = vld [vmem:[%s3587_s24 + $0x1] sm:$0xff]  ;;  %v3671_v19 = vld [vmem:[%s3587_s24 + $0x19] sm:$0xff] }
  0x1c   : > { %v3668_v18 = vld [vmem:[%s3587_s24 + $0x21] sm:$0xff]  ;;  %v3678_v20 = vld [vmem:[%s3587_s24 + $0x39] sm:$0xff]  ;;  %v3681_v21 = vld [vmem:[%s3587_s24 + $0x31] sm:$0xff] }
  0x1d   : > { %v3688_v22 = vld [vmem:[%s3587_s24 + $0x51] sm:$0xff]  ;;  %v3691_v23 = vld [vmem:[%s3587_s24 + $0x49] sm:$0xff]  ;;  %v3701_v25 = vld [vmem:[%s3587_s24 + $0x61] sm:$0xff] }
  0x1e   : > { %313 = vrot.lane.b32.xlu1 %v3610_v4, %s3525_s25  ;;  %311 = vrot.lane.b32.xlu0 %v3613_v5, %s3525_s25  ;;  %v3698_v24 = vld [vmem:[%s3587_s24 + $0x69] sm:$0xff]  ;;  %v3711_v27 = vld [vmem:[%s3587_s24 + $0x81] sm:$0xff] }
  0x1f   : > { %v3714_v28 = vld [vmem:[%s3587_s24 + $0x79] sm:$0xff]  ;;  %v3727_v31 = vld [vmem:[%s3587_s24 + $0x91] sm:$0xff]  ;;  %v3737_v33 = vld [vmem:[%s3587_s24 + $0xa9] sm:$0xff] }
  0x20   : > { %v3724_v30 = vld [vmem:[%s3587_s24 + $0x99] sm:$0xff]  ;;  %v3734_v32 = vld [vmem:[%s3587_s24 + $0xb1] sm:$0xff]  ;;  %v272_v34 = vld [vmem:[%s3587_s24 + $0x8] sm:$0xff] }
  0x21   : > { %v271_v35 = vld [vmem:[%s3587_s24] sm:$0xff]  ;;  %v3774_v41 = vld [vmem:[%s3587_s24 + $0x32] sm:$0xff]  ;;  %v881_v42 = vld [vmem:[%s3587_s24 + $0xa] sm:$0xff] }
  0x22   : > { %317 = vrot.lane.b32.xlu1 %v3620_v6, %s3525_s25  ;;  %315 = vrot.lane.b32.xlu0 %v3623_v7, %s3525_s25  ;;  %v3755_v37 = vld [vmem:[%s3587_s24 + $0x1a] sm:$0xff]  ;;  %v3765_v39 = vld [vmem:[%s3587_s24 + $0x22] sm:$0xff] }
  0x23   : > { %v880_v40 = vld [vmem:[%s3587_s24 + $0x2] sm:$0xff]  ;;  %v3781_v43 = vld [vmem:[%s3587_s24 + $0x3a] sm:$0xff]  ;;  %v3792_v44 = vld [vmem:[%s3587_s24 + $0x4a] sm:$0xff] }
  0x24   : > { %v3799_v45 = vld [vmem:[%s3587_s24 + $0x52] sm:$0xff]  ;;  %v3810_v46 = vld [vmem:[%s3587_s24 + $0x62] sm:$0xff]  ;;  %v3817_v47 = vld [vmem:[%s3587_s24 + $0x6a] sm:$0xff] }
  0x25   : > { %v3832_v50 = vld [vmem:[%s3587_s24 + $0x7a] sm:$0xff]  ;;  %v3843_v53 = vld [vmem:[%s3587_s24 + $0x82] sm:$0xff]  ;;  %v3862_v58 = vld [vmem:[%s3587_s24 + $0x92] sm:$0xff] }
  0x26   : > { %321 = vrot.lane.b32.xlu1 %v3630_v8, %s3525_s25  ;;  %319 = vrot.lane.b32.xlu0 %v3633_v9, %s3525_s25  ;;  %v3873_v61 = vld [vmem:[%s3587_s24 + $0x9a] sm:$0xff] }
  0x2a   : > { %325 = vrot.lane.b32.xlu1 %v3640_v10, %s3525_s25  ;;  %323 = vrot.lane.b32.xlu0 %v3643_v11, %s3525_s25 }
  0x2e   : > { %329 = vrot.lane.b32.xlu1 %v3650_v12, %s3525_s25  ;;  %327 = vrot.lane.b32.xlu0 %v3653_v13, %s3525_s25 }
  0x32   : > { %333 = vrot.lane.b32.xlu1 %v2985_v14, %s3525_s25  ;;  %331 = vrot.lane.b32.xlu0 %v2984_v15, %s3525_s25 }
  0x36   : > { %369 = vrot.lane.b32.xlu1 %v256_v16, %s3526_s26  ;;  %367 = vrot.lane.b32.xlu0 %v255_v17, %s3526_s26 }
  0x3a   : > { %373 = vrot.lane.b32.xlu1 %v3668_v18, %s3526_s26  ;;  %371 = vrot.lane.b32.xlu0 %v3671_v19, %s3526_s26 }
  0x3e   : > { %377 = vrot.lane.b32.xlu1 %v3678_v20, %s3526_s26  ;;  %375 = vrot.lane.b32.xlu0 %v3681_v21, %s3526_s26 }
  0x42   : > { %381 = vrot.lane.b32.xlu1 %v3688_v22, %s3526_s26  ;;  %379 = vrot.lane.b32.xlu0 %v3691_v23, %s3526_s26 }
  0x46   : > { %385 = vrot.lane.b32.xlu1 %v3698_v24, %s3526_s26  ;;  %383 = vrot.lane.b32.xlu0 %v3701_v25, %s3526_s26 }
  0x4a   : > { %389 = vrot.lane.b32.xlu1 %v3711_v27, %s3526_s26  ;;  %387 = vrot.lane.b32.xlu0 %v3714_v28, %s3526_s26 }
  0x4e   : > { %393 = vrot.lane.b32.xlu1 %v3724_v30, %s3526_s26  ;;  %391 = vrot.lane.b32.xlu0 %v3727_v31, %s3526_s26 }
  0x52   : > { %397 = vrot.lane.b32.xlu1 %v3734_v32, %s3526_s26  ;;  %395 = vrot.lane.b32.xlu0 %v3737_v33, %s3526_s26 }
  0x56   : > { %433 = vrot.lane.b32.xlu1 %v272_v34, %s3527_s4  ;;  %431 = vrot.lane.b32.xlu0 %v271_v35, %s3527_s4  ;;  %v3914_v35 = vld [vmem:[%s3587_s24 + $0xc2] sm:$0xff] }
  0x5a   : > { %437 = vrot.lane.b32.xlu1 %v3603_v3, %s3527_s4  ;;  %435 = vrot.lane.b32.xlu0 %v3593_v1, %s3527_s4  ;;  %v3892_v3 = vld [vmem:[%s3587_s24 + $0xaa] sm:$0xff] }
  0x5e   : > { %912 = vrot.lane.b32.xlu1 %v3755_v37, %s3525_s25  ;;  %439 = vrot.lane.b32.xlu0 %v3590_v0, %s3527_s4 }
  0x62   : > { %976 = vrot.lane.b32.xlu1 %v255_v17, %s3526_s26  ;;  %914 = vrot.lane.b32.xlu0 %v3765_v39, %s3525_s25 }
  0x66   : > { %1040 = vrot.lane.b32.xlu1 %v880_v40, %s3527_s4  ;;  %978 = vrot.lane.b32.xlu0 %v256_v16, %s3526_s26  ;;  %v3903_v16 = vld [vmem:[%s3587_s24 + $0xb2] sm:$0xff]  ;;  %v3923_v40 = vld [vmem:[%s3587_s24 + $0xca] sm:$0xff] }
  0x6a   : > { %916 = vrot.lane.b32.xlu1 %v3774_v41, %s3525_s25  ;;  %1042 = vrot.lane.b32.xlu0 %v881_v42, %s3527_s4 }
  0x6e   : > { %980 = vrot.lane.b32.xlu1 %v3671_v19, %s3526_s26  ;;  %918 = vrot.lane.b32.xlu0 %v3781_v43, %s3525_s25 }
  0x72   : > { %1044 = vrot.lane.b32.xlu1 %v3755_v37, %s3527_s4  ;;  %982 = vrot.lane.b32.xlu0 %v3668_v18, %s3526_s26 }
  0x76   : > { %920 = vrot.lane.b32.xlu1 %v3792_v44, %s3525_s25  ;;  %1046 = vrot.lane.b32.xlu0 %v3765_v39, %s3527_s4 }
  0x7a   : > { %984 = vrot.lane.b32.xlu1 %v3681_v21, %s3526_s26  ;;  %922 = vrot.lane.b32.xlu0 %v3799_v45, %s3525_s25 }
  0x7e   : > { %1048 = vrot.lane.b32.xlu1 %v3774_v41, %s3527_s4  ;;  %986 = vrot.lane.b32.xlu0 %v3678_v20, %s3526_s26 }
  0x82   : > { %924 = vrot.lane.b32.xlu1 %v3810_v46, %s3525_s25  ;;  %1050 = vrot.lane.b32.xlu0 %v3781_v43, %s3527_s4 }
  0x86   : > { %988 = vrot.lane.b32.xlu1 %v3691_v23, %s3526_s26  ;;  %926 = vrot.lane.b32.xlu0 %v3817_v47, %s3525_s25 }
  0x88   : > { %v3823_v48 = vpop.permute.xlu1 %307  ;;  %v3825_v49 = vpop.permute.xlu0 %303 }
  0x8a   : > { %1052 = vrot.lane.b32.xlu1 %v3792_v44, %s3527_s4  ;;  %990 = vrot.lane.b32.xlu0 %v3688_v22, %s3526_s26 }
  0x8c   : > { %v3834_v51 = vpop.permute.xlu1 %309  ;;  %v3836_v52 = vpop.permute.xlu0 %305 }
  0x8e   : > { %928 = vrot.lane.b32.xlu1 %v3832_v50, %s3525_s25  ;;  %1054 = vrot.lane.b32.xlu0 %v3799_v45, %s3527_s4 }
  0x90   : > { %v3845_v54 = vpop.permute.xlu1 %313  ;;  %v3847_v55 = vpop.permute.xlu0 %311 }
  0x92   : > { %992 = vrot.lane.b32.xlu1 %v3701_v25, %s3526_s26  ;;  %930 = vrot.lane.b32.xlu0 %v3843_v53, %s3525_s25 }
  0x94   : > { %v3853_v56 = vpop.permute.xlu1 %317  ;;  %v3855_v57 = vpop.permute.xlu0 %315 }
  0x96   : > { %1056 = vrot.lane.b32.xlu1 %v3810_v46, %s3527_s4  ;;  %994 = vrot.lane.b32.xlu0 %v3698_v24, %s3526_s26 }
  0x98   : > { %v3864_v59 = vpop.permute.xlu1 %321  ;;  %v3866_v60 = vpop.permute.xlu0 %319 }
  0x99   : > { %4917 = vst [vmem:[#allocation2_spill] sm:$0xff] %v3864_v59  ;;  %4918 = vst [vmem:[#allocation3_spill] sm:$0xff] %v3866_v60 }
  0x9a   : > { %932 = vrot.lane.b32.xlu1 %v3862_v58, %s3525_s25  ;;  %1058 = vrot.lane.b32.xlu0 %v3817_v47, %s3527_s4 }
  0x9c   : > { %v3875_v62 = vpop.permute.xlu1 %325  ;;  %v3877_v63 = vpop.permute.xlu0 %323 }
  0x9d   : > { %4919 = vst [vmem:[#allocation4_spill] sm:$0xff] %v3875_v62  ;;  %4920 = vst [vmem:[#allocation5_spill] sm:$0xff] %v3877_v63 }
  0x9e   : > { %996 = vrot.lane.b32.xlu1 %v3714_v28, %s3526_s26  ;;  %934 = vrot.lane.b32.xlu0 %v3873_v61, %s3525_s25 }
  0xa0   : > { %v3883_v0 = vpop.permute.xlu1 %329  ;;  %v3885_v1 = vpop.permute.xlu0 %327 }
  0xa1   : > { %4921 = vst [vmem:[#allocation6_spill] sm:$0xff] %v3883_v0  ;;  %4922 = vst [vmem:[#allocation7_spill] sm:$0xff] %v3885_v1  ;;  %v3940_v1 = vld [vmem:[%s4914_s1 + $0x38] sm:$0xff] }
  0xa2   : > { %1060 = vrot.lane.b32.xlu1 %v3832_v50, %s3527_s4  ;;  %998 = vrot.lane.b32.xlu0 %v3711_v27, %s3526_s26 }
  0xa3   : > { %3409 = vmatprep.subr.mxu1 %v3940_v1 }
  0xa4   : > { %v3894_v14 = vpop.permute.xlu1 %333  ;;  %v3896_v15 = vpop.permute.xlu0 %331 }
  0xa5   : > { %4923 = vst [vmem:[#allocation8_spill] sm:$0xff] %v3894_v14  ;;  %4924 = vst [vmem:[#allocation9_spill] sm:$0xff] %v3896_v15 }
  0xa6   : > { %936 = vrot.lane.b32.xlu1 %v3892_v3, %s3525_s25  ;;  %1062 = vrot.lane.b32.xlu0 %v3843_v53, %s3527_s4 }
  0xa8   : > { %v370_v17 = vpop.permute.xlu1 %369  ;;  %v368_v26 = vpop.permute.xlu0 %367 }
  0xaa   : > { %1000 = vrot.lane.b32.xlu1 %v3727_v31, %s3526_s26  ;;  %938 = vrot.lane.b32.xlu0 %v3903_v16, %s3525_s25 }
  0xac   : > { %v374_v29 = vpop.permute.xlu1 %373  ;;  %v372_v34 = vpop.permute.xlu0 %371 }
  0xae   : > { %1064 = vrot.lane.b32.xlu1 %v3862_v58, %s3527_s4  ;;  %1002 = vrot.lane.b32.xlu0 %v3724_v30, %s3526_s26 }
  0xb0   : > { %v3916_v36 = vpop.permute.xlu1 %377  ;;  %v376_v38 = vpop.permute.xlu0 %375 }
  0xb2   : > { %940 = vrot.lane.b32.xlu1 %v3914_v35, %s3525_s25  ;;  %1066 = vrot.lane.b32.xlu0 %v3873_v61, %s3527_s4 }
  0xb4   : > { %v3925_v42 = vpop.permute.xlu1 %381  ;;  %v3927_v15 = vpop.permute.xlu0 %379 }
  0xb6   : > { %1004 = vrot.lane.b32.xlu1 %v3737_v33, %s3526_s26  ;;  %942 = vrot.lane.b32.xlu0 %v3923_v40, %s3525_s25 }
  0xb8   : > { %v3933_v14 = vpop.permute.xlu1 %385  ;;  %v3935_v0 = vpop.permute.xlu0 %383 }
  0xb9   : > { %4925 = vst [vmem:[#allocation10_spill] sm:$0xff] %v3933_v14  ;;  %4926 = vst [vmem:[#allocation11_spill] sm:$0xff] %v3935_v0 }
  0xba   : > { %1068 = vrot.lane.b32.xlu1 %v3892_v3, %s3527_s4  ;;  %1006 = vrot.lane.b32.xlu0 %v3734_v32, %s3526_s26 }
  0xbc   : > { %v3947_v62 = vpop.permute.xlu1 %389  ;;  %v3949_v63 = vpop.permute.xlu0 %387 }
  0xbd   : > { %4927 = vst [vmem:[#allocation12_spill] sm:$0xff] %v3947_v62  ;;  %4928 = vst [vmem:[#allocation13_spill] sm:$0xff] %v3949_v63 }
  0xbe   : > { %2197 = vrot.lane.b32.xlu1 %v3755_v37, %s3525_s25  ;;  %1070 = vrot.lane.b32.xlu0 %v3903_v16, %s3527_s4  ;;  %v480_v37 = vsel %vm479_vm0, %v3671_v19, %v3825_v49  ;;  %v482_v49 = vsel %vm479_vm0, %v3681_v21, %v3823_v48  ;;  %v484_v48 = vsel %vm479_vm0, %v3691_v23, %v3847_v55 }
  0xc0   : > { %v3955_v14 = vpop.permute.xlu1 %393  ;;  %v3957_v59 = vpop.permute.xlu0 %391 }
  0xc1   : > { %4929 = vst [vmem:[#allocation14_spill] sm:$0xff] %v3955_v14  ;;  %4930 = vst [vmem:[#allocation15_spill] sm:$0xff] %v3957_v59 }
  0xc2   : > { %2261 = vrot.lane.b32.xlu1 %v3681_v21, %s3526_s26  ;;  %2199 = vrot.lane.b32.xlu0 %v3765_v39, %s3525_s25  ;;  %v481_v39 = vsel %vm479_vm0, %v3668_v18, %v3836_v52  ;;  %v483_v52 = vsel %vm479_vm0, %v3678_v20, %v3834_v51  ;;  %v501_v51 = vsel %vm496_vm1, %v484_v48, %v376_v38 }
  0xc4   : > { %v3963_v62 = vpop.permute.xlu1 %397  ;;  %v3965_v63 = vpop.permute.xlu0 %395 }
  0xc5   : > { %4931 = vst [vmem:[#allocation16_spill] sm:$0xff] %v3963_v62  ;;  %4932 = vst [vmem:[#allocation17_spill] sm:$0xff] %v3965_v63  ;;  %v498_v62 = vsel %vm496_vm1, %v481_v39, %v370_v17  ;;  %v497_v63 = vsel %vm496_vm1, %v480_v37, %v368_v26 }
  0xc6   : > { %2325 = vrot.lane.b32.xlu1 %v3774_v41, %s3527_s4  ;;  %2263 = vrot.lane.b32.xlu0 %v3678_v20, %s3526_s26 }
  0xc8   : > { %v434_v14 = vpop.permute.xlu1 %433  ;;  %v432_v59 = vpop.permute.xlu0 %431 }
  0xc9   : > { %v515_v0 = vsel %vm513_vm2, %v498_v62, %v434_v14  ;;  %v514_v60 = vsel %vm513_vm2, %v497_v63, %v432_v59  ;;  %v500_v62 = vsel %vm496_vm1, %v483_v52, %v374_v29  ;;  %v499_v59 = vsel %vm496_vm1, %v482_v49, %v372_v34 }
  0xca   : > { %2201 = vrot.lane.b32.xlu1 %v3774_v41, %s3525_s25  ;;  %2327 = vrot.lane.b32.xlu0 %v3781_v43, %s3527_s4 }
  0xcb   : > { %3329 = vmatprep.mubr.msk.f32.mxu0 %vm532_vm3, %v514_v60 }
  0xcc   : > { %3330 = vmatmul.mubr.msk.f32.vlgmr.msra.gmra.mxu0 %vm532_vm3, %v515_v0  ;;  %v438_v41 = vpop.permute.xlu1 %437  ;;  %v436_v63 = vpop.permute.xlu0 %435 }
  0xcd   : > { %v517_v14 = vsel %vm513_vm2, %v500_v62, %v438_v41  ;;  %v516_v17 = vsel %vm513_vm2, %v499_v59, %v436_v63  ;;  %v3217_v41 = vld [vmem:[%s4914_s1 + $0x30] sm:$0xff] }
  0xce   : > { %2265 = vrot.lane.b32.xlu1 %v3691_v23, %s3526_s26  ;;  %2203 = vrot.lane.b32.xlu0 %v3781_v43, %s3525_s25 }
  0xcf   : > { %3332 = vmatprep.mubr.msk.f32.mxu0 %vm532_vm3, %v516_v17 }
  0xd0   : > { %3333 = vmatmul.mubr.msk.f32.gmra.mxu0 %vm532_vm3, %v517_v14  ;;  %v913_v60 = vpop.permute.xlu1 %912  ;;  %v440_v0 = vpop.permute.xlu0 %439 }
  0xd1   : > { %v518_v26 = vsel %vm513_vm2, %v501_v51, %v440_v0  ;;  %v1088_v29 = vsel %vm479_vm0, %v3671_v19, %v913_v60 }
  0xd2   : > { %2329 = vrot.lane.b32.xlu1 %v3792_v44, %s3527_s4  ;;  %2267 = vrot.lane.b32.xlu0 %v3688_v22, %s3526_s26 }
  0xd3   : > { %3335 = vmatprep.mubr.msk.f32.mxu0 %vm532_vm3, %v518_v26 }
  0xd4   : > { %v977_v43 = vpop.permute.xlu1 %976  ;;  %v915_v55 = vpop.permute.xlu0 %914 }
  0xd5   : > { %v1104_v34 = vsel %vm496_vm1, %v1088_v29, %v977_v43 }
  0xd6   : > { %2205 = vrot.lane.b32.xlu1 %v3792_v44, %s3525_s25  ;;  %2331 = vrot.lane.b32.xlu0 %v3799_v45, %s3527_s4  ;;  %v1089_v44 = vsel %vm479_vm0, %v3668_v18, %v915_v55 }
  0xd8   : > { %v1041_v38 = vpop.permute.xlu1 %1040  ;;  %v979_v37 = vpop.permute.xlu0 %978 }
  0xd9   : > { %v1120_v39 = vsel %vm513_vm2, %v1104_v34, %v1041_v38  ;;  %v1105_v49 = vsel %vm496_vm1, %v1089_v44, %v979_v37 }
  0xda   : > { %2269 = vrot.lane.b32.xlu1 %v3701_v25, %s3526_s26  ;;  %3357 = vmatprep.mubr.msk.f32.mxu1 %vm532_vm3, %v1120_v39 }
  0xdb   : > { %2207 = vrot.lane.b32.xlu0 %v3799_v45, %s3525_s25 }
  0xdc   : > { %v917_v52 = vpop.permute.xlu1 %916  ;;  %v1043_v62 = vpop.permute.xlu0 %1042 }
  0xdd   : > { %v1121_v59 = vsel %vm513_vm2, %v1105_v49, %v1043_v62  ;;  %v1090_v14 = vsel %vm479_vm0, %v3681_v21, %v917_v52 }
  0xde   : > { %2333 = vrot.lane.b32.xlu1 %v3810_v46, %s3527_s4  ;;  %3358 = vmatmul.mubr.msk.f32.vlgmr.msra.gmra.mxu1 %vm532_vm3, %v1121_v59 }
  0xdf   : > { %2271 = vrot.lane.b32.xlu0 %v3698_v24, %s3526_s26  ;;  %3410 = vmatpush3.msra.mxu1 %v3940_v1 }
  0xe0   : > { %v981_v45 = vpop.permute.xlu1 %980  ;;  %v919_v63 = vpop.permute.xlu0 %918  ;;  %3411 = vmatprep.subr.mxu1 %v3217_v41 }
  0xe1   : > { %3412 = vmatpush3.msra.mxu1 %v3217_v41  ;;  %v1106_v17 = vsel %vm496_vm1, %v1090_v14, %v981_v45 }
  0xe2   : > { %2209 = vrot.lane.b32.xlu1 %v3810_v46, %s3525_s25  ;;  %v1091_v46 = vsel %vm479_vm0, %v3678_v20, %v919_v63 }
  0xe3   : > { %2335 = vrot.lane.b32.xlu0 %v3817_v47, %s3527_s4 }
  0xe4   : > { %v1045_v48 = vpop.permute.xlu1 %1044  ;;  %v983_v51 = vpop.permute.xlu0 %982 }
  0xe5   : > { %v1122_v60 = vsel %vm513_vm2, %v1106_v17, %v1045_v48  ;;  %v1107_v1 = vsel %vm496_vm1, %v1091_v46, %v983_v51 }
  0xe6   : > { %2273 = vrot.lane.b32.xlu1 %v3714_v28, %s3526_s26  ;;  %3360 = vmatprep.mubr.msk.f32.mxu1 %vm532_vm3, %v1122_v60 }
  0xe7   : > { %2211 = vrot.lane.b32.xlu0 %v3817_v47, %s3525_s25 }
  0xe8   : > { %v921_v0 = vpop.permute.xlu1 %920  ;;  %v1047_v26 = vpop.permute.xlu0 %1046 }
  0xe9   : > { %v1123_v43 = vsel %vm513_vm2, %v1107_v1, %v1047_v26  ;;  %v1092_v47 = vsel %vm479_vm0, %v3691_v23, %v921_v0 }
  0xea   : > { %2275 = vrot.lane.b32.xlu1 %v3711_v27, %s3526_s26  ;;  %3361 = vmatmul.mubr.msk.f32.gmra.mxu1 %vm532_vm3, %v1123_v43 }
  0xeb   : > { %441 = vrot.lane.b32.xlu0 %v3600_v2, %s3527_s4 }
  0xec   : > { %v985_v55 = vpop.permute.xlu1 %984  ;;  %v923_v29 = vpop.permute.xlu0 %922 }
  0xed   : > { %v1108_v34 = vsel %vm496_vm1, %v1092_v47, %v985_v55  ;;  %v1093_v2 = vsel %vm479_vm0, %v3688_v22, %v923_v29 }
  0xee   : > { %2339 = vrot.lane.b32.xlu1 %v3843_v53, %s3527_s4 }
  0xef   : > { %2337 = vrot.lane.b32.xlu0 %v3832_v50, %s3527_s4 }
  0xf0   : > { %v1049_v38 = vpop.permute.xlu1 %1048  ;;  %v987_v37 = vpop.permute.xlu0 %986 }
  0xf1   : > { %v1124_v39 = vsel %vm513_vm2, %v1108_v34, %v1049_v38  ;;  %v1109_v23 = vsel %vm496_vm1, %v1093_v2, %v987_v37  ;;  %v4135_v2 = vld [vmem:[%s3587_s24 + $0xc1] sm:$0xff] }
  0xf2   : > { %443 = vrot.lane.b32.xlu1 %v3613_v5, %s3527_s4  ;;  %3363 = vmatprep.mubr.msk.f32.mxu1 %vm532_vm3, %v1124_v39 }
  0xf3   : > { %2213 = vrot.lane.b32.xlu0 %v3832_v50, %s3525_s25 }
  0xf4   : > { %v925_v44 = vpop.permute.xlu1 %924  ;;  %v1051_v49 = vpop.permute.xlu0 %1050 }
  0xf5   : > { %v1125_v52 = vsel %vm513_vm2, %v1109_v23, %v1051_v49  ;;  %v1094_v50 = vsel %vm479_vm0, %v3701_v25, %v925_v44  ;;  %v4147_v49 = vld [vmem:[%s3587_s24 + $0xc9] sm:$0xff] }
  0xf6   : > { %2277 = vrot.lane.b32.xlu1 %v3727_v31, %s3526_s26  ;;  %3364 = vmatmul.mubr.msk.f32.gmra.mxu1 %vm532_vm3, %v1125_v52 }
  0xf7   : > { %2215 = vrot.lane.b32.xlu0 %v3843_v53, %s3525_s25 }
  0xf8   : > { %v989_v5 = vpop.permute.xlu1 %988  ;;  %v927_v62 = vpop.permute.xlu0 %926 }
  0xf9   : > { %v1110_v59 = vsel %vm496_vm1, %v1094_v50, %v989_v5  ;;  %v1095_v53 = vsel %vm479_vm0, %v3698_v24, %v927_v62 }
  0xfa   : > { %2279 = vrot.lane.b32.xlu1 %v3724_v30, %s3526_s26 }
  0xfb   : > { %445 = vrot.lane.b32.xlu0 %v3610_v4, %s3527_s4 }
  0xfc   : > { %v1053_v41 = vpop.permute.xlu1 %1052  ;;  %v991_v45 = vpop.permute.xlu0 %990 }
  0xfd   : > { %v1126_v63 = vsel %vm513_vm2, %v1110_v59, %v1053_v41  ;;  %v1111_v14 = vsel %vm496_vm1, %v1095_v53, %v991_v45 }
  0xfe   : > { %2343 = vrot.lane.b32.xlu1 %v3873_v61, %s3527_s4  ;;  %3366 = vmatprep.mubr.msk.f32.mxu1 %vm532_vm3, %v1126_v63 }
  0xff   : > { %2341 = vrot.lane.b32.xlu0 %v3862_v58, %s3527_s4 }
 0x100   : > { %v929_v4 = vpop.permute.xlu1 %928  ;;  %v1055_v17 = vpop.permute.xlu0 %1054 }
 0x101   : > { %v1127_v48 = vsel %vm513_vm2, %v1111_v14, %v1055_v17  ;;  %v1096_v46 = vsel %vm479_vm0, %v3714_v28, %v929_v4  ;;  %v3216_v17 = vld [vmem:[%s3587_s24 + $0xe2] sm:$0xff] }
 0x102   : > { %447 = vrot.lane.b32.xlu1 %v3623_v7, %s3527_s4  ;;  %3367 = vmatmul.mubr.msk.f32.gmra.mxu1 %vm532_vm3, %v1127_v48 }
 0x103   : > { %2217 = vrot.lane.b32.xlu0 %v3862_v58, %s3525_s25 }
 0x104   : > { %v993_v51 = vpop.permute.xlu1 %992  ;;  %v931_v60 = vpop.permute.xlu0 %930 }
 0x105   : > { %v1112_v1 = vsel %vm496_vm1, %v1096_v46, %v993_v51  ;;  %v1097_v58 = vsel %vm479_vm0, %v3711_v27, %v931_v60  ;;  %v3215_v46 = vld [vmem:[%s3587_s24 + $0xda] sm:$0xff] }
 0x106   : > { %2281 = vrot.lane.b32.xlu1 %v3737_v33, %s3526_s26 }
 0x107   : > { %2219 = vrot.lane.b32.xlu0 %v3873_v61, %s3525_s25 }
 0x108   : > { %v1057_v0 = vpop.permute.xlu1 %1056  ;;  %v995_v7 = vpop.permute.xlu0 %994 }
 0x109   : > { %v1128_v26 = vsel %vm513_vm2, %v1112_v1, %v1057_v0  ;;  %v1113_v61 = vsel %vm496_vm1, %v1097_v58, %v995_v7 }
 0x10a   : > { %2283 = vrot.lane.b32.xlu1 %v3734_v32, %s3526_s26  ;;  %3369 = vmatprep.mubr.msk.f32.mxu1 %vm532_vm3, %v1128_v26 }
 0x10b   : > { %449 = vrot.lane.b32.xlu0 %v3620_v6, %s3527_s4 }
 0x10c   : > { %v933_v43 = vpop.permute.xlu1 %932  ;;  %v1059_v55 = vpop.permute.xlu0 %1058 }
 0x10d   : > { %v1129_v29 = vsel %vm513_vm2, %v1113_v61, %v1059_v55  ;;  %v1098_v6 = vsel %vm479_vm0, %v3727_v31, %v933_v43  ;;  %v3119_v61 = vld [vmem:[%s4914_s1 + $0x20] sm:$0xff] }
 0x10e   : > { %2347 = vrot.lane.b32.xlu1 %v3903_v16, %s3527_s4  ;;  %3370 = vmatmul.mubr.msk.f32.gmra.mxu1 %vm532_vm3, %v1129_v29  ;;  %v3070_v43 = vld [vmem:[%s3587_s24 + $0x20] sm:$0xff] }
 0x10f   : > { %2345 = vrot.lane.b32.xlu0 %v3892_v3, %s3527_s4 }
 0x110   : > { %v997_v47 = vpop.permute.xlu1 %996  ;;  %v935_v34 = vpop.permute.xlu0 %934 }
 0x111   : > { %v1114_v38 = vsel %vm496_vm1, %v1098_v6, %v997_v47  ;;  %v3069_v47 = vld [vmem:[%s3587_s24 + $0x18] sm:$0xff] }
 0x112   : > { %451 = vrot.lane.b32.xlu1 %v3633_v9, %s3527_s4  ;;  %v1099_v9 = vsel %vm479_vm0, %v3724_v30, %v935_v34 }
 0x113   : > { %2221 = vrot.lane.b32.xlu0 %v3892_v3, %s3525_s25 }
 0x114   : > { %v1061_v37 = vpop.permute.xlu1 %1060  ;;  %v999_v39 = vpop.permute.xlu0 %998 }
 0x115   : > { %v1130_v23 = vsel %vm513_vm2, %v1114_v38, %v1061_v37  ;;  %v1115_v31 = vsel %vm496_vm1, %v1099_v9, %v999_v39 }
 0x116   : > { %2285 = vrot.lane.b32.xlu1 %v4135_v2, %s3526_s26  ;;  %3372 = vmatprep.mubr.msk.f32.mxu1 %vm532_vm3, %v1130_v23 }
 0x117   : > { %2223 = vrot.lane.b32.xlu0 %v3903_v16, %s3525_s25 }
 0x118   : > { %v937_v3 = vpop.permute.xlu1 %936  ;;  %v1063_v44 = vpop.permute.xlu0 %1062 }
 0x119   : > { %v1131_v52 = vsel %vm513_vm2, %v1115_v31, %v1063_v44  ;;  %v1100_v16 = vsel %vm479_vm0, %v3737_v33, %v937_v3  ;;  %v4171_v33 = vld [vmem:[%s3587_s24 + $0xd9] sm:$0xff]  ;;  %v3103_v31 = vld [vmem:[%s3587_s24 + $0x30] sm:$0xff] }
 0x11a   : > { %2287 = vrot.lane.b32.xlu1 %v4147_v49, %s3526_s26  ;;  %3373 = vmatmul.mubr.msk.f32.gmra.mxu1 %vm532_vm3, %v1131_v52  ;;  %v4238_v52 = vld [vmem:[%s3587_s24 + $0x51] sm:$0xff] }
 0x11b   : > { %453 = vrot.lane.b32.xlu0 %v3630_v8, %s3527_s4 }
 0x11c   : > { %v1001_v30 = vpop.permute.xlu1 %1000  ;;  %v939_v5 = vpop.permute.xlu0 %938 }
 0x11d   : > { %v1116_v62 = vsel %vm496_vm1, %v1100_v16, %v1001_v30  ;;  %v1101_v8 = vsel %vm479_vm0, %v3734_v32, %v939_v5  ;;  %v4242_v5 = vld [vmem:[%s3587_s24 + $0x39] sm:$0xff] }
 0x11e   : > { %2351 = vrot.lane.b32.xlu1 %v3923_v40, %s3527_s4 }
 0x11f   : > { %2349 = vrot.lane.b32.xlu0 %v3914_v35, %s3527_s4 }
 0x120   : > { %v1065_v50 = vpop.permute.xlu1 %1064  ;;  %v1003_v59 = vpop.permute.xlu0 %1002 }
 0x121   : > { %v1132_v41 = vsel %vm513_vm2, %v1116_v62, %v1065_v50  ;;  %v1117_v45 = vsel %vm496_vm1, %v1101_v8, %v1003_v59  ;;  %v4245_v50 = vld [vmem:[%s3587_s24 + $0x49] sm:$0xff] }
 0x122   : > { %455 = vrot.lane.b32.xlu1 %v3643_v11, %s3527_s4  ;;  %3375 = vmatprep.mubr.msk.f32.mxu1 %vm532_vm3, %v1132_v41  ;;  %v4181_v11 = vld [vmem:[%s3587_s24 + $0xe1] sm:$0xff]  ;;  %v3106_v41 = vld [vmem:[%s3587_s24 + $0x50] sm:$0xff] }
 0x123   : > { %2225 = vrot.lane.b32.xlu0 %v3914_v35, %s3525_s25 }
 0x124   : > { %v941_v63 = vpop.permute.xlu1 %940  ;;  %v1067_v53 = vpop.permute.xlu0 %1066 }
 0x125   : > { %v1133_v14 = vsel %vm513_vm2, %v1117_v45, %v1067_v53  ;;  %v1102_v4 = vsel %vm479_vm0, %v4135_v2, %v941_v63  ;;  %v3105_v53 = vld [vmem:[%s3587_s24 + $0x48] sm:$0xff] }
 0x126   : > { %2289 = vrot.lane.b32.xlu1 %v4171_v33, %s3526_s26  ;;  %3376 = vmatmul.mubr.msk.f32.gmra.mxu1 %vm532_vm3, %v1133_v14 }
 0x127   : > { %2227 = vrot.lane.b32.xlu0 %v3923_v40, %s3525_s25 }
 0x128   : > { %v1005_v32 = vpop.permute.xlu1 %1004  ;;  %v943_v35 = vpop.permute.xlu0 %942 }
 0x129   : > { %v1118_v48 = vsel %vm496_vm1, %v1102_v4, %v1005_v32  ;;  %v1103_v1 = vsel %vm479_vm0, %v4147_v49, %v943_v35 }
 0x12a   : > { %2291 = vrot.lane.b32.xlu1 %v4181_v11, %s3526_s26 }
 0x12b   : > { %457 = vrot.lane.b32.xlu0 %v3640_v10, %s3527_s4  ;;  %v3120_v10 = vld [vmem:[%s4914_s1 + $0x28] sm:$0xff] }
 0x12c   : > { %v1069_v51 = vpop.permute.xlu1 %1068  ;;  %v1007_v60 = vpop.permute.xlu0 %1006  ;;  %3381 = vmatprep.subr.mxu0 %v3120_v10 }
 0x12d   : > { %v1134_v40 = vsel %vm513_vm2, %v1118_v48, %v1069_v51  ;;  %v1119_v0 = vsel %vm496_vm1, %v1103_v1, %v1007_v60  ;;  %3382 = vmatpush3.msra.mxu0 %v3120_v10  ;;  %v4271_v60 = vld [vmem:[%s3587_s24 + $0x61] sm:$0xff] }
 0x12e   : > { %2355 = vrot.lane.b32.xlu1 %v3216_v17, %s3527_s4  ;;  %3378 = vmatprep.mubr.msk.f32.mxu1 %vm532_vm3, %v1134_v40  ;;  %v4267_v17 = vld [vmem:[%s3587_s24 + $0x69] sm:$0xff] }
 0x12f   : > { %2353 = vrot.lane.b32.xlu0 %v3215_v46, %s3527_s4  ;;  %3383 = vmatprep.subr.mxu0 %v3119_v61  ;;  %v3108_v1 = vld [vmem:[%s3587_s24 + $0x68] sm:$0xff] }
 0x130   : > { %v2198_v7 = vpop.permute.xlu1 %2197  ;;  %v1071_v26 = vpop.permute.xlu0 %1070  ;;  %3384 = vmatpush3.msra.mxu0 %v3119_v61 }
 0x131   : > { %v1135_v58 = vsel %vm513_vm2, %v1119_v0, %v1071_v26  ;;  %v2373_v34 = vsel %vm479_vm0, %v3671_v19, %v2198_v7  ;;  %v3104_v19 = vld [vmem:[%s3587_s24 + $0x38] sm:$0xff]  ;;  %v3107_v7 = vld [vmem:[%s3587_s24 + $0x60] sm:$0xff] }
 0x132   : > { %461 = vrot.lane.b32.xlu1 %v3650_v12, %s3527_s4  ;;  %3379 = vmatmul.mubr.msk.f32.gmra.mxu1 %vm532_vm3, %v1135_v58 }
 0x133   : > { %459 = vrot.lane.b32.xlu0 %v3653_v13, %s3527_s4 }
 0x134   : > { %v2262_v55 = vpop.permute.xlu1 %2261  ;;  %v2200_v29 = vpop.permute.xlu0 %2199 }
 0x135   : > { %v2389_v12 = vsel %vm496_vm1, %v2373_v34, %v2262_v55  ;;  %v2374_v37 = vsel %vm479_vm0, %v3668_v18, %v2200_v29  ;;  %v4291_v29 = vld [vmem:[%s3587_s24 + $0x81] sm:$0xff] }
 0x136   : > { %1590 = vrot.lane.b32.xlu1 %v3070_v43, %s3525_s25 }
 0x137   : > { %1588 = vrot.lane.b32.xlu0 %v3069_v47, %s3525_s25  ;;  %v485_v47 = vsel %vm479_vm0, %v3688_v22, %v3845_v54  ;;  %v3110_v22 = vld [vmem:[%s3587_s24 + $0x80] sm:$0xff] }
 0x138   : > { %v2326_v6 = vpop.permute.xlu1 %2325  ;;  %v2264_v38 = vpop.permute.xlu0 %2263 }
 0x139   : > { %v2405_v13 = vsel %vm513_vm2, %v2389_v12, %v2326_v6  ;;  %v2390_v39 = vsel %vm496_vm1, %v2374_v37, %v2264_v38  ;;  %v4297_v12 = vld [vmem:[%s3587_s24 + $0x79] sm:$0xff]  ;;  %v502_v6 = vsel %vm496_vm1, %v485_v47, %v3916_v36 }
 0x13a   : > { %1654 = vrot.lane.b32.xlu1 %v3678_v20, %s3526_s26  ;;  %3413 = vmatprep.mubr.msk.f32.mxu1 %vm532_vm3, %v2405_v13  ;;  %v4935_v47 = vld [vmem:[#allocation2_spill] sm:$0xff] }
 0x13b   : > { %1652 = vrot.lane.b32.xlu0 %v3681_v21, %s3526_s26 }
 0x13c   : > { %v2202_v23 = vpop.permute.xlu1 %2201  ;;  %v2328_v9 = vpop.permute.xlu0 %2327 }
 0x13d   : > { %v2406_v3 = vsel %vm513_vm2, %v2390_v39, %v2328_v9  ;;  %v2375_v44 = vsel %vm479_vm0, %v3681_v21, %v2202_v23  ;;  %v3109_v39 = vld [vmem:[%s3587_s24 + $0x78] sm:$0xff] }
 0x13e   : > { %1718 = vrot.lane.b32.xlu1 %v3104_v19, %s3527_s4  ;;  %3414 = vmatmul.mubr.msk.f32.vlgmr.msra.gmra.mxu1 %vm532_vm3, %v2406_v3 }
 0x13f   : > { %1716 = vrot.lane.b32.xlu0 %v3103_v31, %s3527_s4 }
 0x140   : > { %v2266_v18 = vpop.permute.xlu1 %2265  ;;  %v2204_v20 = vpop.permute.xlu0 %2203 }
 0x141   : > { %v2391_v30 = vsel %vm496_vm1, %v2375_v44, %v2266_v18  ;;  %v2376_v21 = vsel %vm479_vm0, %v4242_v5, %v2204_v20  ;;  %v486_v18 = vsel %vm479_vm0, %v3701_v25, %v3855_v57  ;;  %v4331_v25 = vld [vmem:[%s3587_s24 + $0x99] sm:$0xff] }
 0x142   : > { %1594 = vrot.lane.b32.xlu1 %v3104_v19, %s3525_s25  ;;  %v503_v20 = vsel %vm496_vm1, %v486_v18, %v3927_v15  ;;  %v3112_v15 = vld [vmem:[%s3587_s24 + $0x98] sm:$0xff] }
 0x143   : > { %1592 = vrot.lane.b32.xlu0 %v3103_v31, %s3525_s25 }
 0x144   : > { %v2330_v16 = vpop.permute.xlu1 %2329  ;;  %v2268_v62 = vpop.permute.xlu0 %2267 }
 0x145   : > { %v2407_v59 = vsel %vm513_vm2, %v2391_v30, %v2330_v16  ;;  %v2392_v8 = vsel %vm496_vm1, %v2376_v21, %v2268_v62  ;;  %v4334_v62 = vld [vmem:[%s3587_s24 + $0x91] sm:$0xff]  ;;  %v487_v21 = vsel %vm479_vm0, %v3698_v24, %v3853_v56 }
 0x146   : > { %1658 = vrot.lane.b32.xlu1 %v4238_v52, %s3526_s26  ;;  %3416 = vmatprep.mubr.msk.f32.mxu1 %vm532_vm3, %v2407_v59 }
 0x147   : > { %1656 = vrot.lane.b32.xlu0 %v4245_v50, %s3526_s26 }
 0x148   : > { %v2206_v45 = vpop.permute.xlu1 %2205  ;;  %v2332_v63 = vpop.permute.xlu0 %2331 }
 0x149   : > { %v2408_v14 = vsel %vm513_vm2, %v2392_v8, %v2332_v63  ;;  %v2377_v4 = vsel %vm479_vm0, %v4245_v50, %v2206_v45  ;;  %v3111_v8 = vld [vmem:[%s3587_s24 + $0x90] sm:$0xff]  ;;  %v504_v45 = vsel %vm496_vm1, %v487_v21, %v3925_v42  ;;  %v3115_v21 = vld [vmem:[%s3587_s24 + $0xc0] sm:$0xff] }
 0x14a   : > { %1722 = vrot.lane.b32.xlu1 %v3106_v41, %s3527_s4  ;;  %3417 = vmatmul.mubr.msk.f32.gmra.mxu1 %vm532_vm3, %v2408_v14 }
 0x14b   : > { %1720 = vrot.lane.b32.xlu0 %v3105_v53, %s3527_s4 }
 0x14c   : > { %v2270_v32 = vpop.permute.xlu1 %2269 }
 0x14d   : > { %v2208_v35 = vpop.permute.xlu0 %2207  ;;  %v2393_v48 = vsel %vm496_vm1, %v2377_v4, %v2270_v32 }
 0x14e   : > { %1598 = vrot.lane.b32.xlu1 %v3106_v41, %s3525_s25  ;;  %v2378_v10 = vsel %vm479_vm0, %v4238_v52, %v2208_v35 }
 0x14f   : > { %1596 = vrot.lane.b32.xlu0 %v3105_v53, %s3525_s25 }
 0x150   : > { %v2334_v51 = vpop.permute.xlu1 %2333 }
 0x151   : > { %v2409_v46 = vsel %vm513_vm2, %v2393_v48, %v2334_v51  ;;  %v2272_v40 = vpop.permute.xlu0 %2271  ;;  %v4933_v51 = vld [vmem:[#allocation3_spill] sm:$0xff] }
 0x152   : > { %1662 = vrot.lane.b32.xlu1 %v4267_v17, %s3526_s26  ;;  %3419 = vmatprep.mubr.msk.f32.mxu1 %vm532_vm3, %v2409_v46  ;;  %v2394_v26 = vsel %vm496_vm1, %v2378_v10, %v2272_v40  ;;  %v488_v46 = vsel %vm479_vm0, %v3714_v28, %v4933_v51  ;;  %v4366_v40 = vld [vmem:[%s3587_s24 + $0xb1] sm:$0xff] }
 0x153   : > { %1660 = vrot.lane.b32.xlu0 %v4271_v60, %s3526_s26  ;;  %v3114_v28 = vld [vmem:[%s3587_s24 + $0xb0] sm:$0xff] }
 0x154   : > { %v2210_v0 = vpop.permute.xlu1 %2209 }
 0x155   : > { %v2336_v58 = vpop.permute.xlu0 %2335  ;;  %v2379_v54 = vsel %vm479_vm0, %v4271_v60, %v2210_v0 }
 0x156   : > { %v2410_v61 = vsel %vm513_vm2, %v2394_v26, %v2336_v58  ;;  %1726 = vrot.lane.b32.xlu1 %v3108_v1, %s3527_s4 }
 0x157   : > { %1724 = vrot.lane.b32.xlu0 %v3107_v7, %s3527_s4  ;;  %3420 = vmatmul.mubr.msk.f32.gmra.mxu1 %vm532_vm3, %v2410_v61 }
 0x158   : > { %v2274_v43 = vpop.permute.xlu1 %2273 }
 0x159   : > { %v2212_v55 = vpop.permute.xlu0 %2211  ;;  %v2395_v23 = vsel %vm496_vm1, %v2379_v54, %v2274_v43  ;;  %v3113_v43 = vld [vmem:[%s3587_s24 + $0xa8] sm:$0xff] }
 0x15a   : > { %1602 = vrot.lane.b32.xlu1 %v3108_v1, %s3525_s25  ;;  %v2380_v37 = vsel %vm479_vm0, %v4267_v17, %v2212_v55  ;;  %v4934_v1 = vld [vmem:[#allocation11_spill] sm:$0xff] }
 0x15b   : > { %1600 = vrot.lane.b32.xlu0 %v3107_v7, %s3525_s25  ;;  %v505_v10 = vsel %vm496_vm1, %v488_v46, %v4934_v1  ;;  %v4372_v7 = vld [vmem:[%s3587_s24 + $0xa9] sm:$0xff] }
 0x15c   : > { %v2276_v34 = vpop.permute.xlu1 %2275 }
 0x15d   : > { %v442_v38 = vpop.permute.xlu0 %441  ;;  %v2396_v36 = vsel %vm496_vm1, %v2380_v37, %v2276_v34  ;;  %v489_v34 = vsel %vm479_vm0, %v3711_v27, %v4935_v47  ;;  %v4397_v27 = vld [vmem:[%s3587_s24 + $0xc9] sm:$0xff]  ;;  %v3117_v47 = vld [vmem:[%s3587_s24 + $0xd8] sm:$0xff] }
 0x15e   : > { %v519_v13 = vsel %vm513_vm2, %v502_v6, %v442_v38  ;;  %1666 = vrot.lane.b32.xlu1 %v4291_v29, %s3526_s26  ;;  %v4936_v38 = vld [vmem:[#allocation10_spill] sm:$0xff] }
 0x15f   : > { %1664 = vrot.lane.b32.xlu0 %v4297_v12, %s3526_s26  ;;  %3336 = vmatmul.mubr.msk.f32.gmra.mxu0 %vm532_vm3, %v519_v13  ;;  %v506_v13 = vsel %vm496_vm1, %v489_v34, %v4936_v38 }
 0x160   : > { %v2340_v19 = vpop.permute.xlu1 %2339 }
 0x161   : > { %v2412_v9 = vsel %vm513_vm2, %v2396_v36, %v2340_v19  ;;  %v2338_v31 = vpop.permute.xlu0 %2337 }
 0x162   : > { %v2411_v3 = vsel %vm513_vm2, %v2395_v23, %v2338_v31  ;;  %1730 = vrot.lane.b32.xlu1 %v3110_v22, %s3527_s4  ;;  %v4403_v23 = vld [vmem:[%s3587_s24 + $0xc1] sm:$0xff] }
 0x163   : > { %1728 = vrot.lane.b32.xlu0 %v3109_v39, %s3527_s4  ;;  %3422 = vmatprep.mubr.msk.f32.mxu1 %vm532_vm3, %v2411_v3 }
 0x164   : > { %3423 = vmatmul.mubr.msk.f32.gmra.mxu1 %vm532_vm3, %v2412_v9  ;;  %v444_v44 = vpop.permute.xlu1 %443 }
 0x165   : > { %v520_v30 = vsel %vm513_vm2, %v503_v20, %v444_v44  ;;  %v2214_v16 = vpop.permute.xlu0 %2213  ;;  %v3481_v20 = vld [vmem:[%s3587_s24 + $0x91] sm:$0xff] }
 0x166   : > { %1606 = vrot.lane.b32.xlu1 %v3110_v22, %s3525_s25  ;;  %3338 = vmatprep.mubr.msk.f32.mxu0 %vm532_vm3, %v520_v30  ;;  %v2381_v24 = vsel %vm479_vm0, %v4297_v12, %v2214_v16  ;;  %v4937_v44 = vld [vmem:[#allocation5_spill] sm:$0xff]  ;;  %v3116_v16 = vld [vmem:[%s3587_s24 + $0xc8] sm:$0xff] }
 0x167   : > { %1604 = vrot.lane.b32.xlu0 %v3109_v39, %s3525_s25  ;;  %v490_v30 = vsel %vm479_vm0, %v3481_v20, %v4937_v44 }
 0x168   : > { %v2278_v57 = vpop.permute.xlu1 %2277 }
 0x169   : > { %v2216_v59 = vpop.permute.xlu0 %2215  ;;  %v2397_v32 = vsel %vm496_vm1, %v2381_v24, %v2278_v57  ;;  %v4938_v57 = vld [vmem:[#allocation13_spill] sm:$0xff] }
 0x16a   : > { %1670 = vrot.lane.b32.xlu1 %v4331_v25, %s3526_s26  ;;  %v2382_v14 = vsel %vm479_vm0, %v4291_v29, %v2216_v59  ;;  %v507_v59 = vsel %vm496_vm1, %v490_v30, %v4938_v57 }
 0x16b   : > { %1668 = vrot.lane.b32.xlu0 %v4334_v62, %s3526_s26 }
 0x16c   : > { %v2280_v41 = vpop.permute.xlu1 %2279 }
 0x16d   : > { %v446_v63 = vpop.permute.xlu0 %445  ;;  %v2398_v56 = vsel %vm496_vm1, %v2382_v14, %v2280_v41  ;;  %v4939_v14 = vld [vmem:[#allocation4_spill] sm:$0xff] }
 0x16e   : > { %v521_v53 = vsel %vm513_vm2, %v504_v45, %v446_v63  ;;  %1734 = vrot.lane.b32.xlu1 %v3112_v15, %s3527_s4 }
 0x16f   : > { %1732 = vrot.lane.b32.xlu0 %v3111_v8, %s3527_s4  ;;  %3339 = vmatmul.mubr.msk.f32.gmra.mxu0 %vm532_vm3, %v521_v53  ;;  %v3482_v53 = vld [vmem:[%s3587_s24 + $0x99] sm:$0xff] }
 0x170   : > { %v2344_v42 = vpop.permute.xlu1 %2343  ;;  %v491_v24 = vsel %vm479_vm0, %v3482_v53, %v4939_v14  ;;  %v3484_v14 = vld [vmem:[%s3587_s24 + $0xb1] sm:$0xff] }
 0x171   : > { %v2414_v35 = vsel %vm513_vm2, %v2398_v56, %v2344_v42  ;;  %v2342_v4 = vpop.permute.xlu0 %2341 }
 0x172   : > { %v2413_v48 = vsel %vm513_vm2, %v2397_v32, %v2342_v4  ;;  %1610 = vrot.lane.b32.xlu1 %v3112_v15, %s3525_s25  ;;  %v4940_v32 = vld [vmem:[#allocation12_spill] sm:$0xff] }
 0x173   : > { %1608 = vrot.lane.b32.xlu0 %v3111_v8, %s3525_s25  ;;  %3425 = vmatprep.mubr.msk.f32.mxu1 %vm532_vm3, %v2413_v48 }
 0x174   : > { %3426 = vmatmul.mubr.msk.f32.gmra.mxu1 %vm532_vm3, %v2414_v35  ;;  %v448_v0 = vpop.permute.xlu1 %447  ;;  %v508_v35 = vsel %vm496_vm1, %v491_v24, %v4940_v32  ;;  %v4943_v24 = vld [vmem:[#allocation6_spill] sm:$0xff] }
 0x175   : > { %v522_v26 = vsel %vm513_vm2, %v505_v10, %v448_v0  ;;  %v2218_v58 = vpop.permute.xlu0 %2217  ;;  %v4944_v32 = vld [vmem:[#allocation14_spill] sm:$0xff] }
 0x176   : > { %1674 = vrot.lane.b32.xlu1 %v4366_v40, %s3526_s26  ;;  %3341 = vmatprep.mubr.msk.f32.mxu0 %vm532_vm3, %v522_v26  ;;  %v2383_v36 = vsel %vm479_vm0, %v4334_v62, %v2218_v58  ;;  %v3118_v58 = vld [vmem:[%s3587_s24 + $0xe0] sm:$0xff] }
 0x177   : > { %1672 = vrot.lane.b32.xlu0 %v4372_v7, %s3526_s26 }
 0x178   : > { %v2282_v61 = vpop.permute.xlu1 %2281 }
 0x179   : > { %v2220_v55 = vpop.permute.xlu0 %2219  ;;  %v2399_v9 = vsel %vm496_vm1, %v2383_v36, %v2282_v61  ;;  %v3483_v36 = vld [vmem:[%s3587_s24 + $0xa9] sm:$0xff] }
 0x17a   : > { %1738 = vrot.lane.b32.xlu1 %v3114_v28, %s3527_s4  ;;  %v2384_v54 = vsel %vm479_vm0, %v4331_v25, %v2220_v55 }
 0x17b   : > { %1736 = vrot.lane.b32.xlu0 %v3113_v43, %s3527_s4 }
 0x17c   : > { %v2284_v6 = vpop.permute.xlu1 %2283 }
 0x17d   : > { %v450_v37 = vpop.permute.xlu0 %449  ;;  %v2400_v19 = vsel %vm496_vm1, %v2384_v54, %v2284_v6 }
 0x17e   : > { %v523_v22 = vsel %vm513_vm2, %v506_v13, %v450_v37  ;;  %1614 = vrot.lane.b32.xlu1 %v3114_v28, %s3525_s25 }
 0x17f   : > { %1612 = vrot.lane.b32.xlu0 %v3113_v43, %s3525_s25  ;;  %3342 = vmatmul.mubr.msk.f32.gmra.mxu0 %vm532_vm3, %v523_v22 }
 0x180   : > { %v2348_v39 = vpop.permute.xlu1 %2347 }
 0x181   : > { %v2416_v31 = vsel %vm513_vm2, %v2400_v19, %v2348_v39  ;;  %v2346_v3 = vpop.permute.xlu0 %2345  ;;  %v4941_v19 = vld [vmem:[#allocation7_spill] sm:$0xff] }
 0x182   : > { %v2415_v18 = vsel %vm513_vm2, %v2399_v9, %v2346_v3  ;;  %1678 = vrot.lane.b32.xlu1 %v4397_v27, %s3526_s26  ;;  %v492_v39 = vsel %vm479_vm0, %v3483_v36, %v4941_v19  ;;  %v4947_v36 = vld [vmem:[#allocation16_spill] sm:$0xff] }
 0x183   : > { %1676 = vrot.lane.b32.xlu0 %v4403_v23, %s3526_s26  ;;  %3428 = vmatprep.mubr.msk.f32.mxu1 %vm532_vm3, %v2415_v18  ;;  %v4942_v18 = vld [vmem:[#allocation15_spill] sm:$0xff] }
 0x184   : > { %3429 = vmatmul.mubr.msk.f32.gmra.mxu1 %vm532_vm3, %v2416_v31  ;;  %v452_v15 = vpop.permute.xlu1 %451  ;;  %v509_v20 = vsel %vm496_vm1, %v492_v39, %v4942_v18 }
 0x185   : > { %v524_v41 = vsel %vm513_vm2, %v507_v59, %v452_v15  ;;  %v2222_v8 = vpop.permute.xlu0 %2221 }
 0x186   : > { %1742 = vrot.lane.b32.xlu1 %v3116_v16, %s3527_s4  ;;  %3344 = vmatprep.mubr.msk.f32.mxu0 %vm532_vm3, %v524_v41 }
 0x187   : > { %1740 = vrot.lane.b32.xlu0 %v3115_v21, %s3527_s4 }
 0x188   : > { %v2286_v45 = vpop.permute.xlu1 %2285 }
 0x189   : > { %v2224_v63 = vpop.permute.xlu0 %2223 }
 0x18a   : > { %1618 = vrot.lane.b32.xlu1 %v3116_v16, %s3525_s25  ;;  %v2386_v1 = vsel %vm479_vm0, %v4366_v40, %v2224_v63 }
 0x18b   : > { %1616 = vrot.lane.b32.xlu0 %v3115_v21, %s3525_s25 }
 0x18c   : > { %v3331_v56 = vpop.f32.mrf.mxu0  ;;  %v2288_v42 = vpop.permute.xlu1 %2287 }
 0x18d   : > { %v764_v4 = vmul.f32 %v3331_v56, %v3331_v56  ;;  %817 = vst.msk [vmem:[%s4430_s8 + $0x8] sm:$0xff] %vm496_vm1, %v3331_v56  ;;  %v454_v48 = vpop.permute.xlu0 %453  ;;  %v727_v10 = vsel %vm496_vm1, %v3331_v56, 0.0  ;;  %v2402_v28 = vsel %vm496_vm1, %v2386_v1, %v2288_v42  ;;  %v493_v56 = vsel %vm479_vm0, %v3484_v14, %v4943_v24 }
 0x18e   : > { %v525_v51 = vsel %vm513_vm2, %v508_v35, %v454_v48  ;;  %v647_v46 = vpop.f32.mrf.mxu0  ;;  %1682 = vrot.lane.b32.xlu1 %v4181_v11, %s3526_s26  ;;  %v2385_v11 = vsel %vm479_vm0, %v4372_v7, %v2222_v8  ;;  %v510_v35 = vsel %vm496_vm1, %v493_v56, %v4944_v32 }
 0x18f   : > { %v726_v0 = vsel %vm496_vm1, %v647_v46, 0.0  ;;  %v763_v26 = vmul.f32 %v647_v46, %v647_v46  ;;  %816 = vst.msk [vmem:[%s4430_s8] sm:$0xff] %vm496_vm1, %v647_v46  ;;  %1680 = vrot.lane.b32.xlu0 %v4171_v33, %s3526_s26  ;;  %3345 = vmatmul.mubr.msk.f32.gmra.mxu0 %vm532_vm3, %v525_v51  ;;  %v2401_v34 = vsel %vm496_vm1, %v2385_v11, %v2286_v45  ;;  %v780_v6 = vsel %vm496_vm1, %v764_v4, 0.0 }
 0x190   : > { %v728_v61 = vadd.f32 %v727_v10, %v726_v0  ;;  %v3334_v43 = vpop.f32.mrf.mxu0  ;;  %v2352_v55 = vpop.permute.xlu1 %2351 }
 0x191   : > { %v779_v33 = vsel %vm496_vm1, %v763_v26, 0.0  ;;  %819 = vst.msk [vmem:[%s4430_s8 + $0x28] sm:$0xff] %vm496_vm1, %v3334_v43  ;;  %v2418_v38 = vsel %vm513_vm2, %v2402_v28, %v2352_v55  ;;  %v2350_v13 = vpop.permute.xlu0 %2349  ;;  %v766_v9 = vmul.f32 %v3334_v43, %v3334_v43  ;;  %v731_v16 = vsel %vm496_vm1, %v3334_v43, 0.0 }
 0x192   : > { %v781_v37 = vadd.f32 %v780_v6, %v779_v33  ;;  %v2417_v22 = vsel %vm513_vm2, %v2401_v34, %v2350_v13  ;;  %v657_v54 = vpop.f32.mrf.mxu0  ;;  %1746 = vrot.lane.b32.xlu1 %v3118_v58, %s3527_s4  ;;  %v4945_v33 = vld [vmem:[#allocation8_spill] sm:$0xff] }
 0x193   : > { %v729_v31 = vsel %vm496_vm1, %v657_v54, 0.0  ;;  %v765_v3 = vmul.f32 %v657_v54, %v657_v54  ;;  %818 = vst.msk [vmem:[%s4430_s8 + $0x20] sm:$0xff] %vm496_vm1, %v657_v54  ;;  %1744 = vrot.lane.b32.xlu0 %v3117_v47, %s3527_s4  ;;  %3431 = vmatprep.mubr.msk.f32.mxu1 %vm532_vm3, %v2417_v22  ;;  %v784_v8 = vsel %vm496_vm1, %v766_v9, 0.0  ;;  %v4946_v22 = vld [vmem:[#allocation9_spill] sm:$0xff] }
 0x194   : > { %v730_v44 = vadd.f32 %v729_v31, %v728_v61  ;;  %3432 = vmatmul.mubr.msk.f32.gmra.mxu1 %vm532_vm3, %v2418_v38  ;;  %v456_v30 = vpop.permute.xlu1 %455  ;;  %v495_v38 = vsel %vm479_vm0, %v4147_v49, %v4945_v33  ;;  %v494_v54 = vsel %vm479_vm0, %v4135_v2, %v4946_v22  ;;  %v4948_v49 = vld [vmem:[#allocation17_spill] sm:$0xff] }
 0x195   : > { %v782_v57 = vsel %vm496_vm1, %v765_v3, 0.0  ;;  %v526_v59 = vsel %vm513_vm2, %v509_v20, %v456_v30  ;;  %v2226_v15 = vpop.permute.xlu0 %2225  ;;  %v512_v19 = vsel %vm496_vm1, %v495_v38, %v4947_v36  ;;  %v511_v31 = vsel %vm496_vm1, %v494_v54, %v4948_v49 }
 0x196   : > { %v783_v21 = vadd.f32 %v782_v57, %v781_v37  ;;  %3347 = vmatprep.mubr.msk.f32.mxu0 %vm532_vm3, %v526_v59  ;;  %v4480_v41 = vadd.f32 %v731_v16, %v730_v44  ;;  %v2387_v46 = vsel %vm479_vm0, %v4403_v23, %v2226_v15  ;;  %v3054_v16 = vld [vmem:[%s3587_s24 + $0x21] sm:$0xff]  ;;  %v3053_v15 = vld [vmem:[%s3587_s24 + $0x19] sm:$0xff] }
 0x198   : > { %v2290_v45 = vpop.permute.xlu1 %2289  ;;  %v4483_v63 = vadd.f32 %v784_v8, %v783_v21 }
 0x199   : > { %v2228_v53 = vpop.permute.xlu0 %2227  ;;  %v2403_v0 = vsel %vm496_vm1, %v2387_v46, %v2290_v45 }
 0x19a   : > { %v2388_v1 = vsel %vm479_vm0, %v4397_v27, %v2228_v53 }
 0x19c   : > { %v2292_v42 = vpop.permute.xlu1 %2291 }
 0x19d   : > { %v458_v4 = vpop.permute.xlu0 %457  ;;  %v2404_v26 = vsel %vm496_vm1, %v2388_v1, %v2292_v42 }
 0x19e   : > { %v527_v48 = vsel %vm513_vm2, %v510_v35, %v458_v4  ;;  %v3359_v51 = vpop.f32.mrf.mxu1 }
 0x19f   : > { %3348 = vmatmul.mubr.msk.f32.gmra.mxu0 %vm532_vm3, %v527_v48  ;;  %v1370_v10 = vmul.f32 %v3359_v51, %v3359_v51  ;;  %1442 = vrot.lane.b32.xlu1 %v3359_v51, %s3526_s26  ;;  %v1333_v28 = vsel %vm496_vm1, %v3359_v51, 0.0 }
 0x1a0   : > { %v2356_v58 = vpop.permute.xlu1 %2355  ;;  %v1253_v11 = vpop.f32.mrf.mxu1 }
 0x1a1   : > { %v2420_v61 = vsel %vm513_vm2, %v2404_v26, %v2356_v58  ;;  %v1332_v43 = vsel %vm496_vm1, %v1253_v11, 0.0  ;;  %v1369_v55 = vmul.f32 %v1253_v11, %v1253_v11  ;;  %v2354_v47 = vpop.permute.xlu0 %2353  ;;  %1440 = vrot.lane.b32.xlu0 %v1253_v11, %s3526_s26  ;;  %v1386_v13 = vsel %vm496_vm1, %v1370_v10, 0.0 }
 0x1a2   : > { %v1334_v34 = vadd.f32 %v1333_v28, %v1332_v43  ;;  %v2419_v6 = vsel %vm513_vm2, %v2403_v0, %v2354_v47  ;;  %v3055_v47 = vld [vmem:[%s3587_s24 + $0x31] sm:$0xff]  ;;  %s2949_s24 = sshll.u32 %s4960_s13, 1 }
 0x1a3   : > { %v1385_v37 = vsel %vm496_vm1, %v1369_v55, 0.0  ;;  %3434 = vmatprep.mubr.msk.f32.mxu1 %vm532_vm3, %v2419_v6  ;;  %s214_s25 = sadd.s32 %s2949_s24, %s4964_s12 }
 0x1a4   : > { %v1387_v39 = vadd.f32 %v1386_v13, %v1385_v37  ;;  %3435 = vmatmul.mubr.msk.f32.gmra.mxu1 %vm532_vm3, %v2420_v61  ;;  %v462_v9 = vpop.permute.xlu1 %461 }
 0x1a5   : > { %v529_v3 = vsel %vm513_vm2, %v512_v19, %v462_v9  ;;  %v460_v18 = vpop.permute.xlu0 %459 }
 0x1a6   : > { %v528_v20 = vsel %vm513_vm2, %v511_v31, %v460_v18 }
 0x1a7   : > { %3350 = vmatprep.mubr.msk.f32.mxu0 %vm532_vm3, %v528_v20 }
 0x1a8   : > { %3351 = vmatmul.mubr.msk.f32.gmra.mxu0 %vm532_vm3, %v529_v3  ;;  %v1591_v2 = vpop.permute.xlu1 %1590 }
 0x1a9   : > { %v1589_v44 = vpop.permute.xlu0 %1588  ;;  %v1765_v24 = vsel %vm479_vm0, %v3054_v16, %v1591_v2 }
 0x1aa   : > { %v3362_v30 = vpop.f32.mrf.mxu1  ;;  %v1764_v32 = vsel %vm479_vm0, %v3053_v15, %v1589_v44 }
 0x1ab   : > { %1446 = vrot.lane.b32.xlu1 %v3362_v30, %s3526_s26  ;;  %v1372_v21 = vmul.f32 %v3362_v30, %v3362_v30  ;;  %v1337_v56 = vsel %vm496_vm1, %v3362_v30, 0.0 }
 0x1ac   : > { %v1655_v57 = vpop.permute.xlu1 %1654  ;;  %v1263_v59 = vpop.f32.mrf.mxu1 }
 0x1ad   : > { %v1335_v8 = vsel %vm496_vm1, %v1263_v59, 0.0  ;;  %v1371_v45 = vmul.f32 %v1263_v59, %v1263_v59  ;;  %v1653_v53 = vpop.permute.xlu0 %1652  ;;  %1444 = vrot.lane.b32.xlu0 %v1263_v59, %s3526_s26  ;;  %v1781_v35 = vsel %vm496_vm1, %v1765_v24, %v1655_v57  ;;  %v1390_v46 = vsel %vm496_vm1, %v1372_v21, 0.0 }
 0x1ae   : > { %v1336_v14 = vadd.f32 %v1335_v8, %v1334_v34  ;;  %v1780_v1 = vsel %vm496_vm1, %v1764_v32, %v1653_v53 }
 0x1af   : > { %v1388_v42 = vsel %vm496_vm1, %v1371_v45, 0.0 }
 0x1b0   : > { %v1389_v4 = vadd.f32 %v1388_v42, %v1387_v39  ;;  %v1719_v48 = vpop.permute.xlu1 %1718  ;;  %v1338_v51 = vadd.f32 %v1337_v56, %v1336_v14 }
 0x1b1   : > { %v1797_v10 = vsel %vm513_vm2, %v1781_v35, %v1719_v48  ;;  %v1717_v0 = vpop.permute.xlu0 %1716 }
 0x1b2   : > { %v1796_v26 = vsel %vm513_vm2, %v1780_v1, %v1717_v0  ;;  %v1391_v58 = vadd.f32 %v1390_v46, %v1389_v4 }
 0x1b3   : > { %3385 = vmatprep.mubr.msk.f32.mxu0 %vm532_vm3, %v1796_v26 }
 0x1b4   : > { %3386 = vmatmul.mubr.msk.f32.vlgmr.msra.gmra.mxu0 %vm532_vm3, %v1797_v10  ;;  %v1595_v11 = vpop.permute.xlu1 %1594 }
 0x1b5   : > { %v1593_v28 = vpop.permute.xlu0 %1592  ;;  %v1767_v37 = vsel %vm479_vm0, %v4242_v5, %v1595_v11 }
 0x1b6   : > { %v3365_v61 = vpop.f32.mrf.mxu1  ;;  %v1766_v36 = vsel %vm479_vm0, %v3055_v47, %v1593_v28 }
 0x1b7   : > { %1450 = vrot.lane.b32.xlu1 %v3365_v61, %s3526_s26  ;;  %v1374_v34 = vmul.f32 %v3365_v61, %v3365_v61  ;;  %v1341_v22 = vsel %vm496_vm1, %v3365_v61, 0.0 }
 0x1b8   : > { %v1659_v43 = vpop.permute.xlu1 %1658  ;;  %v1273_v55 = vpop.f32.mrf.mxu1 }
 0x1b9   : > { %v1339_v6 = vsel %vm496_vm1, %v1273_v55, 0.0  ;;  %v1373_v33 = vmul.f32 %v1273_v55, %v1273_v55  ;;  %v1657_v38 = vpop.permute.xlu0 %1656  ;;  %1448 = vrot.lane.b32.xlu0 %v1273_v55, %s3526_s26  ;;  %v1783_v19 = vsel %vm496_vm1, %v1767_v37, %v1659_v43  ;;  %v1394_v31 = vsel %vm496_vm1, %v1374_v34, 0.0 }
 0x1ba   : > { %v1340_v13 = vadd.f32 %v1339_v6, %v1338_v51  ;;  %v1782_v3 = vsel %vm496_vm1, %v1766_v36, %v1657_v38 }
 0x1bb   : > { %v1392_v54 = vsel %vm496_vm1, %v1373_v33, 0.0 }
 0x1bc   : > { %v1393_v39 = vadd.f32 %v1392_v54, %v1391_v58  ;;  %v1723_v9 = vpop.permute.xlu1 %1722  ;;  %v1342_v49 = vadd.f32 %v1341_v22, %v1340_v13 }
 0x1bd   : > { %v1799_v18 = vsel %vm513_vm2, %v1783_v19, %v1723_v9  ;;  %v1721_v20 = vpop.permute.xlu0 %1720 }
 0x1be   : > { %v1798_v5 = vsel %vm513_vm2, %v1782_v3, %v1721_v20  ;;  %v1395_v2 = vadd.f32 %v1394_v31, %v1393_v39 }
 0x1bf   : > { %3388 = vmatprep.mubr.msk.f32.mxu0 %vm532_vm3, %v1798_v5 }
 0x1c0   : > { %3389 = vmatmul.mubr.msk.f32.gmra.mxu0 %vm532_vm3, %v1799_v18  ;;  %v1599_v44 = vpop.permute.xlu1 %1598 }
 0x1c1   : > { %v1597_v30 = vpop.permute.xlu0 %1596  ;;  %v1769_v14 = vsel %vm479_vm0, %v4238_v52, %v1599_v44 }
 0x1c2   : > { %v3368_v16 = vpop.f32.mrf.mxu1  ;;  %v1768_v42 = vsel %vm479_vm0, %v4245_v50, %v1597_v30 }
 0x1c3   : > { %1454 = vrot.lane.b32.xlu1 %v3368_v16, %s3526_s26  ;;  %v1376_v15 = vmul.f32 %v3368_v16, %v3368_v16  ;;  %v1345_v24 = vsel %vm496_vm1, %v3368_v16, 0.0 }
 0x1c4   : > { %v1663_v57 = vpop.permute.xlu1 %1662  ;;  %v1283_v59 = vpop.f32.mrf.mxu1 }
 0x1c5   : > { %v1343_v21 = vsel %vm496_vm1, %v1283_v59, 0.0  ;;  %v1375_v8 = vmul.f32 %v1283_v59, %v1283_v59  ;;  %v1661_v45 = vpop.permute.xlu0 %1660  ;;  %1452 = vrot.lane.b32.xlu0 %v1283_v59, %s3526_s26  ;;  %v1785_v32 = vsel %vm496_vm1, %v1769_v14, %v1663_v57  ;;  %v1398_v51 = vsel %vm496_vm1, %v1376_v15, 0.0 }
 0x1c6   : > { %v1344_v53 = vadd.f32 %v1343_v21, %v1342_v49  ;;  %v1784_v46 = vsel %vm496_vm1, %v1768_v42, %v1661_v45 }
 0x1c7   : > { %v1396_v56 = vsel %vm496_vm1, %v1375_v8, 0.0 }
 0x1c8   : > { %v1397_v35 = vadd.f32 %v1396_v56, %v1395_v2  ;;  %v1727_v4 = vpop.permute.xlu1 %1726  ;;  %v1346_v48 = vadd.f32 %v1345_v24, %v1344_v53 }
 0x1c9   : > { %v1801_v1 = vsel %vm513_vm2, %v1785_v32, %v1727_v4  ;;  %v1725_v10 = vpop.permute.xlu0 %1724 }
 0x1ca   : > { %v1800_v52 = vsel %vm513_vm2, %v1784_v46, %v1725_v10  ;;  %v1399_v0 = vadd.f32 %v1398_v51, %v1397_v35 }
 0x1cb   : > { %3391 = vmatprep.mubr.msk.f32.mxu0 %vm532_vm3, %v1800_v52 }
 0x1cc   : > { %3392 = vmatmul.mubr.msk.f32.gmra.mxu0 %vm532_vm3, %v1801_v1  ;;  %v1603_v50 = vpop.permute.xlu1 %1602 }
 0x1cd   : > { %v1601_v26 = vpop.permute.xlu0 %1600  ;;  %v1771_v6 = vsel %vm479_vm0, %v4267_v17, %v1603_v50 }
 0x1ce   : > { %v3371_v58 = vpop.f32.mrf.mxu1  ;;  %v1770_v13 = vsel %vm479_vm0, %v4271_v60, %v1601_v26 }
 0x1cf   : > { %1458 = vrot.lane.b32.xlu1 %v3371_v58, %s3526_s26  ;;  %v1378_v61 = vmul.f32 %v3371_v58, %v3371_v58  ;;  %v1349_v33 = vsel %vm496_vm1, %v3371_v58, 0.0 }
 0x1d0   : > { %v1667_v11 = vpop.permute.xlu1 %1666  ;;  %v1293_v28 = vpop.f32.mrf.mxu1 }
 0x1d1   : > { %v1347_v43 = vsel %vm496_vm1, %v1293_v28, 0.0  ;;  %v1377_v55 = vmul.f32 %v1293_v28, %v1293_v28  ;;  %v1665_v47 = vpop.permute.xlu0 %1664  ;;  %1456 = vrot.lane.b32.xlu0 %v1293_v28, %s3526_s26  ;;  %v1787_v37 = vsel %vm496_vm1, %v1771_v6, %v1667_v11  ;;  %v1402_v19 = vsel %vm496_vm1, %v1378_v61, 0.0 }
 0x1d2   : > { %v1348_v34 = vadd.f32 %v1347_v43, %v1346_v48  ;;  %v1786_v39 = vsel %vm496_vm1, %v1770_v13, %v1665_v47 }
 0x1d3   : > { %v1400_v38 = vsel %vm496_vm1, %v1377_v55, 0.0 }
 0x1d4   : > { %v1401_v22 = vadd.f32 %v1400_v38, %v1399_v0  ;;  %v1731_v54 = vpop.permute.xlu1 %1730  ;;  %v1350_v36 = vadd.f32 %v1349_v33, %v1348_v34 }
 0x1d5   : > { %v1803_v9 = vsel %vm513_vm2, %v1787_v37, %v1731_v54  ;;  %v1729_v49 = vpop.permute.xlu0 %1728 }
 0x1d6   : > { %v1802_v17 = vsel %vm513_vm2, %v1786_v39, %v1729_v49  ;;  %v1403_v31 = vadd.f32 %v1402_v19, %v1401_v22 }
 0x1d7   : > { %3394 = vmatprep.mubr.msk.f32.mxu0 %vm532_vm3, %v1802_v17 }
 0x1d8   : > { %3395 = vmatmul.mubr.msk.f32.gmra.mxu0 %vm532_vm3, %v1803_v9  ;;  %v1607_v60 = vpop.permute.xlu1 %1606 }
 0x1d9   : > { %v1605_v3 = vpop.permute.xlu0 %1604  ;;  %v1773_v59 = vsel %vm479_vm0, %v4291_v29, %v1607_v60 }
 0x1da   : > { %v3374_v18 = vpop.f32.mrf.mxu1  ;;  %v1772_v8 = vsel %vm479_vm0, %v4297_v12, %v1605_v3 }
 0x1db   : > { %1462 = vrot.lane.b32.xlu1 %v3374_v18, %s3526_s26  ;;  %v1380_v2 = vmul.f32 %v3374_v18, %v3374_v18  ;;  %v1353_v15 = vsel %vm496_vm1, %v3374_v18, 0.0 }
 0x1dc   : > { %v1671_v20 = vpop.permute.xlu1 %1670  ;;  %v1303_v5 = vpop.f32.mrf.mxu1 }
 0x1dd   : > { %v1351_v44 = vsel %vm496_vm1, %v1303_v5, 0.0  ;;  %v1379_v30 = vmul.f32 %v1303_v5, %v1303_v5  ;;  %v1669_v16 = vpop.permute.xlu0 %1668  ;;  %1460 = vrot.lane.b32.xlu0 %v1303_v5, %s3526_s26  ;;  %v1789_v45 = vsel %vm496_vm1, %v1773_v59, %v1671_v20  ;;  %v1406_v56 = vsel %vm496_vm1, %v1380_v2, 0.0 }
 0x1de   : > { %v1352_v57 = vadd.f32 %v1351_v44, %v1350_v36  ;;  %v1788_v42 = vsel %vm496_vm1, %v1772_v8, %v1669_v16 }
 0x1df   : > { %v1404_v21 = vsel %vm496_vm1, %v1379_v30, 0.0 }
 0x1e0   : > { %v1405_v53 = vadd.f32 %v1404_v21, %v1403_v31  ;;  %v1735_v14 = vpop.permute.xlu1 %1734  ;;  %v1354_v24 = vadd.f32 %v1353_v15, %v1352_v57 }
 0x1e1   : > { %v1805_v32 = vsel %vm513_vm2, %v1789_v45, %v1735_v14  ;;  %v1733_v35 = vpop.permute.xlu0 %1732 }
 0x1e2   : > { %v1804_v29 = vsel %vm513_vm2, %v1788_v42, %v1733_v35  ;;  %v1407_v4 = vadd.f32 %v1406_v56, %v1405_v53 }
 0x1e3   : > { %3397 = vmatprep.mubr.msk.f32.mxu0 %vm532_vm3, %v1804_v29 }
 0x1e4   : > { %3398 = vmatmul.mubr.msk.f32.gmra.mxu0 %vm532_vm3, %v1805_v32  ;;  %v1611_v12 = vpop.permute.xlu1 %1610 }
 0x1e5   : > { %v1609_v48 = vpop.permute.xlu0 %1608  ;;  %v1775_v58 = vsel %vm479_vm0, %v4331_v25, %v1611_v12 }
 0x1e6   : > { %v3377_v51 = vpop.f32.mrf.mxu1  ;;  %v1774_v61 = vsel %vm479_vm0, %v4334_v62, %v1609_v48 }
 0x1e7   : > { %1466 = vrot.lane.b32.xlu1 %v3377_v51, %s3526_s26  ;;  %v1382_v10 = vmul.f32 %v3377_v51, %v3377_v51  ;;  %v1357_v11 = vsel %vm496_vm1, %v3377_v51, 0.0 }
 0x1e8   : > { %v1675_v46 = vpop.permute.xlu1 %1674  ;;  %v1313_v1 = vpop.f32.mrf.mxu1 }
 0x1e9   : > { %v1355_v52 = vsel %vm496_vm1, %v1313_v1, 0.0  ;;  %v1381_v0 = vmul.f32 %v1313_v1, %v1313_v1  ;;  %v1673_v50 = vpop.permute.xlu0 %1672  ;;  %1464 = vrot.lane.b32.xlu0 %v1313_v1, %s3526_s26  ;;  %v1791_v43 = vsel %vm496_vm1, %v1775_v58, %v1675_v46  ;;  %v1410_v6 = vsel %vm496_vm1, %v1382_v10, 0.0 }
 0x1ea   : > { %v1356_v26 = vadd.f32 %v1355_v52, %v1354_v24  ;;  %v1790_v33 = vsel %vm496_vm1, %v1774_v61, %v1673_v50 }
 0x1eb   : > { %v1408_v28 = vsel %vm496_vm1, %v1381_v0, 0.0 }
 0x1ec   : > { %v1409_v55 = vadd.f32 %v1408_v28, %v1407_v4  ;;  %v1739_v47 = vpop.permute.xlu1 %1738  ;;  %v1358_v34 = vadd.f32 %v1357_v11, %v1356_v26 }
 0x1ed   : > { %v1807_v38 = vsel %vm513_vm2, %v1791_v43, %v1739_v47  ;;  %v1737_v13 = vpop.permute.xlu0 %1736 }
 0x1ee   : > { %v1806_v25 = vsel %vm513_vm2, %v1790_v33, %v1737_v13  ;;  %v1411_v37 = vadd.f32 %v1410_v6, %v1409_v55 }
 0x1ef   : > { %3400 = vmatprep.mubr.msk.f32.mxu0 %vm532_vm3, %v1806_v25 }
 0x1f0   : > { %3401 = vmatmul.mubr.msk.f32.gmra.mxu0 %vm532_vm3, %v1807_v38  ;;  %v1615_v62 = vpop.permute.xlu1 %1614 }
 0x1f1   : > { %v1613_v22 = vpop.permute.xlu0 %1612  ;;  %v1777_v60 = vsel %vm479_vm0, %v4366_v40, %v1615_v62 }
 0x1f2   : > { %v3380_v54 = vpop.f32.mrf.mxu1  ;;  %v1776_v20 = vsel %vm479_vm0, %v4372_v7, %v1613_v22 }
 0x1f3   : > { %1470 = vrot.lane.b32.xlu1 %v3380_v54, %s3526_s26  ;;  %v1384_v39 = vmul.f32 %v3380_v54, %v3380_v54  ;;  %v1361_v3 = vsel %vm496_vm1, %v3380_v54, 0.0 }
 0x1f4   : > { %v1679_v36 = vpop.permute.xlu1 %1678  ;;  %v1323_v19 = vpop.f32.mrf.mxu1 }
 0x1f5   : > { %v1359_v9 = vsel %vm496_vm1, %v1323_v19, 0.0  ;;  %v1383_v49 = vmul.f32 %v1323_v19, %v1323_v19  ;;  %v1677_v17 = vpop.permute.xlu0 %1676  ;;  %1468 = vrot.lane.b32.xlu0 %v1323_v19, %s3526_s26  ;;  %v1793_v5 = vsel %vm496_vm1, %v1777_v60, %v1679_v36  ;;  %v1414_v16 = vsel %vm496_vm1, %v1384_v39, 0.0 }
 0x1f6   : > { %v1360_v31 = vadd.f32 %v1359_v9, %v1358_v34  ;;  %v1792_v57 = vsel %vm496_vm1, %v1776_v20, %v1677_v17 }
 0x1f7   : > { %v1412_v18 = vsel %vm496_vm1, %v1383_v49, 0.0 }
 0x1f8   : > { %v4628_v2 = vadd.f32 %v1361_v3, %v1360_v31  ;;  %v1413_v44 = vadd.f32 %v1412_v18, %v1411_v37  ;;  %v1743_v30 = vpop.permute.xlu1 %1742 }
 0x1f9   : > { %v1809_v59 = vsel %vm513_vm2, %v1793_v5, %v1743_v30  ;;  %v1741_v40 = vpop.permute.xlu0 %1740 }
 0x1fa   : > { %v4633_v15 = vadd.f32 %v1414_v16, %v1413_v44  ;;  %v1808_v21 = vsel %vm513_vm2, %v1792_v57, %v1741_v40 }
 0x1fb   : > { %3403 = vmatprep.mubr.msk.f32.mxu0 %vm532_vm3, %v1808_v21 }
 0x1fc   : > { %3404 = vmatmul.mubr.msk.f32.gmra.mxu0 %vm532_vm3, %v1809_v59  ;;  %v1619_v7 = vpop.permute.xlu1 %1618 }
 0x1fd   : > { %v1617_v8 = vpop.permute.xlu0 %1616  ;;  %v1779_v4 = vsel %vm479_vm0, %v4397_v27, %v1619_v7 }
 0x1fe   : > { %v3415_v45 = vpop.f32.mrf.mxu1  ;;  %v1778_v51 = vsel %vm479_vm0, %v4403_v23, %v1617_v8 }
 0x1ff   : > { %v2655_v53 = vmul.f32 %v3415_v45, %v3415_v45  ;;  %2727 = vrot.lane.b32.xlu1 %v3415_v45, %s3526_s26  ;;  %v2618_v56 = vsel %vm496_vm1, %v3415_v45, 0.0 }
 0x200   : > { %v1683_v14 = vpop.permute.xlu1 %1682  ;;  %v2538_v24 = vpop.f32.mrf.mxu1 }
 0x201   : > { %v2617_v42 = vsel %vm496_vm1, %v2538_v24, 0.0  ;;  %v2654_v32 = vmul.f32 %v2538_v24, %v2538_v24  ;;  %v1681_v35 = vpop.permute.xlu0 %1680  ;;  %2725 = vrot.lane.b32.xlu0 %v2538_v24, %s3526_s26  ;;  %v2671_v12 = vsel %vm496_vm1, %v2655_v53, 0.0  ;;  %v1795_v46 = vsel %vm496_vm1, %v1779_v4, %v1683_v14 }
 0x202   : > { %v2619_v29 = vadd.f32 %v2618_v56, %v2617_v42  ;;  %v1794_v52 = vsel %vm496_vm1, %v1778_v51, %v1681_v35 }
 0x203   : > { %v2670_v48 = vsel %vm496_vm1, %v2654_v32, 0.0 }
 0x204   : > { %v2672_v1 = vadd.f32 %v2671_v12, %v2670_v48  ;;  %v1747_v10 = vpop.permute.xlu1 %1746 }
 0x205   : > { %v1811_v0 = vsel %vm513_vm2, %v1795_v46, %v1747_v10  ;;  %v1745_v50 = vpop.permute.xlu0 %1744 }
 0x206   : > { %v1810_v26 = vsel %vm513_vm2, %v1794_v52, %v1745_v50 }
 0x207   : > { %3406 = vmatprep.mubr.msk.f32.mxu0 %vm532_vm3, %v1810_v26 }
 0x208   : > { %3407 = vmatmul.mubr.msk.f32.gmra.mxu0 %vm532_vm3, %v1811_v0 }
 0x20a   : > { %v3418_v27 = vpop.f32.mrf.mxu1 }
 0x20b   : > { %2731 = vrot.lane.b32.xlu1 %v3418_v27, %s3526_s26  ;;  %v2657_v58 = vmul.f32 %v3418_v27, %v3418_v27  ;;  %v2622_v43 = vsel %vm496_vm1, %v3418_v27, 0.0 }
 0x20c   : > { %v2548_v23 = vpop.f32.mrf.mxu1 }
 0x20d   : > { %v2620_v11 = vsel %vm496_vm1, %v2548_v23, 0.0  ;;  %v2656_v28 = vmul.f32 %v2548_v23, %v2548_v23  ;;  %2729 = vrot.lane.b32.xlu0 %v2548_v23, %s3526_s26  ;;  %v2675_v6 = vsel %vm496_vm1, %v2657_v58, 0.0 }
 0x20e   : > { %v2621_v61 = vadd.f32 %v2620_v11, %v2619_v29 }
 0x20f   : > { %v2673_v55 = vsel %vm496_vm1, %v2656_v28, 0.0 }
 0x210   : > { %v2674_v47 = vadd.f32 %v2673_v55, %v2672_v1  ;;  %v2623_v34 = vadd.f32 %v2622_v43, %v2621_v61 }
 0x211   : > { %v1443_v33 = vpop.permute.xlu1 %1442 }
 0x212   : > { %1490 = vst.msk [vmem:[%s4430_s8 + $0x8] sm:$0xff] %vm1488_vm4, %v1443_v33  ;;  %v2676_v38 = vadd.f32 %v2675_v6, %v2674_v47 }
 0x213   : > { %v1441_v13 = vpop.permute.xlu0 %1440 }
 0x214   : > { %1489 = vst.msk [vmem:[%s4430_s8] sm:$0xff] %vm1488_vm4, %v1441_v13 }
 0x217   : > { %v3421_v25 = vpop.f32.mrf.mxu1 }
 0x218   : > { %2735 = vrot.lane.b32.xlu1 %v3421_v25, %s3526_s26  ;;  %v2659_v62 = vmul.f32 %v3421_v25, %v3421_v25  ;;  %v2626_v19 = vsel %vm496_vm1, %v3421_v25, 0.0 }
 0x219   : > { %v2558_v37 = vpop.f32.mrf.mxu1 }
 0x21a   : > { %v2624_v22 = vsel %vm496_vm1, %v2558_v37, 0.0  ;;  %v2658_v54 = vmul.f32 %v2558_v37, %v2558_v37  ;;  %2733 = vrot.lane.b32.xlu0 %v2558_v37, %s3526_s26  ;;  %v2679_v31 = vsel %vm496_vm1, %v2659_v62, 0.0 }
 0x21b   : > { %v2625_v36 = vadd.f32 %v2624_v22, %v2623_v34 }
 0x21c   : > { %v2677_v39 = vsel %vm496_vm1, %v2658_v54, 0.0 }
 0x21d   : > { %v2678_v9 = vadd.f32 %v2677_v39, %v2676_v38  ;;  %v1447_v49 = vpop.permute.xlu1 %1446  ;;  %v2627_v17 = vadd.f32 %v2626_v19, %v2625_v36 }
 0x21e   : > { %1492 = vst.msk [vmem:[%s4430_s8 + $0x28] sm:$0xff] %vm1488_vm4, %v1447_v49 }
 0x21f   : > { %v3337_v60 = vpop.f32.mrf.mxu0  ;;  %v1445_v3 = vpop.permute.xlu0 %1444  ;;  %v2680_v18 = vadd.f32 %v2679_v31, %v2678_v9 }
 0x220   : > { %821 = vst.msk [vmem:[%s4430_s8 + $0x48] sm:$0xff] %vm496_vm1, %v3337_v60  ;;  %v768_v5 = vmul.f32 %v3337_v60, %v3337_v60  ;;  %v735_v57 = vsel %vm496_vm1, %v3337_v60, 0.0 }
 0x221   : > { %1491 = vst.msk [vmem:[%s4430_s8 + $0x20] sm:$0xff] %vm1488_vm4, %v1445_v3  ;;  %v667_v20 = vpop.f32.mrf.mxu0 }
 0x222   : > { %v733_v44 = vsel %vm496_vm1, %v667_v20, 0.0  ;;  %v767_v30 = vmul.f32 %v667_v20, %v667_v20  ;;  %820 = vst.msk [vmem:[%s4430_s8 + $0x40] sm:$0xff] %vm496_vm1, %v667_v20  ;;  %v788_v8 = vsel %vm496_vm1, %v768_v5, 0.0 }
 0x223   : > { %v734_v16 = vadd.f32 %v733_v44, %v4480_v41 }
 0x224   : > { %v786_v59 = vsel %vm496_vm1, %v767_v30, 0.0  ;;  %v3424_v40 = vpop.f32.mrf.mxu1 }
 0x225   : > { %v787_v21 = vadd.f32 %v786_v59, %v4483_v63  ;;  %2739 = vrot.lane.b32.xlu1 %v3424_v40, %s3526_s26  ;;  %v736_v7 = vadd.f32 %v735_v57, %v734_v16  ;;  %v2661_v53 = vmul.f32 %v3424_v40, %v3424_v40  ;;  %v2630_v42 = vsel %vm496_vm1, %v3424_v40, 0.0 }
 0x226   : > { %v2568_v45 = vpop.f32.mrf.mxu1 }
 0x227   : > { %v2628_v14 = vsel %vm496_vm1, %v2568_v45, 0.0  ;;  %v2660_v41 = vmul.f32 %v2568_v45, %v2568_v45  ;;  %2737 = vrot.lane.b32.xlu0 %v2568_v45, %s3526_s26  ;;  %v789_v24 = vadd.f32 %v788_v8, %v787_v21  ;;  %v2683_v4 = vsel %vm496_vm1, %v2661_v53, 0.0 }
 0x228   : > { %v2629_v56 = vadd.f32 %v2628_v14, %v2627_v17 }
 0x229   : > { %v2681_v63 = vsel %vm496_vm1, %v2660_v41, 0.0  ;;  %v1451_v32 = vpop.permute.xlu1 %1450 }
 0x22a   : > { %v2682_v35 = vadd.f32 %v2681_v63, %v2680_v18  ;;  %1494 = vst.msk [vmem:[%s4430_s8 + $0x48] sm:$0xff] %vm1488_vm4, %v1451_v32  ;;  %v2631_v29 = vadd.f32 %v2630_v42, %v2629_v56 }
 0x22b   : > { %v1449_v12 = vpop.permute.xlu0 %1448 }
 0x22c   : > { %1493 = vst.msk [vmem:[%s4430_s8 + $0x40] sm:$0xff] %vm1488_vm4, %v1449_v12  ;;  %v2684_v48 = vadd.f32 %v2683_v4, %v2682_v35 }
 0x22f   : > { %v3340_v51 = vpop.f32.mrf.mxu0 }
 0x230   : > { %823 = vst.msk [vmem:[%s4430_s8 + $0x68] sm:$0xff] %vm496_vm1, %v3340_v51  ;;  %v770_v1 = vmul.f32 %v3340_v51, %v3340_v51  ;;  %v739_v50 = vsel %vm496_vm1, %v3340_v51, 0.0 }
 0x231   : > { %v677_v46 = vpop.f32.mrf.mxu0 }
 0x232   : > { %v737_v10 = vsel %vm496_vm1, %v677_v46, 0.0  ;;  %v769_v52 = vmul.f32 %v677_v46, %v677_v46  ;;  %822 = vst.msk [vmem:[%s4430_s8 + $0x60] sm:$0xff] %vm496_vm1, %v677_v46  ;;  %v792_v28 = vsel %vm496_vm1, %v770_v1, 0.0 }
 0x233   : > { %v738_v0 = vadd.f32 %v737_v10, %v736_v7 }
 0x234   : > { %v790_v26 = vsel %vm496_vm1, %v769_v52, 0.0  ;;  %v3427_v27 = vpop.f32.mrf.mxu1 }
 0x235   : > { %v791_v23 = vadd.f32 %v790_v26, %v789_v24  ;;  %2743 = vrot.lane.b32.xlu1 %v3427_v27, %s3526_s26  ;;  %v1455_v58 = vpop.permute.xlu1 %1454  ;;  %v740_v11 = vadd.f32 %v739_v50, %v738_v0  ;;  %v2663_v43 = vmul.f32 %v3427_v27, %v3427_v27  ;;  %v2634_v38 = vsel %vm496_vm1, %v3427_v27, 0.0 }
 0x236   : > { %1496 = vst.msk [vmem:[%s4430_s8 + $0x68] sm:$0xff] %vm1488_vm4, %v1455_v58  ;;  %v2578_v61 = vpop.f32.mrf.mxu1 }
 0x237   : > { %v2632_v55 = vsel %vm496_vm1, %v2578_v61, 0.0  ;;  %v2662_v47 = vmul.f32 %v2578_v61, %v2578_v61  ;;  %2741 = vrot.lane.b32.xlu0 %v2578_v61, %s3526_s26  ;;  %v1453_v34 = vpop.permute.xlu0 %1452  ;;  %v793_v6 = vadd.f32 %v792_v28, %v791_v23  ;;  %v2687_v62 = vsel %vm496_vm1, %v2663_v43, 0.0 }
 0x238   : > { %v2633_v33 = vadd.f32 %v2632_v55, %v2631_v29  ;;  %1495 = vst.msk [vmem:[%s4430_s8 + $0x60] sm:$0xff] %vm1488_vm4, %v1453_v34 }
 0x239   : > { %v2685_v13 = vsel %vm496_vm1, %v2662_v47, 0.0 }
 0x23a   : > { %v2686_v25 = vadd.f32 %v2685_v13, %v2684_v48  ;;  %v2635_v37 = vadd.f32 %v2634_v38, %v2633_v33 }
 0x23c   : > { %v2688_v22 = vadd.f32 %v2687_v62, %v2686_v25 }
 0x23f   : > { %v3343_v54 = vpop.f32.mrf.mxu0 }
 0x240   : > { %825 = vst.msk [vmem:[%s4430_s8 + $0x88] sm:$0xff] %vm496_vm1, %v3343_v54  ;;  %v772_v39 = vmul.f32 %v3343_v54, %v3343_v54  ;;  %v743_v60 = vsel %vm496_vm1, %v3343_v54, 0.0 }
 0x241   : > { %v687_v36 = vpop.f32.mrf.mxu0  ;;  %v1459_v19 = vpop.permute.xlu1 %1458 }
 0x242   : > { %v741_v9 = vsel %vm496_vm1, %v687_v36, 0.0  ;;  %v771_v49 = vmul.f32 %v687_v36, %v687_v36  ;;  %824 = vst.msk [vmem:[%s4430_s8 + $0x80] sm:$0xff] %vm496_vm1, %v687_v36  ;;  %v796_v44 = vsel %vm496_vm1, %v772_v39, 0.0  ;;  %v1363_v39 = vrot.slane %v4628_v2, 4 }
 0x243   : > { %1498 = vst.msk [vmem:[%s4430_s8 + $0x88] sm:$0xff] %vm1488_vm4, %v1459_v19  ;;  %v742_v17 = vadd.f32 %v741_v9, %v740_v11  ;;  %v1457_v31 = vpop.permute.xlu0 %1456 }
 0x244   : > { %v794_v3 = vsel %vm496_vm1, %v771_v49, 0.0  ;;  %v3430_v18 = vpop.f32.mrf.mxu1  ;;  %1497 = vst.msk [vmem:[%s4430_s8 + $0x80] sm:$0xff] %vm1488_vm4, %v1457_v31 }
 0x245   : > { %v795_v20 = vadd.f32 %v794_v3, %v793_v6  ;;  %2747 = vrot.lane.b32.xlu1 %v3430_v18, %s3526_s26  ;;  %v744_v5 = vadd.f32 %v743_v60, %v742_v17  ;;  %v2665_v16 = vmul.f32 %v3430_v18, %v3430_v18  ;;  %v2638_v7 = vsel %vm496_vm1, %v3430_v18, 0.0 }
 0x246   : > { %v2588_v30 = vpop.f32.mrf.mxu1  ;;  %v1416_v18 = vrot.slane %v4633_v15, 4 }
 0x247   : > { %v2636_v57 = vsel %vm496_vm1, %v2588_v30, 0.0  ;;  %v2664_v59 = vmul.f32 %v2588_v30, %v2588_v30  ;;  %2745 = vrot.lane.b32.xlu0 %v2588_v30, %s3526_s26  ;;  %v797_v40 = vadd.f32 %v796_v44, %v795_v20  ;;  %v2691_v14 = vsel %vm496_vm1, %v2665_v16, 0.0 }
 0x248   : > { %v2637_v21 = vadd.f32 %v2636_v57, %v2635_v37  ;;  %v1364_v57 = vadd.f32 %v1363_v39, %v4628_v2 }
 0x249   : > { %v2689_v8 = vsel %vm496_vm1, %v2664_v59, 0.0 }
 0x24a   : > { %v2690_v45 = vadd.f32 %v2689_v8, %v2688_v22  ;;  %v2639_v53 = vadd.f32 %v2638_v7, %v2637_v21 }
 0x24c   : > { %v2692_v41 = vadd.f32 %v2691_v14, %v2690_v45 }
 0x24d   : > { %v1463_v56 = vpop.permute.xlu1 %1462 }
 0x24f   : > { %v3346_v24 = vpop.f32.mrf.mxu0  ;;  %v1461_v32 = vpop.permute.xlu0 %1460 }
 0x250   : > { %827 = vst.msk [vmem:[%s4430_s8 + $0xa8] sm:$0xff] %vm496_vm1, %v3346_v24  ;;  %v774_v63 = vmul.f32 %v3346_v24, %v3346_v24  ;;  %v747_v12 = vsel %vm496_vm1, %v3346_v24, 0.0 }
 0x251   : > { %1500 = vst.msk [vmem:[%s4430_s8 + $0xa8] sm:$0xff] %vm1488_vm4, %v1463_v56  ;;  %v697_v42 = vpop.f32.mrf.mxu0 }
 0x252   : > { %v745_v35 = vsel %vm496_vm1, %v697_v42, 0.0  ;;  %v773_v29 = vmul.f32 %v697_v42, %v697_v42  ;;  %826 = vst.msk [vmem:[%s4430_s8 + $0xa0] sm:$0xff] %vm496_vm1, %v697_v42  ;;  %v800_v10 = vsel %vm496_vm1, %v774_v63, 0.0  ;;  %v1365_v63 = vrot.slane %v1364_v57, 2 }
 0x253   : > { %v746_v4 = vadd.f32 %v745_v35, %v744_v5  ;;  %1499 = vst.msk [vmem:[%s4430_s8 + $0xa0] sm:$0xff] %vm1488_vm4, %v1461_v32 }
 0x254   : > { %v798_v48 = vsel %vm496_vm1, %v773_v29, 0.0  ;;  %v3433_v51 = vpop.f32.mrf.mxu1 }
 0x255   : > { %v799_v46 = vadd.f32 %v798_v48, %v797_v40  ;;  %2751 = vrot.lane.b32.xlu1 %v3433_v51, %s3526_s26  ;;  %v748_v1 = vadd.f32 %v747_v12, %v746_v4  ;;  %v2667_v0 = vmul.f32 %v3433_v51, %v3433_v51  ;;  %v2642_v58 = vsel %vm496_vm1, %v3433_v51, 0.0 }
 0x256   : > { %v2598_v52 = vpop.f32.mrf.mxu1 }
 0x257   : > { %v2640_v50 = vsel %vm496_vm1, %v2598_v52, 0.0  ;;  %v2666_v26 = vmul.f32 %v2598_v52, %v2598_v52  ;;  %2749 = vrot.lane.b32.xlu0 %v2598_v52, %s3526_s26  ;;  %v801_v27 = vadd.f32 %v800_v10, %v799_v46  ;;  %v2695_v43 = vsel %vm496_vm1, %v2667_v0, 0.0 }
 0x258   : > { %v2641_v23 = vadd.f32 %v2640_v50, %v2639_v53 }
 0x259   : > { %v2693_v11 = vsel %vm496_vm1, %v2666_v26, 0.0  ;;  %v1467_v34 = vpop.permute.xlu1 %1466 }
 0x25a   : > { %v2694_v28 = vadd.f32 %v2693_v11, %v2692_v41  ;;  %v2643_v61 = vadd.f32 %v2642_v58, %v2641_v23  ;;  %v1417_v41 = vadd.f32 %v1416_v18, %v4633_v15  ;;  %v1366_v15 = vadd.f32 %v1365_v63, %v1364_v57 }
 0x25b   : > { %v1465_v33 = vpop.permute.xlu0 %1464 }
 0x25c   : > { %v2696_v55 = vadd.f32 %v2695_v43, %v2694_v28  ;;  %v1418_v4 = vrot.slane %v1417_v41, 2  ;;  %v1367_v26 = vrot.slane %v1366_v15, 1 }
 0x25f   : > { %v3349_v47 = vpop.f32.mrf.mxu0 }
 0x260   : > { %829 = vst.msk [vmem:[%s4430_s8 + $0xc8] sm:$0xff] %vm496_vm1, %v3349_v47  ;;  %v776_v38 = vmul.f32 %v3349_v47, %v3349_v47  ;;  %v751_v62 = vsel %vm496_vm1, %v3349_v47, 0.0 }
 0x261   : > { %1502 = vst.msk [vmem:[%s4430_s8 + $0xc8] sm:$0xff] %vm1488_vm4, %v1467_v34  ;;  %v707_v6 = vpop.f32.mrf.mxu0 }
 0x262   : > { %v749_v13 = vsel %vm496_vm1, %v707_v6, 0.0  ;;  %v775_v25 = vmul.f32 %v707_v6, %v707_v6  ;;  %828 = vst.msk [vmem:[%s4430_s8 + $0xc0] sm:$0xff] %vm496_vm1, %v707_v6  ;;  %v804_v9 = vsel %vm496_vm1, %v776_v38, 0.0 }
 0x263   : > { %v750_v37 = vadd.f32 %v749_v13, %v748_v1  ;;  %1501 = vst.msk [vmem:[%s4430_s8 + $0xc0] sm:$0xff] %vm1488_vm4, %v1465_v33  ;;  %v1419_v1 = vadd.f32 %v1418_v4, %v1417_v41 }
 0x264   : > { %v802_v22 = vsel %vm496_vm1, %v775_v25, 0.0  ;;  %v3436_v54 = vpop.f32.mrf.mxu1 }
 0x265   : > { %v803_v36 = vadd.f32 %v802_v22, %v801_v27  ;;  %2755 = vrot.lane.b32.xlu1 %v3436_v54, %s3526_s26  ;;  %v752_v19 = vadd.f32 %v751_v62, %v750_v37  ;;  %v2669_v17 = vmul.f32 %v3436_v54, %v3436_v54  ;;  %v2646_v44 = vsel %vm496_vm1, %v3436_v54, 0.0  ;;  %v1471_v30 = vpop.permute.xlu1 %1470 }
 0x266   : > { %v2608_v49 = vpop.f32.mrf.mxu1  ;;  %v1420_v28 = vrot.slane %v1419_v1, 1 }
 0x267   : > { %v2644_v31 = vsel %vm496_vm1, %v2608_v49, 0.0  ;;  %v2668_v60 = vmul.f32 %v2608_v49, %v2608_v49  ;;  %2753 = vrot.lane.b32.xlu0 %v2608_v49, %s3526_s26  ;;  %v805_v3 = vadd.f32 %v804_v9, %v803_v36  ;;  %v2699_v7 = vsel %vm496_vm1, %v2669_v17, 0.0  ;;  %v1469_v8 = vpop.permute.xlu0 %1468  ;;  %s2950_s26 = sshll.u32 %s214_s25, 1 }
 0x268   : > { %v2645_v20 = vadd.f32 %v2644_v31, %v2643_v61  ;;  %v3352_v5 = vpop.f32.mrf.mxu0  ;;  %v1421_v6 = vadd.f32 %v1420_v28, %v1419_v1  ;;  %s216_s12 = scalar_lea.vmem %s4916_s3, %s2950_s26 }
 0x269   : > { %v2697_v16 = vsel %vm496_vm1, %v2668_v60, 0.0  ;;  %831 = vst.msk [vmem:[%s4430_s8 + $0xe8] sm:$0xff] %vm496_vm1, %v3352_v5  ;;  %v778_v45 = vmul.f32 %v3352_v5, %v3352_v5  ;;  %v755_v56 = vsel %vm496_vm1, %v3352_v5, 0.0 }
 0x26a   : > { %v4770_v59 = vadd.f32 %v2646_v44, %v2645_v20  ;;  %v2698_v40 = vadd.f32 %v2697_v16, %v2696_v55  ;;  %1504 = vst.msk [vmem:[%s4430_s8 + $0xe8] sm:$0xff] %vm1488_vm4, %v1471_v30  ;;  %v717_v21 = vpop.f32.mrf.mxu0  ;;  %v1368_v55 = vadd.f32 %v1367_v26, %v1366_v15 }
 0x26b   : > { %v753_v53 = vsel %vm496_vm1, %v717_v21, 0.0  ;;  %v777_v14 = vmul.f32 %v717_v21, %v717_v21  ;;  %830 = vst.msk [vmem:[%s4430_s8 + $0xe0] sm:$0xff] %vm496_vm1, %v717_v21  ;;  %v808_v29 = vsel %vm496_vm1, %v778_v45, 0.0 }
 0x26c   : > { %v4779_v24 = vadd.f32 %v2699_v7, %v2698_v40  ;;  %v754_v2 = vadd.f32 %v753_v53, %v752_v19  ;;  %1503 = vst.msk [vmem:[%s4430_s8 + $0xe0] sm:$0xff] %vm1488_vm4, %v1469_v8 }
 0x26d   : > { %v806_v42 = vsel %vm496_vm1, %v777_v14, 0.0 }
 0x26e   : > { %v756_v32 = vadd.f32 %v755_v56, %v754_v2  ;;  %v807_v35 = vadd.f32 %v806_v42, %v805_v3 }
 0x270   : > { %v757_v12 = vrot.slane %v756_v32, 4  ;;  %v809_v48 = vadd.f32 %v808_v29, %v807_v35 }
 0x271   : > { %v2728_v50 = vpop.permute.xlu1 %2727 }
 0x272   : > { %v758_v51 = vadd.f32 %v757_v12, %v756_v32  ;;  %v810_v46 = vrot.slane %v809_v48, 4 }
 0x273   : > { %v2726_v11 = vpop.permute.xlu0 %2725 }
 0x274   : > { %v759_v10 = vrot.slane %v758_v51, 2  ;;  %v811_v52 = vadd.f32 %v810_v46, %v809_v48  ;;  %v3387_v0 = vpop.f32.mrf.mxu0 }
 0x275   : > { %3138 = vst.msk [vmem:[%s4430_s8 + $0x18] sm:$0xff] %vm496_vm1, %v3387_v0  ;;  %v2046_v3 = vmul.f32 %v3387_v0, %v3387_v0  ;;  %v2009_v44 = vsel %vm496_vm1, %v3387_v0, 0.0 }
 0x276   : > { %v760_v27 = vadd.f32 %v759_v10, %v758_v51  ;;  %v812_v23 = vrot.slane %v811_v52, 2  ;;  %3236 = vst.msk [vmem:[%s4430_s8 + $0x18] sm:$0xff] %vm1488_vm4, %v2728_v50  ;;  %v1929_v58 = vpop.f32.mrf.mxu0 }
 0x277   : > { %3137 = vst.msk [vmem:[%s4430_s8 + $0x10] sm:$0xff] %vm496_vm1, %v1929_v58  ;;  %v2045_v60 = vmul.f32 %v1929_v58, %v1929_v58  ;;  %v2008_v18 = vsel %vm496_vm1, %v1929_v58, 0.0  ;;  %v2062_v21 = vsel %vm496_vm1, %v2046_v3, 0.0 }
 0x278   : > { %v761_v61 = vrot.slane %v760_v27, 1  ;;  %v813_v43 = vadd.f32 %v812_v23, %v811_v52  ;;  %3235 = vst.msk [vmem:[%s4430_s8 + $0x10] sm:$0xff] %vm1488_vm4, %v2726_v11  ;;  %v2010_v57 = vadd.f32 %v2009_v44, %v2008_v18 }
 0x279   : > { %v2061_v30 = vsel %vm496_vm1, %v2045_v60, 0.0 }
 0x27a   : > { %v762_v47 = vadd.f32 %v761_v61, %v760_v27  ;;  %v814_v34 = vrot.slane %v813_v43, 1  ;;  %v2063_v45 = vadd.f32 %v2062_v21, %v2061_v30 }
 0x27c   : > { %v815_v33 = vadd.f32 %v814_v34, %v813_v43  ;;  %v4794_v38 = vadd.f32 %v1368_v55, %v762_v47 }
 0x27d   : > { %v2732_v37 = vpop.permute.xlu1 %2731 }
 0x27e   : > { %v4796_v13 = vadd.f32 %v1421_v6, %v815_v33 }
 0x27f   : > { %v2730_v22 = vpop.permute.xlu0 %2729 }
 0x280   : > { %v3390_v25 = vpop.f32.mrf.mxu0 }
 0x281   : > { %3140 = vst.msk [vmem:[%s4430_s8 + $0x38] sm:$0xff] %vm496_vm1, %v3390_v25  ;;  %v2048_v14 = vmul.f32 %v3390_v25, %v3390_v25  ;;  %v2013_v42 = vsel %vm496_vm1, %v3390_v25, 0.0 }
 0x282   : > { %3238 = vst.msk [vmem:[%s4430_s8 + $0x38] sm:$0xff] %vm1488_vm4, %v2732_v37  ;;  %v1939_v62 = vpop.f32.mrf.mxu0 }
 0x283   : > { %3139 = vst.msk [vmem:[%s4430_s8 + $0x30] sm:$0xff] %vm496_vm1, %v1939_v62  ;;  %v2047_v20 = vmul.f32 %v1939_v62, %v1939_v62  ;;  %v2011_v16 = vsel %vm496_vm1, %v1939_v62, 0.0  ;;  %v2066_v35 = vsel %vm496_vm1, %v2048_v14, 0.0 }
 0x284   : > { %3237 = vst.msk [vmem:[%s4430_s8 + $0x30] sm:$0xff] %vm1488_vm4, %v2730_v22  ;;  %v2012_v53 = vadd.f32 %v2011_v16, %v2010_v57 }
 0x285   : > { %v2064_v7 = vsel %vm496_vm1, %v2047_v20, 0.0 }
 0x286   : > { %v2065_v56 = vadd.f32 %v2064_v7, %v2063_v45  ;;  %v2014_v32 = vadd.f32 %v2013_v42, %v2012_v53  ;;  %v2648_v53 = vrot.slane %v4770_v59, 4  ;;  %v2701_v42 = vrot.slane %v4779_v24, 4 }
 0x288   : > { %v2067_v12 = vadd.f32 %v2066_v35, %v2065_v56 }
 0x28a   : > { %v2736_v36 = vpop.permute.xlu1 %2735 }
 0x28c   : > { %v3393_v54 = vpop.f32.mrf.mxu0  ;;  %v2734_v39 = vpop.permute.xlu0 %2733 }
 0x28d   : > { %3142 = vst.msk [vmem:[%s4430_s8 + $0x58] sm:$0xff] %vm496_vm1, %v3393_v54  ;;  %v2050_v48 = vmul.f32 %v3393_v54, %v3393_v54  ;;  %v2017_v1 = vsel %vm496_vm1, %v3393_v54, 0.0 }
 0x28e   : > { %3240 = vst.msk [vmem:[%s4430_s8 + $0x58] sm:$0xff] %vm1488_vm4, %v2736_v36  ;;  %v1949_v19 = vpop.f32.mrf.mxu0 }
 0x28f   : > { %3141 = vst.msk [vmem:[%s4430_s8 + $0x50] sm:$0xff] %vm496_vm1, %v1949_v19  ;;  %v2049_v41 = vmul.f32 %v1949_v19, %v1949_v19  ;;  %v2015_v63 = vsel %vm496_vm1, %v1949_v19, 0.0  ;;  %v2070_v50 = vsel %vm496_vm1, %v2050_v48, 0.0  ;;  %v2649_v48 = vadd.f32 %v2648_v53, %v4770_v59 }
 0x290   : > { %3239 = vst.msk [vmem:[%s4430_s8 + $0x50] sm:$0xff] %vm1488_vm4, %v2734_v39  ;;  %v2016_v4 = vadd.f32 %v2015_v63, %v2014_v32 }
 0x291   : > { %v2068_v29 = vsel %vm496_vm1, %v2049_v41, 0.0 }
 0x292   : > { %v2069_v51 = vadd.f32 %v2068_v29, %v2067_v12  ;;  %v2018_v52 = vadd.f32 %v2017_v1, %v2016_v4 }
 0x294   : > { %v2071_v23 = vadd.f32 %v2070_v50, %v2069_v51 }
 0x297   : > { %v2740_v49 = vpop.permute.xlu1 %2739 }
 0x298   : > { %v3396_v9 = vpop.f32.mrf.mxu0 }
 0x299   : > { %3144 = vst.msk [vmem:[%s4430_s8 + $0x78] sm:$0xff] %vm496_vm1, %v3396_v9  ;;  %v2738_v31 = vpop.permute.xlu0 %2737  ;;  %v2052_v58 = vmul.f32 %v3396_v9, %v3396_v9  ;;  %v2021_v61 = vsel %vm496_vm1, %v3396_v9, 0.0 }
 0x29a   : > { %3242 = vst.msk [vmem:[%s4430_s8 + $0x78] sm:$0xff] %vm1488_vm4, %v2740_v49  ;;  %v1959_v17 = vpop.f32.mrf.mxu0 }
 0x29b   : > { %3143 = vst.msk [vmem:[%s4430_s8 + $0x70] sm:$0xff] %vm496_vm1, %v1959_v17  ;;  %v2051_v15 = vmul.f32 %v1959_v17, %v1959_v17  ;;  %v2019_v10 = vsel %vm496_vm1, %v1959_v17, 0.0  ;;  %v2074_v34 = vsel %vm496_vm1, %v2052_v58, 0.0 }
 0x29c   : > { %3241 = vst.msk [vmem:[%s4430_s8 + $0x70] sm:$0xff] %vm1488_vm4, %v2738_v31  ;;  %v2020_v27 = vadd.f32 %v2019_v10, %v2018_v52  ;;  %v2702_v10 = vadd.f32 %v2701_v42, %v4779_v24 }
 0x29d   : > { %v2072_v26 = vsel %vm496_vm1, %v2051_v15, 0.0 }
 0x29e   : > { %v2073_v28 = vadd.f32 %v2072_v26, %v2071_v23  ;;  %v2022_v47 = vadd.f32 %v2021_v61, %v2020_v27  ;;  %v2650_v26 = vrot.slane %v2649_v48, 2  ;;  %v2703_v58 = vrot.slane %v2702_v10, 2 }
 0x2a0   : > { %v2075_v37 = vadd.f32 %v2074_v34, %v2073_v28  ;;  %v2651_v28 = vadd.f32 %v2650_v26, %v2649_v48 }
 0x2a4   : > { %v3399_v5 = vpop.f32.mrf.mxu0 }
 0x2a5   : > { %3146 = vst.msk [vmem:[%s4430_s8 + $0x98] sm:$0xff] %vm496_vm1, %v3399_v5  ;;  %v2054_v62 = vmul.f32 %v3399_v5, %v3399_v5  ;;  %v2025_v19 = vsel %vm496_vm1, %v3399_v5, 0.0 }
 0x2a6   : > { %v1969_v40 = vpop.f32.mrf.mxu0 }
 0x2a7   : > { %3145 = vst.msk [vmem:[%s4430_s8 + $0x90] sm:$0xff] %vm496_vm1, %v1969_v40  ;;  %v2744_v8 = vpop.permute.xlu1 %2743  ;;  %v2053_v11 = vmul.f32 %v1969_v40, %v1969_v40  ;;  %v2023_v43 = vsel %vm496_vm1, %v1969_v40, 0.0  ;;  %v2078_v17 = vsel %vm496_vm1, %v2054_v62, 0.0 }
 0x2a8   : > { %3244 = vst.msk [vmem:[%s4430_s8 + $0x98] sm:$0xff] %vm1488_vm4, %v2744_v8  ;;  %v2024_v25 = vadd.f32 %v2023_v43, %v2022_v47 }
 0x2a9   : > { %v2742_v2 = vpop.permute.xlu0 %2741  ;;  %v2076_v6 = vsel %vm496_vm1, %v2053_v11, 0.0 }
 0x2aa   : > { %3243 = vst.msk [vmem:[%s4430_s8 + $0x90] sm:$0xff] %vm1488_vm4, %v2742_v2  ;;  %v2077_v54 = vadd.f32 %v2076_v6, %v2075_v37  ;;  %v2026_v9 = vadd.f32 %v2025_v19, %v2024_v25  ;;  %v2652_v6 = vrot.slane %v2651_v28, 1 }
 0x2ac   : > { %v2079_v3 = vadd.f32 %v2078_v17, %v2077_v54 }
 0x2b0   : > { %v3402_v46 = vpop.f32.mrf.mxu0 }
 0x2b1   : > { %3148 = vst.msk [vmem:[%s4430_s8 + $0xb8] sm:$0xff] %vm496_vm1, %v3402_v46  ;;  %v2056_v18 = vmul.f32 %v3402_v46, %v3402_v46  ;;  %v2029_v5 = vsel %vm496_vm1, %v3402_v46, 0.0 }
 0x2b2   : > { %v1979_v0 = vpop.f32.mrf.mxu0 }
 0x2b3   : > { %3147 = vst.msk [vmem:[%s4430_s8 + $0xb0] sm:$0xff] %vm496_vm1, %v1979_v0  ;;  %v2055_v22 = vmul.f32 %v1979_v0, %v1979_v0  ;;  %v2027_v39 = vsel %vm496_vm1, %v1979_v0, 0.0  ;;  %v2082_v57 = vsel %vm496_vm1, %v2056_v18, 0.0 }
 0x2b4   : > { %v2028_v60 = vadd.f32 %v2027_v39, %v2026_v9 }
 0x2b5   : > { %v2080_v31 = vsel %vm496_vm1, %v2055_v22, 0.0 }
 0x2b6   : > { %v2081_v44 = vadd.f32 %v2080_v31, %v2079_v3  ;;  %v2030_v16 = vadd.f32 %v2029_v5, %v2028_v60 }
 0x2b7   : > { %v2748_v55 = vpop.permute.xlu1 %2747 }
 0x2b8   : > { %3246 = vst.msk [vmem:[%s4430_s8 + $0xb8] sm:$0xff] %vm1488_vm4, %v2748_v55  ;;  %v2083_v7 = vadd.f32 %v2082_v57, %v2081_v44  ;;  %v2704_v55 = vadd.f32 %v2703_v58, %v2702_v10 }
 0x2b9   : > { %v2746_v33 = vpop.permute.xlu0 %2745 }
 0x2ba   : > { %3245 = vst.msk [vmem:[%s4430_s8 + $0xb0] sm:$0xff] %vm1488_vm4, %v2746_v33  ;;  %v2705_v62 = vrot.slane %v2704_v55, 1 }
 0x2bc   : > { %v3405_v36 = vpop.f32.mrf.mxu0  ;;  %v2706_v9 = vadd.f32 %v2705_v62, %v2704_v55 }
 0x2bd   : > { %3150 = vst.msk [vmem:[%s4430_s8 + $0xd8] sm:$0xff] %vm496_vm1, %v3405_v36  ;;  %v2058_v8 = vmul.f32 %v3405_v36, %v3405_v36  ;;  %v2033_v2 = vsel %vm496_vm1, %v3405_v36, 0.0  ;;  %v2653_v36 = vadd.f32 %v2652_v6, %v2651_v28 }
 0x2be   : > { %v1989_v49 = vpop.f32.mrf.mxu0 }
 0x2bf   : > { %3149 = vst.msk [vmem:[%s4430_s8 + $0xd0] sm:$0xff] %vm496_vm1, %v1989_v49  ;;  %v2057_v20 = vmul.f32 %v1989_v49, %v1989_v49  ;;  %v2031_v30 = vsel %vm496_vm1, %v1989_v49, 0.0  ;;  %v2086_v35 = vsel %vm496_vm1, %v2058_v8, 0.0 }
 0x2c0   : > { %v2032_v21 = vadd.f32 %v2031_v30, %v2030_v16 }
 0x2c1   : > { %v2084_v40 = vsel %vm496_vm1, %v2057_v20, 0.0 }
 0x2c2   : > { %v2085_v14 = vadd.f32 %v2084_v40, %v2083_v7  ;;  %v2034_v32 = vadd.f32 %v2033_v2, %v2032_v21 }
 0x2c4   : > { %v2087_v51 = vadd.f32 %v2086_v35, %v2085_v14 }
 0x2c7   : > { %v2752_v45 = vpop.permute.xlu1 %2751 }
 0x2c8   : > { %3248 = vst.msk [vmem:[%s4430_s8 + $0xd8] sm:$0xff] %vm1488_vm4, %v2752_v45  ;;  %v3408_v41 = vpop.f32.mrf.mxu0 }
 0x2c9   : > { %3152 = vst.msk [vmem:[%s4430_s8 + $0xf8] sm:$0xff] %vm496_vm1, %v3408_v41  ;;  %v2750_v56 = vpop.permute.xlu0 %2749  ;;  %v2060_v29 = vmul.f32 %v3408_v41, %v3408_v41  ;;  %v2037_v46 = vsel %vm496_vm1, %v3408_v41, 0.0 }
 0x2ca   : > { %3247 = vst.msk [vmem:[%s4430_s8 + $0xd0] sm:$0xff] %vm1488_vm4, %v2750_v56  ;;  %v1999_v63 = vpop.f32.mrf.mxu0 }
 0x2cb   : > { %v2035_v4 = vsel %vm496_vm1, %v1999_v63, 0.0  ;;  %v2059_v12 = vmul.f32 %v1999_v63, %v1999_v63  ;;  %3151 = vst.msk [vmem:[%s4430_s8 + $0xf0] sm:$0xff] %vm496_vm1, %v1999_v63  ;;  %v2090_v50 = vsel %vm496_vm1, %v2060_v29, 0.0 }
 0x2cc   : > { %v2036_v15 = vadd.f32 %v2035_v4, %v2034_v32 }
 0x2cd   : > { %v2088_v1 = vsel %vm496_vm1, %v2059_v12, 0.0 }
 0x2ce   : > { %v2038_v52 = vadd.f32 %v2037_v46, %v2036_v15  ;;  %v2089_v0 = vadd.f32 %v2088_v1, %v2087_v51 }
 0x2d0   : > { %v2039_v27 = vrot.slane %v2038_v52, 4  ;;  %v2091_v23 = vadd.f32 %v2090_v50, %v2089_v0 }
 0x2d2   : > { %v2040_v59 = vadd.f32 %v2039_v27, %v2038_v52  ;;  %v2092_v11 = vrot.slane %v2091_v23, 4 }
 0x2d4   : > { %v2041_v61 = vrot.slane %v2040_v59, 2  ;;  %v2093_v43 = vadd.f32 %v2092_v11, %v2091_v23 }
 0x2d6   : > { %v2042_v24 = vadd.f32 %v2041_v61, %v2040_v59  ;;  %v2094_v47 = vrot.slane %v2093_v43, 2 }
 0x2d7   : > { %v2756_v34 = vpop.permute.xlu1 %2755 }
 0x2d8   : > { %v2043_v33 = vrot.slane %v2042_v24, 1  ;;  %v2095_v25 = vadd.f32 %v2094_v47, %v2093_v43  ;;  %3250 = vst.msk [vmem:[%s4430_s8 + $0xf8] sm:$0xff] %vm1488_vm4, %v2756_v34 }
 0x2d9   : > { %v2754_v37 = vpop.permute.xlu0 %2753 }
 0x2da   : > { %v2044_v22 = vadd.f32 %v2043_v33, %v2042_v24  ;;  %v2096_v54 = vrot.slane %v2095_v25, 1  ;;  %3249 = vst.msk [vmem:[%s4430_s8 + $0xf0] sm:$0xff] %vm1488_vm4, %v2754_v37 }
 0x2dc   : > { %v2097_v19 = vadd.f32 %v2096_v54, %v2095_v25  ;;  %v2098_v39 = vadd.f32 %v2044_v22, %v4794_v38 }
 0x2de   : > { %v2099_v49 = vadd.f32 %v2097_v19, %v4796_v13  ;;  %v2707_v17 = vadd.f32 %v2653_v36, %v2098_v39 }
 0x2e0   : > { %v2708_v31 = vadd.f32 %v2706_v9, %v2099_v49  ;;  %2790 = vst.msk [vmem:[%s216_s12] sm:$0x1] %vm2789_vm5, %v2707_v17 }
 0x2e2   : > { %2791 = vst.msk [vmem:[%s216_s12 + $0x1] sm:$0x1] %vm2789_vm5, %v2708_v31 }
 0x2e3 PF: > { %s14_s16 = sadd.s32 1, %s3523_s16   ;;  %s4949_s12 = smov %s3515_s14 }
 0x2e4   : > { %p11_p8 = scmp.ge.s32.totalorder %s14_s16, 6   ;;  %s4950_s13 = smov %s3519_s15 }
 0x2e5   : > { %s4951_s14 = smov %s4954_s17  ;;  %s4952_s15 = smov %s4958_s18 }
 0x2e6   :  { %13 = sbr.rel (!%p11_p8) target bundleno = 3 (0x3), region = 77 }

</bundles_post_ra>
